<compile_context>
chip_gen: v7x
topology: tpu7x:2x2x1
jax: 0.10.0
libtpu: 0.0.40
codegen_flags: <defaults>
</compile_context>

<pallas_src>
import math
import functools

import jax
import jax.numpy as jnp
from jax import lax
from jax.experimental import pallas as pl
from jax.experimental.pallas import tpu as pltpu

F32 = jnp.float32
BF16 = jnp.bfloat16

_TDOT = (((1,), (1,)), ((), ()))   # contract dim-1 with dim-1  ("B-transposed")
_TADOT = (((0,), (0,)), ((), ()))  # contract dim-0 with dim-0  ("A-transposed")


# ------------------------------ in-kernel helpers ------------------------------


def _layer_norm(y, g, b, eps):
    """Row-wise LayerNorm in f32.  y: (M, d); g, b: (1, d)."""
    mu = jnp.mean(y, axis=-1, keepdims=True)
    var = jnp.mean((y - mu) ** 2, axis=-1, keepdims=True)
    return (y - mu) * lax.rsqrt(var + eps) * g + b


def _embed(xtok, xmark, pe, wtok, wmark):
    """Token conv-window embed + time-mark embed + positional add.  Returns f32 (L, d)."""
    x = jnp.dot(xtok, wtok, preferred_element_type=F32)
    x = x + jnp.dot(xmark, wmark, preferred_element_type=F32)
    return x + pe


def _mha(xq, xkv, w_ref, b_ref, *, n_heads, causal):
    """Multi-head attention core (no out-proj bias / residual / LN).

    xq   : (Lq, d) bf16 query input.
    xkv  : (Lk, d) bf16 key/value input.
    w_ref: (4, d, d) bf16 slab [Wq, Wk, Wv, Wo].  Wq/Wk/Wv are stored in
           (out_features, in_features) layout and used with a feature-axis
           contraction, so Q/K/V come out transposed (d, L): every head is a
           sublane-tile-aligned row block (dk = d/n_heads).  Wo is stored
           (in_features, out_features) so per-head out-proj slabs are row
           blocks too.
    b_ref: (3, d, 1) f32 [bq, bk, bv] column-vector biases for the transposed
           projections.
    Returns (Lq, d) f32 attention output.
    """
    lq, d = xq.shape
    assert d % n_heads == 0
    dk = d // n_heads
    scale = 1.0 / math.sqrt(dk)

    # Head-folded projections: one (d,d) MXU dot each (no per-head tiny dots).
    qt = lax.dot_general(w_ref[0], xq, _TDOT, preferred_element_type=F32) + b_ref[0]
    kt = lax.dot_general(w_ref[1], xkv, _TDOT, preferred_element_type=F32) + b_ref[1]
    vt = lax.dot_general(w_ref[2], xkv, _TDOT, preferred_element_type=F32) + b_ref[2]

    acc = jnp.zeros((lq, d), F32)
    for h in range(n_heads):                            # static unroll (n_heads small)
        lo, hi = h * dk, (h + 1) * dk
        qh = qt[lo:hi, :]                               # (dk, Lq) sublane-aligned slice
        kh = kt[lo:hi, :]                               # (dk, Lk)
        vh = vt[lo:hi, :]                               # (dk, Lk)
        # S_h = Q_h K_h^T without materializing any transpose.
        s = lax.dot_general(qh, kh, _TADOT, preferred_element_type=F32) * scale
        if causal:
            iq = lax.broadcasted_iota(jnp.int32, s.shape, 0)
            ik = lax.broadcasted_iota(jnp.int32, s.shape, 1)
            s = jnp.where(ik > iq, -1e30, s)
        s = s - jnp.max(s, axis=-1, keepdims=True)
        p = jnp.exp(s)
        p = p / jnp.sum(p, axis=-1, keepdims=True)      # exact softmax normalization
        # O_h = P V_h  (V held transposed -> contract the Lk axis of both).
        oh = lax.dot_general(p, vh, _TDOT, preferred_element_type=F32)   # (Lq, dk)
        acc = acc + jnp.dot(oh.astype(BF16), w_ref[3, lo:hi, :],
                            preferred_element_type=F32)                  # (Lq, d)
    return acc


def _ffn(x_bf16, w1, b1, w2, b2):
    """w1 -> gelu -> w2 with f32 accumulation.  x_bf16: (M, d)."""
    h = jnp.dot(x_bf16, w1, preferred_element_type=F32) + b1
    h = jax.nn.gelu(h)                                   # tanh approx (EUP)
    return jnp.dot(h.astype(BF16), w2, preferred_element_type=F32) + b2


# --------------------------------- fused kernels --------------------------------


def _encoder_kernel(xtok_ref, xmark_ref, pe_ref,
                    wtok_ref, wmark_ref,
                    wattn_ref, battn_ref, bo_ref,
                    w1_ref, b1_ref, w2_ref, b2_ref,
                    lng_ref, lnb_ref,
                    o_ref, *, n_heads, eps):
    """Embedding + one encoder layer + encoder-stack norm, one batch element."""
    x = _embed(xtok_ref[0], xmark_ref[0], pe_ref[...], wtok_ref[...], wmark_ref[...])
    xb = x.astype(BF16)

    # self-attention + residual + LN1
    a = _mha(xb, xb, wattn_ref, battn_ref, n_heads=n_heads, causal=False)
    y = _layer_norm(x + a + bo_ref[...], lng_ref[0], lnb_ref[0], eps)
    yb = y.astype(BF16)

    # FFN + residual + LN2
    f = _ffn(yb, w1_ref[...], b1_ref[...], w2_ref[...], b2_ref[...])
    z = _layer_norm(y + f, lng_ref[1], lnb_ref[1], eps)

    # encoder-stack final LayerNorm
    z = _layer_norm(z, lng_ref[2], lnb_ref[2], eps)
    o_ref[0] = z.astype(o_ref.dtype)


def _decoder_kernel(xtok_ref, xmark_ref, pe_ref, enc_ref,
                    wtok_ref, wmark_ref,
                    wself_ref, bself_ref, boself_ref,
                    wcross_ref, bcross_ref, bocross_ref,
                    w1_ref, b1_ref, w2_ref, b2_ref,
                    lng_ref, lnb_ref,
                    wproj_ref, bproj_ref,
                    o_ref, *, n_heads, pred_len, eps):
    """Embedding + one decoder layer + stack norm + projection (last pred_len rows)."""
    x = _embed(xtok_ref[0], xmark_ref[0], pe_ref[...], wtok_ref[...], wmark_ref[...])
    xb = x.astype(BF16)
    enc = enc_ref[0]                                           # (Lenc, d) bf16

    # causal self-attention + residual + LN1
    a = _mha(xb, xb, wself_ref, bself_ref, n_heads=n_heads, causal=True)
    y = _layer_norm(x + a + boself_ref[...], lng_ref[0], lnb_ref[0], eps)
    yb = y.astype(BF16)

    # cross-attention over the encoder output + residual + LN2
    a = _mha(yb, enc, wcross_ref, bcross_ref, n_heads=n_heads, causal=False)
    y = _layer_norm(y + a + bocross_ref[...], lng_ref[1], lnb_ref[1], eps)
    yb = y.astype(BF16)

    # FFN + residual + LN3
    f = _ffn(yb, w1_ref[...], b1_ref[...], w2_ref[...], b2_ref[...])
    z = _layer_norm(y + f, lng_ref[2], lnb_ref[2], eps)

    # decoder-stack norm + output projection, only on the last pred_len rows
    # (both are row-wise, so slicing first is mathematically identical).
    zt = z[z.shape[0] - pred_len:, :]                          # static sublane slice
    zt = _layer_norm(zt, lng_ref[3], lnb_ref[3], eps)
    out = jnp.dot(zt.astype(BF16), wproj_ref[...],
                  preferred_element_type=F32) + bproj_ref[...]
    o_ref[0] = out                                             # (pred_len, c_pad) f32, lane-dense


# --------------------------------- pallas wrappers ------------------------------


def _whole(shape):
    """Full-array block, replicated across the (1-D) batch grid."""
    n = len(shape)
    return pl.BlockSpec(shape, lambda i, _n=n: (0,) * _n)


def _batch_block(shape):
    """(B, L, C) -> per-grid-step (1, L, C) block at batch index i."""
    _, l, c = shape
    return pl.BlockSpec((1, l, c), lambda i: (i, 0, 0))


def encoder_layer_call(xtok, xmark, pe, p, *, n_heads, eps=1e-5):
    b, l, _ = xtok.shape
    d = pe.shape[1]
    kern = functools.partial(_encoder_kernel, n_heads=n_heads, eps=eps)
    return pl.pallas_call(
        kern,
        out_shape=jax.ShapeDtypeStruct((b, l, d), BF16),
        grid=(b,),
        in_specs=[
            _batch_block(xtok.shape), _batch_block(xmark.shape), _whole(pe.shape),
            _whole(p["tok_w"].shape), _whole(p["mark_w"].shape),
            _whole(p["attn_w"].shape), _whole(p["attn_b"].shape), _whole(p["attn_bo"].shape),
            _whole(p["w1"].shape), _whole(p["b1"].shape),
            _whole(p["w2"].shape), _whole(p["b2"].shape),
            _whole(p["ln_g"].shape), _whole(p["ln_b"].shape),
        ],
        out_specs=_batch_block((b, l, d)),
        compiler_params=pltpu.CompilerParams(dimension_semantics=("parallel",)),
    )(xtok, xmark, pe,
      p["tok_w"], p["mark_w"],
      p["attn_w"], p["attn_b"], p["attn_bo"],
      p["w1"], p["b1"], p["w2"], p["b2"],
      p["ln_g"], p["ln_b"])


def decoder_layer_call(xtok, xmark, pe, enc_out, p, *, n_heads, pred_len, eps=1e-5):
    b = xtok.shape[0]
    c_pad = p["proj_w"].shape[1]
    kern = functools.partial(_decoder_kernel, n_heads=n_heads, pred_len=pred_len, eps=eps)
    return pl.pallas_call(
        kern,
        out_shape=jax.ShapeDtypeStruct((b, pred_len, c_pad), F32),
        grid=(b,),
        in_specs=[
            _batch_block(xtok.shape), _batch_block(xmark.shape), _whole(pe.shape),
            _batch_block(enc_out.shape),
            _whole(p["tok_w"].shape), _whole(p["mark_w"].shape),
            _whole(p["self_w"].shape), _whole(p["self_b"].shape), _whole(p["self_bo"].shape),
            _whole(p["cross_w"].shape), _whole(p["cross_b"].shape), _whole(p["cross_bo"].shape),
            _whole(p["w1"].shape), _whole(p["b1"].shape),
            _whole(p["w2"].shape), _whole(p["b2"].shape),
            _whole(p["ln_g"].shape), _whole(p["ln_b"].shape),
            _whole(p["proj_w"].shape), _whole(p["proj_b"].shape),
        ],
        out_specs=_batch_block((b, pred_len, c_pad)),
        compiler_params=pltpu.CompilerParams(dimension_semantics=("parallel",)),
    )(xtok, xmark, pe, enc_out,
      p["tok_w"], p["mark_w"],
      p["self_w"], p["self_b"], p["self_bo"],
      p["cross_w"], p["cross_b"], p["cross_bo"],
      p["w1"], p["b1"], p["w2"], p["b2"],
      p["ln_g"], p["ln_b"],
      p["proj_w"], p["proj_b"])


# ----------------------------- Informer-lite forward ----------------------------


def positional_embedding(length, d_model):
    pos = jnp.arange(length, dtype=F32)[:, None]
    i = jnp.arange(0, d_model, 2, dtype=F32)[None, :]
    div = jnp.exp(-(math.log(10000.0)) * i / d_model)
    pe = jnp.zeros((length, d_model), F32)
    pe = pe.at[:, 0::2].set(jnp.sin(pos * div))
    pe = pe.at[:, 1::2].set(jnp.cos(pos * div))
    return pe.astype(BF16)


def _token_window(x):
    """Circular Conv1d(kernel=3, no bias) receptive field: [x_{t-1}, x_t, x_{t+1}]."""
    xm1 = jnp.roll(x, shift=1, axis=1)
    xp1 = jnp.roll(x, shift=-1, axis=1)
    return jnp.concatenate([xm1, x, xp1], axis=-1)          # (B, L, 3C)


def informer_forward(params, x_enc, x_mark_enc, x_dec, x_mark_dec,
                     *, n_heads, pred_len, c_out):
    d_model = params["enc"]["mark_w"].shape[1]
    l_enc = x_enc.shape[1]
    l_dec = x_dec.shape[1]

    xtok_e = _token_window(x_enc).astype(BF16)
    xmark_e = x_mark_enc.astype(BF16)
    xtok_d = _token_window(x_dec).astype(BF16)
    xmark_d = x_mark_dec.astype(BF16)
    pe_e = positional_embedding(l_enc, d_model)
    pe_d = positional_embedding(l_dec, d_model)

    enc_out = encoder_layer_call(xtok_e, xmark_e, pe_e, params["enc"], n_heads=n_heads)
    dec_out = decoder_layer_call(xtok_d, xmark_d, pe_d, enc_out, params["dec"],
                                 n_heads=n_heads, pred_len=pred_len)
    return dec_out[:, :, :c_out]            # drop the lane padding of the fused projection


def wr_xformer_forward(params, x, y, *, n_heads=4):
    # exactly mirrors the PyTorch wr_xformer.forward
    x_enc = x[:, :1, :, :]                                                  # (B,1,N,T)
    x_mark_enc = x[:, 1:, 0, :]                                             # (B,D-1,T)
    x_dec = jnp.concatenate([x_enc, jnp.zeros_like(x_enc)], axis=3)         # (B,1,N,2T)
    x_mark_dec = jnp.concatenate([x[:, 1:, 0, :], y[:, 1:, 0, :]], axis=2)  # (B,D-1,2T)
    b, d, n, t = x_enc.shape
    x_enc = x_enc.transpose(0, 3, 1, 2).reshape(b, t, -1)                   # (B,T,N)
    x_mark_enc = x_mark_enc.transpose(0, 2, 1)                              # (B,T,D-1)
    x_dec = x_dec.transpose(0, 3, 1, 2).reshape(b, t * 2, -1)               # (B,2T,N)
    x_mark_dec = x_mark_dec.transpose(0, 2, 1)                              # (B,2T,D-1)
    dec_out = informer_forward(params, x_enc, x_mark_enc, x_dec, x_mark_dec,
                               n_heads=n_heads, pred_len=t, c_out=n)        # (B,T,c_out)
    return dec_out[..., None]                                               # (B,T,c_out,1)


# ---------------------------------- parameter init ------------------------------


def init_params(key, *, enc_in, dec_in, mark_in, d_model, d_ff, c_out, n_heads):
    assert d_model % n_heads == 0
    ks = jax.random.split(key, 12)
    nrm = lambda k, s: (0.02 * jax.random.normal(k, s, dtype=F32)).astype(BF16)
    lng = lambda m: jnp.ones((m, 1, d_model), F32)
    lnb = lambda m: jnp.zeros((m, 1, d_model), F32)
    zb = lambda m: jnp.zeros((1, m), F32)

    c_pad = 128 * max(1, -(-c_out // 128))            # pad projection to lane-dense width
    proj_w = jnp.zeros((d_model, c_pad), F32)
    proj_w = proj_w.at[:, :c_out].set(0.02 * jax.random.normal(ks[11], (d_model, c_out), dtype=F32))

    enc = {
        "tok_w": nrm(ks[0], (3 * enc_in, d_model)),
        "mark_w": nrm(ks[1], (mark_in, d_model)),
        # [Wq, Wk, Wv, Wo]: Wq/Wk/Wv in (out,in) layout, Wo in (in,out) layout.
        "attn_w": nrm(ks[2], (4, d_model, d_model)),
        "attn_b": jnp.zeros((3, d_model, 1), F32),
        "attn_bo": zb(d_model),
        "w1": nrm(ks[3], (d_model, d_ff)), "b1": zb(d_ff),
        "w2": nrm(ks[4], (d_ff, d_model)), "b2": zb(d_model),
        "ln_g": lng(3), "ln_b": lnb(3),                 # [LN1, LN2, encoder-stack norm]
    }
    dec = {
        "tok_w": nrm(ks[5], (3 * dec_in, d_model)),
        "mark_w": nrm(ks[6], (mark_in, d_model)),
        "self_w": nrm(ks[7], (4, d_model, d_model)),
        "self_b": jnp.zeros((3, d_model, 1), F32),
        "self_bo": zb(d_model),
        "cross_w": nrm(ks[8], (4, d_model, d_model)),
        "cross_b": jnp.zeros((3, d_model, 1), F32),
        "cross_bo": zb(d_model),
        "w1": nrm(ks[9], (d_model, d_ff)), "b1": zb(d_ff),
        "w2": nrm(ks[10], (d_ff, d_model)), "b2": zb(d_model),
        "ln_g": lng(4), "ln_b": lnb(4),                 # [LN1, LN2, LN3, decoder-stack norm]
        "proj_w": proj_w.astype(BF16),
        "proj_b": jnp.zeros((1, c_pad), F32),
    }
    return {"enc": enc, "dec": dec}


# --------------------------------------- main -----------------------------------

if __name__ == "__main__":
    # small shapes: batch=2, in_dim=2 (value + 1 time-mark), num_nodes=4, seq=8
    B, D, N, T = 2, 2, 4, 8
    D_MODEL, D_FF, N_HEADS = 32, 64, 4
    C_OUT = N

    key = jax.random.PRNGKey(0)
    kx, ky, kp = jax.random.split(key, 3)
    x = jax.random.normal(kx, (B, D, N, T), dtype=jnp.float32)
    y = jax.random.normal(ky, (B, D, N, T), dtype=jnp.float32)

    params = init_params(kp, enc_in=N, dec_in=N, mark_in=D - 1,
                         d_model=D_MODEL, d_ff=D_FF, c_out=C_OUT, n_heads=N_HEADS)

    fwd = jax.jit(functools.partial(wr_xformer_forward, n_heads=N_HEADS))
    out = jax.block_until_ready(fwd(params, x, y))

    assert out.shape == (B, T, C_OUT, 1), out.shape
    assert bool(jnp.all(jnp.isfinite(out)))
    print("KERNEL_OK")
</pallas_src>

<mosaic_0001>
module attributes {stable_mosaic.version = 11 : i64} {
  func.func @_encoder_kernel(%arg0: i32, %arg1: memref<1x8x12xbf16, #tpu.memory_space<vmem>>, %arg2: memref<1x8x1xbf16, #tpu.memory_space<vmem>>, %arg3: memref<8x32xbf16, #tpu.memory_space<vmem>>, %arg4: memref<12x32xbf16, #tpu.memory_space<vmem>>, %arg5: memref<1x32xbf16, #tpu.memory_space<vmem>>, %arg6: memref<4x32x32xbf16, #tpu.memory_space<vmem>>, %arg7: memref<3x32x1xf32, #tpu.memory_space<vmem>>, %arg8: memref<1x32xf32, #tpu.memory_space<vmem>>, %arg9: memref<32x64xbf16, #tpu.memory_space<vmem>>, %arg10: memref<1x64xf32, #tpu.memory_space<vmem>>, %arg11: memref<64x32xbf16, #tpu.memory_space<vmem>>, %arg12: memref<1x32xf32, #tpu.memory_space<vmem>>, %arg13: memref<3x1x32xf32, #tpu.memory_space<vmem>>, %arg14: memref<3x1x32xf32, #tpu.memory_space<vmem>>, %arg15: memref<1x8x32xbf16, #tpu.memory_space<vmem>>) attributes {dimension_semantics = [#tpu.dimension_semantics<parallel>], iteration_bounds = array<i64: 2>, scalar_prefetch = 0 : i64, scratch_operands = 0 : i64, tpu.core_type = #tpu.core_type<tc>, window_params = [{transform_indices = @transform_0, window_bounds = array<i64: 1, 8, 12>}, {transform_indices = @transform_1, window_bounds = array<i64: 1, 8, 1>}, {pipeline_mode = #tpu.pipeline_mode<synchronous>, transform_indices = @transform_2, window_bounds = array<i64: 8, 32>}, {pipeline_mode = #tpu.pipeline_mode<synchronous>, transform_indices = @transform_3, window_bounds = array<i64: 12, 32>}, {pipeline_mode = #tpu.pipeline_mode<synchronous>, transform_indices = @transform_4, window_bounds = array<i64: 1, 32>}, {pipeline_mode = #tpu.pipeline_mode<synchronous>, transform_indices = @transform_5, window_bounds = array<i64: 4, 32, 32>}, {pipeline_mode = #tpu.pipeline_mode<synchronous>, transform_indices = @transform_6, window_bounds = array<i64: 3, 32, 1>}, {pipeline_mode = #tpu.pipeline_mode<synchronous>, transform_indices = @transform_7, window_bounds = array<i64: 1, 32>}, {pipeline_mode = #tpu.pipeline_mode<synchronous>, transform_indices = @transform_8, window_bounds = array<i64: 32, 64>}, {pipeline_mode = #tpu.pipeline_mode<synchronous>, transform_indices = @transform_9, window_bounds = array<i64: 1, 64>}, {pipeline_mode = #tpu.pipeline_mode<synchronous>, transform_indices = @transform_10, window_bounds = array<i64: 64, 32>}, {pipeline_mode = #tpu.pipeline_mode<synchronous>, transform_indices = @transform_11, window_bounds = array<i64: 1, 32>}, {pipeline_mode = #tpu.pipeline_mode<synchronous>, transform_indices = @transform_12, window_bounds = array<i64: 3, 1, 32>}, {pipeline_mode = #tpu.pipeline_mode<synchronous>, transform_indices = @transform_13, window_bounds = array<i64: 3, 1, 32>}, {transform_indices = @transform_14, window_bounds = array<i64: 1, 8, 32>}]} {
    %c0 = arith.constant 0 : index
    %c0_0 = arith.constant 0 : index
    %c0_1 = arith.constant 0 : index
    %0 = vector.load %arg1[%c0, %c0_0, %c0_1] : memref<1x8x12xbf16, #tpu.memory_space<vmem>>, vector<1x8x12xbf16>
    %1 = vector.shape_cast %0 : vector<1x8x12xbf16> to vector<8x12xbf16>
    %c0_2 = arith.constant 0 : index
    %c0_3 = arith.constant 0 : index
    %c0_4 = arith.constant 0 : index
    %2 = vector.load %arg2[%c0_2, %c0_3, %c0_4] : memref<1x8x1xbf16, #tpu.memory_space<vmem>>, vector<1x8x1xbf16>
    %3 = vector.shape_cast %2 : vector<1x8x1xbf16> to vector<8x1xbf16>
    %c0_5 = arith.constant 0 : index
    %c0_6 = arith.constant 0 : index
    %4 = vector.load %arg3[%c0_5, %c0_6] : memref<8x32xbf16, #tpu.memory_space<vmem>>, vector<8x32xbf16>
    %c0_7 = arith.constant 0 : index
    %c0_8 = arith.constant 0 : index
    %5 = vector.load %arg4[%c0_7, %c0_8] : memref<12x32xbf16, #tpu.memory_space<vmem>>, vector<12x32xbf16>
    %c0_9 = arith.constant 0 : index
    %c0_10 = arith.constant 0 : index
    %6 = vector.load %arg5[%c0_9, %c0_10] : memref<1x32xbf16, #tpu.memory_space<vmem>>, vector<1x32xbf16>
    %cst = arith.constant dense<0.000000e+00> : vector<8x32xf32>
    %7 = tpu.matmul %1, %5, %cst {dimension_numbers = #tpu.dot_dimension_numbers<[1], [0], [0], [1], [0, 0, 1, 1], [], []>} : vector<8x12xbf16>, vector<12x32xbf16>, vector<8x32xf32> -> vector<8x32xf32>
    %cst_11 = arith.constant dense<0.000000e+00> : vector<8x32xf32>
    %8 = tpu.matmul %3, %6, %cst_11 {dimension_numbers = #tpu.dot_dimension_numbers<[1], [0], [0], [1], [0, 0, 1, 1], [], []>} : vector<8x1xbf16>, vector<1x32xbf16>, vector<8x32xf32> -> vector<8x32xf32>
    %9 = arith.addf %7, %8 : vector<8x32xf32>
    %10 = arith.extf %4 : vector<8x32xbf16> to vector<8x32xf32>
    %11 = arith.addf %9, %10 : vector<8x32xf32>
    %12 = arith.truncf %11 : vector<8x32xf32> to vector<8x32xbf16>
    %c0_12 = arith.constant 0 : index
    %c0_13 = arith.constant 0 : index
    %c0_14 = arith.constant 0 : index
    %13 = vector.load %arg6[%c0_12, %c0_13, %c0_14] : memref<4x32x32xbf16, #tpu.memory_space<vmem>>, vector<1x32x32xbf16>
    %14 = vector.shape_cast %13 : vector<1x32x32xbf16> to vector<32x32xbf16>
    %cst_15 = arith.constant dense<0.000000e+00> : vector<32x8xf32>
    %15 = tpu.matmul %14, %12, %cst_15 {dimension_numbers = #tpu.dot_dimension_numbers<[1], [1], [0], [0], [0, 0, 1, 0], [], []>} : vector<32x32xbf16>, vector<8x32xbf16>, vector<32x8xf32> -> vector<32x8xf32>
    %c0_16 = arith.constant 0 : index
    %c0_17 = arith.constant 0 : index
    %c0_18 = arith.constant 0 : index
    %16 = vector.load %arg7[%c0_16, %c0_17, %c0_18] : memref<3x32x1xf32, #tpu.memory_space<vmem>>, vector<1x32x1xf32>
    %17 = vector.shape_cast %16 : vector<1x32x1xf32> to vector<32x1xf32>
    %18 = vector.broadcast %17 : vector<32x1xf32> to vector<32x8xf32>
    %19 = arith.addf %15, %18 : vector<32x8xf32>
    %c1 = arith.constant 1 : index
    %c0_19 = arith.constant 0 : index
    %c0_20 = arith.constant 0 : index
    %20 = vector.load %arg6[%c1, %c0_19, %c0_20] : memref<4x32x32xbf16, #tpu.memory_space<vmem>>, vector<1x32x32xbf16>
    %21 = vector.shape_cast %20 : vector<1x32x32xbf16> to vector<32x32xbf16>
    %cst_21 = arith.constant dense<0.000000e+00> : vector<32x8xf32>
    %22 = tpu.matmul %21, %12, %cst_21 {dimension_numbers = #tpu.dot_dimension_numbers<[1], [1], [0], [0], [0, 0, 1, 0], [], []>} : vector<32x32xbf16>, vector<8x32xbf16>, vector<32x8xf32> -> vector<32x8xf32>
    %c1_22 = arith.constant 1 : index
    %c0_23 = arith.constant 0 : index
    %c0_24 = arith.constant 0 : index
    %23 = vector.load %arg7[%c1_22, %c0_23, %c0_24] : memref<3x32x1xf32, #tpu.memory_space<vmem>>, vector<1x32x1xf32>
    %24 = vector.shape_cast %23 : vector<1x32x1xf32> to vector<32x1xf32>
    %25 = vector.broadcast %24 : vector<32x1xf32> to vector<32x8xf32>
    %26 = arith.addf %22, %25 : vector<32x8xf32>
    %c2 = arith.constant 2 : index
    %c0_25 = arith.constant 0 : index
    %c0_26 = arith.constant 0 : index
    %27 = vector.load %arg6[%c2, %c0_25, %c0_26] : memref<4x32x32xbf16, #tpu.memory_space<vmem>>, vector<1x32x32xbf16>
    %28 = vector.shape_cast %27 : vector<1x32x32xbf16> to vector<32x32xbf16>
    %cst_27 = arith.constant dense<0.000000e+00> : vector<32x8xf32>
    %29 = tpu.matmul %28, %12, %cst_27 {dimension_numbers = #tpu.dot_dimension_numbers<[1], [1], [0], [0], [0, 0, 1, 0], [], []>} : vector<32x32xbf16>, vector<8x32xbf16>, vector<32x8xf32> -> vector<32x8xf32>
    %c2_28 = arith.constant 2 : index
    %c0_29 = arith.constant 0 : index
    %c0_30 = arith.constant 0 : index
    %30 = vector.load %arg7[%c2_28, %c0_29, %c0_30] : memref<3x32x1xf32, #tpu.memory_space<vmem>>, vector<1x32x1xf32>
    %31 = vector.shape_cast %30 : vector<1x32x1xf32> to vector<32x1xf32>
    %32 = vector.broadcast %31 : vector<32x1xf32> to vector<32x8xf32>
    %33 = arith.addf %29, %32 : vector<32x8xf32>
    %cst_31 = arith.constant 0.000000e+00 : f32
    %34 = vector.broadcast %cst_31 : f32 to vector<8x32xf32>
    %35 = vector.extract_strided_slice %19 {offsets = [0, 0], sizes = [8, 8], strides = [1, 1]} : vector<32x8xf32> to vector<8x8xf32>
    %36 = vector.extract_strided_slice %26 {offsets = [0, 0], sizes = [8, 8], strides = [1, 1]} : vector<32x8xf32> to vector<8x8xf32>
    %37 = vector.extract_strided_slice %33 {offsets = [0, 0], sizes = [8, 8], strides = [1, 1]} : vector<32x8xf32> to vector<8x8xf32>
    %cst_32 = arith.constant dense<0.000000e+00> : vector<8x8xf32>
    %38 = tpu.matmul %35, %36, %cst_32 {dimension_numbers = #tpu.dot_dimension_numbers<[0], [0], [1], [1], [0, 1, 1, 1], [], []>} : vector<8x8xf32>, vector<8x8xf32>, vector<8x8xf32> -> vector<8x8xf32>
    %cst_33 = arith.constant 0.353553385 : f32
    %39 = vector.broadcast %cst_33 : f32 to vector<8x8xf32>
    %40 = arith.mulf %38, %39 : vector<8x8xf32>
    %cst_34 = arith.constant dense<0xFF800000> : vector<8xf32>
    %41 = vector.multi_reduction <maximumf>, %40, %cst_34 [1] : vector<8x8xf32> to vector<8xf32>
    %42 = vector.shape_cast %41 : vector<8xf32> to vector<8x1xf32>
    %43 = vector.broadcast %42 : vector<8x1xf32> to vector<8x8xf32>
    %44 = arith.subf %40, %43 : vector<8x8xf32>
    %45 = math.exp %44 : vector<8x8xf32>
    %cst_35 = arith.constant dense<0.000000e+00> : vector<8xf32>
    %46 = vector.multi_reduction <add>, %45, %cst_35 [1] : vector<8x8xf32> to vector<8xf32>
    %47 = vector.shape_cast %46 : vector<8xf32> to vector<8x1xf32>
    %48 = vector.broadcast %47 : vector<8x1xf32> to vector<8x8xf32>
    %49 = arith.divf %45, %48 : vector<8x8xf32>
    %cst_36 = arith.constant dense<0.000000e+00> : vector<8x8xf32>
    %50 = tpu.matmul %49, %37, %cst_36 {dimension_numbers = #tpu.dot_dimension_numbers<[1], [1], [0], [0], [0, 0, 1, 0], [], []>} : vector<8x8xf32>, vector<8x8xf32>, vector<8x8xf32> -> vector<8x8xf32>
    %51 = arith.truncf %50 : vector<8x8xf32> to vector<8x8xbf16>
    %c3 = arith.constant 3 : index
    %c0_37 = arith.constant 0 : index
    %c0_38 = arith.constant 0 : index
    %52 = vector.load %arg6[%c3, %c0_37, %c0_38] : memref<4x32x32xbf16, #tpu.memory_space<vmem>>, vector<1x8x32xbf16>
    %53 = vector.shape_cast %52 : vector<1x8x32xbf16> to vector<8x32xbf16>
    %cst_39 = arith.constant dense<0.000000e+00> : vector<8x32xf32>
    %54 = tpu.matmul %51, %53, %cst_39 {dimension_numbers = #tpu.dot_dimension_numbers<[1], [0], [0], [1], [0, 0, 1, 1], [], []>} : vector<8x8xbf16>, vector<8x32xbf16>, vector<8x32xf32> -> vector<8x32xf32>
    %55 = arith.addf %34, %54 : vector<8x32xf32>
    %56 = vector.extract_strided_slice %19 {offsets = [8, 0], sizes = [8, 8], strides = [1, 1]} : vector<32x8xf32> to vector<8x8xf32>
    %57 = vector.extract_strided_slice %26 {offsets = [8, 0], sizes = [8, 8], strides = [1, 1]} : vector<32x8xf32> to vector<8x8xf32>
    %58 = vector.extract_strided_slice %33 {offsets = [8, 0], sizes = [8, 8], strides = [1, 1]} : vector<32x8xf32> to vector<8x8xf32>
    %cst_40 = arith.constant dense<0.000000e+00> : vector<8x8xf32>
    %59 = tpu.matmul %56, %57, %cst_40 {dimension_numbers = #tpu.dot_dimension_numbers<[0], [0], [1], [1], [0, 1, 1, 1], [], []>} : vector<8x8xf32>, vector<8x8xf32>, vector<8x8xf32> -> vector<8x8xf32>
    %cst_41 = arith.constant 0.353553385 : f32
    %60 = vector.broadcast %cst_41 : f32 to vector<8x8xf32>
    %61 = arith.mulf %59, %60 : vector<8x8xf32>
    %cst_42 = arith.constant dense<0xFF800000> : vector<8xf32>
    %62 = vector.multi_reduction <maximumf>, %61, %cst_42 [1] : vector<8x8xf32> to vector<8xf32>
    %63 = vector.shape_cast %62 : vector<8xf32> to vector<8x1xf32>
    %64 = vector.broadcast %63 : vector<8x1xf32> to vector<8x8xf32>
    %65 = arith.subf %61, %64 : vector<8x8xf32>
    %66 = math.exp %65 : vector<8x8xf32>
    %cst_43 = arith.constant dense<0.000000e+00> : vector<8xf32>
    %67 = vector.multi_reduction <add>, %66, %cst_43 [1] : vector<8x8xf32> to vector<8xf32>
    %68 = vector.shape_cast %67 : vector<8xf32> to vector<8x1xf32>
    %69 = vector.broadcast %68 : vector<8x1xf32> to vector<8x8xf32>
    %70 = arith.divf %66, %69 : vector<8x8xf32>
    %cst_44 = arith.constant dense<0.000000e+00> : vector<8x8xf32>
    %71 = tpu.matmul %70, %58, %cst_44 {dimension_numbers = #tpu.dot_dimension_numbers<[1], [1], [0], [0], [0, 0, 1, 0], [], []>} : vector<8x8xf32>, vector<8x8xf32>, vector<8x8xf32> -> vector<8x8xf32>
    %72 = arith.truncf %71 : vector<8x8xf32> to vector<8x8xbf16>
    %c3_45 = arith.constant 3 : index
    %c8 = arith.constant 8 : index
    %c0_46 = arith.constant 0 : index
    %73 = vector.load %arg6[%c3_45, %c8, %c0_46] : memref<4x32x32xbf16, #tpu.memory_space<vmem>>, vector<1x8x32xbf16>
    %74 = vector.shape_cast %73 : vector<1x8x32xbf16> to vector<8x32xbf16>
    %cst_47 = arith.constant dense<0.000000e+00> : vector<8x32xf32>
    %75 = tpu.matmul %72, %74, %cst_47 {dimension_numbers = #tpu.dot_dimension_numbers<[1], [0], [0], [1], [0, 0, 1, 1], [], []>} : vector<8x8xbf16>, vector<8x32xbf16>, vector<8x32xf32> -> vector<8x32xf32>
    %76 = arith.addf %55, %75 : vector<8x32xf32>
    %77 = vector.extract_strided_slice %19 {offsets = [16, 0], sizes = [8, 8], strides = [1, 1]} : vector<32x8xf32> to vector<8x8xf32>
    %78 = vector.extract_strided_slice %26 {offsets = [16, 0], sizes = [8, 8], strides = [1, 1]} : vector<32x8xf32> to vector<8x8xf32>
    %79 = vector.extract_strided_slice %33 {offsets = [16, 0], sizes = [8, 8], strides = [1, 1]} : vector<32x8xf32> to vector<8x8xf32>
    %cst_48 = arith.constant dense<0.000000e+00> : vector<8x8xf32>
    %80 = tpu.matmul %77, %78, %cst_48 {dimension_numbers = #tpu.dot_dimension_numbers<[0], [0], [1], [1], [0, 1, 1, 1], [], []>} : vector<8x8xf32>, vector<8x8xf32>, vector<8x8xf32> -> vector<8x8xf32>
    %cst_49 = arith.constant 0.353553385 : f32
    %81 = vector.broadcast %cst_49 : f32 to vector<8x8xf32>
    %82 = arith.mulf %80, %81 : vector<8x8xf32>
    %cst_50 = arith.constant dense<0xFF800000> : vector<8xf32>
    %83 = vector.multi_reduction <maximumf>, %82, %cst_50 [1] : vector<8x8xf32> to vector<8xf32>
    %84 = vector.shape_cast %83 : vector<8xf32> to vector<8x1xf32>
    %85 = vector.broadcast %84 : vector<8x1xf32> to vector<8x8xf32>
    %86 = arith.subf %82, %85 : vector<8x8xf32>
    %87 = math.exp %86 : vector<8x8xf32>
    %cst_51 = arith.constant dense<0.000000e+00> : vector<8xf32>
    %88 = vector.multi_reduction <add>, %87, %cst_51 [1] : vector<8x8xf32> to vector<8xf32>
    %89 = vector.shape_cast %88 : vector<8xf32> to vector<8x1xf32>
    %90 = vector.broadcast %89 : vector<8x1xf32> to vector<8x8xf32>
    %91 = arith.divf %87, %90 : vector<8x8xf32>
    %cst_52 = arith.constant dense<0.000000e+00> : vector<8x8xf32>
    %92 = tpu.matmul %91, %79, %cst_52 {dimension_numbers = #tpu.dot_dimension_numbers<[1], [1], [0], [0], [0, 0, 1, 0], [], []>} : vector<8x8xf32>, vector<8x8xf32>, vector<8x8xf32> -> vector<8x8xf32>
    %93 = arith.truncf %92 : vector<8x8xf32> to vector<8x8xbf16>
    %c3_53 = arith.constant 3 : index
    %c16 = arith.constant 16 : index
    %c0_54 = arith.constant 0 : index
    %94 = vector.load %arg6[%c3_53, %c16, %c0_54] : memref<4x32x32xbf16, #tpu.memory_space<vmem>>, vector<1x8x32xbf16>
    %95 = vector.shape_cast %94 : vector<1x8x32xbf16> to vector<8x32xbf16>
    %cst_55 = arith.constant dense<0.000000e+00> : vector<8x32xf32>
    %96 = tpu.matmul %93, %95, %cst_55 {dimension_numbers = #tpu.dot_dimension_numbers<[1], [0], [0], [1], [0, 0, 1, 1], [], []>} : vector<8x8xbf16>, vector<8x32xbf16>, vector<8x32xf32> -> vector<8x32xf32>
    %97 = arith.addf %76, %96 : vector<8x32xf32>
    %98 = vector.extract_strided_slice %19 {offsets = [24, 0], sizes = [8, 8], strides = [1, 1]} : vector<32x8xf32> to vector<8x8xf32>
    %99 = vector.extract_strided_slice %26 {offsets = [24, 0], sizes = [8, 8], strides = [1, 1]} : vector<32x8xf32> to vector<8x8xf32>
    %100 = vector.extract_strided_slice %33 {offsets = [24, 0], sizes = [8, 8], strides = [1, 1]} : vector<32x8xf32> to vector<8x8xf32>
    %cst_56 = arith.constant dense<0.000000e+00> : vector<8x8xf32>
    %101 = tpu.matmul %98, %99, %cst_56 {dimension_numbers = #tpu.dot_dimension_numbers<[0], [0], [1], [1], [0, 1, 1, 1], [], []>} : vector<8x8xf32>, vector<8x8xf32>, vector<8x8xf32> -> vector<8x8xf32>
    %cst_57 = arith.constant 0.353553385 : f32
    %102 = vector.broadcast %cst_57 : f32 to vector<8x8xf32>
    %103 = arith.mulf %101, %102 : vector<8x8xf32>
    %cst_58 = arith.constant dense<0xFF800000> : vector<8xf32>
    %104 = vector.multi_reduction <maximumf>, %103, %cst_58 [1] : vector<8x8xf32> to vector<8xf32>
    %105 = vector.shape_cast %104 : vector<8xf32> to vector<8x1xf32>
    %106 = vector.broadcast %105 : vector<8x1xf32> to vector<8x8xf32>
    %107 = arith.subf %103, %106 : vector<8x8xf32>
    %108 = math.exp %107 : vector<8x8xf32>
    %cst_59 = arith.constant dense<0.000000e+00> : vector<8xf32>
    %109 = vector.multi_reduction <add>, %108, %cst_59 [1] : vector<8x8xf32> to vector<8xf32>
    %110 = vector.shape_cast %109 : vector<8xf32> to vector<8x1xf32>
    %111 = vector.broadcast %110 : vector<8x1xf32> to vector<8x8xf32>
    %112 = arith.divf %108, %111 : vector<8x8xf32>
    %cst_60 = arith.constant dense<0.000000e+00> : vector<8x8xf32>
    %113 = tpu.matmul %112, %100, %cst_60 {dimension_numbers = #tpu.dot_dimension_numbers<[1], [1], [0], [0], [0, 0, 1, 0], [], []>} : vector<8x8xf32>, vector<8x8xf32>, vector<8x8xf32> -> vector<8x8xf32>
    %114 = arith.truncf %113 : vector<8x8xf32> to vector<8x8xbf16>
    %c3_61 = arith.constant 3 : index
    %c24 = arith.constant 24 : index
    %c0_62 = arith.constant 0 : index
    %115 = vector.load %arg6[%c3_61, %c24, %c0_62] : memref<4x32x32xbf16, #tpu.memory_space<vmem>>, vector<1x8x32xbf16>
    %116 = vector.shape_cast %115 : vector<1x8x32xbf16> to vector<8x32xbf16>
    %cst_63 = arith.constant dense<0.000000e+00> : vector<8x32xf32>
    %117 = tpu.matmul %114, %116, %cst_63 {dimension_numbers = #tpu.dot_dimension_numbers<[1], [0], [0], [1], [0, 0, 1, 1], [], []>} : vector<8x8xbf16>, vector<8x32xbf16>, vector<8x32xf32> -> vector<8x32xf32>
    %118 = arith.addf %97, %117 : vector<8x32xf32>
    %119 = arith.addf %11, %118 : vector<8x32xf32>
    %c0_64 = arith.constant 0 : index
    %c0_65 = arith.constant 0 : index
    %120 = vector.load %arg8[%c0_64, %c0_65] : memref<1x32xf32, #tpu.memory_space<vmem>>, vector<1x32xf32>
    %121 = vector.broadcast %120 : vector<1x32xf32> to vector<8x32xf32>
    %122 = arith.addf %119, %121 : vector<8x32xf32>
    %c0_66 = arith.constant 0 : index
    %c0_67 = arith.constant 0 : index
    %c0_68 = arith.constant 0 : index
    %123 = vector.load %arg13[%c0_66, %c0_67, %c0_68] : memref<3x1x32xf32, #tpu.memory_space<vmem>>, vector<1x1x32xf32>
    %124 = vector.shape_cast %123 : vector<1x1x32xf32> to vector<1x32xf32>
    %c0_69 = arith.constant 0 : index
    %c0_70 = arith.constant 0 : index
    %c0_71 = arith.constant 0 : index
    %125 = vector.load %arg14[%c0_69, %c0_70, %c0_71] : memref<3x1x32xf32, #tpu.memory_space<vmem>>, vector<1x1x32xf32>
    %126 = vector.shape_cast %125 : vector<1x1x32xf32> to vector<1x32xf32>
    %cst_72 = arith.constant dense<0.000000e+00> : vector<8xf32>
    %127 = vector.multi_reduction <add>, %122, %cst_72 [1] : vector<8x32xf32> to vector<8xf32>
    %128 = vector.shape_cast %127 : vector<8xf32> to vector<8x1xf32>
    %cst_73 = arith.constant 3.200000e+01 : f32
    %129 = vector.broadcast %cst_73 : f32 to vector<8x1xf32>
    %130 = arith.divf %128, %129 : vector<8x1xf32>
    %131 = vector.broadcast %130 : vector<8x1xf32> to vector<8x32xf32>
    %132 = arith.subf %122, %131 : vector<8x32xf32>
    %133 = arith.mulf %132, %132 : vector<8x32xf32>
    %cst_74 = arith.constant dense<0.000000e+00> : vector<8xf32>
    %134 = vector.multi_reduction <add>, %133, %cst_74 [1] : vector<8x32xf32> to vector<8xf32>
    %135 = vector.shape_cast %134 : vector<8xf32> to vector<8x1xf32>
    %cst_75 = arith.constant 3.200000e+01 : f32
    %136 = vector.broadcast %cst_75 : f32 to vector<8x1xf32>
    %137 = arith.divf %135, %136 : vector<8x1xf32>
    %138 = vector.broadcast %130 : vector<8x1xf32> to vector<8x32xf32>
    %139 = arith.subf %122, %138 : vector<8x32xf32>
    %cst_76 = arith.constant 9.99999974E-6 : f32
    %140 = vector.broadcast %cst_76 : f32 to vector<8x1xf32>
    %141 = arith.addf %137, %140 : vector<8x1xf32>
    %142 = math.rsqrt %141 : vector<8x1xf32>
    %143 = vector.broadcast %142 : vector<8x1xf32> to vector<8x32xf32>
    %144 = arith.mulf %139, %143 : vector<8x32xf32>
    %145 = vector.broadcast %124 : vector<1x32xf32> to vector<8x32xf32>
    %146 = arith.mulf %144, %145 : vector<8x32xf32>
    %147 = vector.broadcast %126 : vector<1x32xf32> to vector<8x32xf32>
    %148 = arith.addf %146, %147 : vector<8x32xf32>
    %149 = arith.truncf %148 : vector<8x32xf32> to vector<8x32xbf16>
    %c0_77 = arith.constant 0 : index
    %c0_78 = arith.constant 0 : index
    %150 = vector.load %arg9[%c0_77, %c0_78] : memref<32x64xbf16, #tpu.memory_space<vmem>>, vector<32x64xbf16>
    %c0_79 = arith.constant 0 : index
    %c0_80 = arith.constant 0 : index
    %151 = vector.load %arg10[%c0_79, %c0_80] : memref<1x64xf32, #tpu.memory_space<vmem>>, vector<1x64xf32>
    %c0_81 = arith.constant 0 : index
    %c0_82 = arith.constant 0 : index
    %152 = vector.load %arg11[%c0_81, %c0_82] : memref<64x32xbf16, #tpu.memory_space<vmem>>, vector<64x32xbf16>
    %c0_83 = arith.constant 0 : index
    %c0_84 = arith.constant 0 : index
    %153 = vector.load %arg12[%c0_83, %c0_84] : memref<1x32xf32, #tpu.memory_space<vmem>>, vector<1x32xf32>
    %cst_85 = arith.constant dense<0.000000e+00> : vector<8x64xf32>
    %154 = tpu.matmul %149, %150, %cst_85 {dimension_numbers = #tpu.dot_dimension_numbers<[1], [0], [0], [1], [0, 0, 1, 1], [], []>} : vector<8x32xbf16>, vector<32x64xbf16>, vector<8x64xf32> -> vector<8x64xf32>
    %155 = vector.broadcast %151 : vector<1x64xf32> to vector<8x64xf32>
    %156 = arith.addf %154, %155 : vector<8x64xf32>
    %157 = arith.mulf %156, %156 : vector<8x64xf32>
    %158 = arith.mulf %156, %157 : vector<8x64xf32>
    %cst_86 = arith.constant 4.471500e-02 : f32
    %159 = vector.broadcast %cst_86 : f32 to vector<8x64xf32>
    %160 = arith.mulf %159, %158 : vector<8x64xf32>
    %161 = arith.addf %156, %160 : vector<8x64xf32>
    %cst_87 = arith.constant 0.797884583 : f32
    %162 = vector.broadcast %cst_87 : f32 to vector<8x64xf32>
    %163 = arith.mulf %162, %161 : vector<8x64xf32>
    %164 = math.tanh %163 : vector<8x64xf32>
    %cst_88 = arith.constant 1.000000e+00 : f32
    %165 = vector.broadcast %cst_88 : f32 to vector<8x64xf32>
    %166 = arith.addf %165, %164 : vector<8x64xf32>
    %cst_89 = arith.constant 5.000000e-01 : f32
    %167 = vector.broadcast %cst_89 : f32 to vector<8x64xf32>
    %168 = arith.mulf %167, %166 : vector<8x64xf32>
    %169 = arith.mulf %156, %168 : vector<8x64xf32>
    %170 = arith.truncf %169 : vector<8x64xf32> to vector<8x64xbf16>
    %cst_90 = arith.constant dense<0.000000e+00> : vector<8x32xf32>
    %171 = tpu.matmul %170, %152, %cst_90 {dimension_numbers = #tpu.dot_dimension_numbers<[1], [0], [0], [1], [0, 0, 1, 1], [], []>} : vector<8x64xbf16>, vector<64x32xbf16>, vector<8x32xf32> -> vector<8x32xf32>
    %172 = vector.broadcast %153 : vector<1x32xf32> to vector<8x32xf32>
    %173 = arith.addf %171, %172 : vector<8x32xf32>
    %174 = arith.addf %148, %173 : vector<8x32xf32>
    %c1_91 = arith.constant 1 : index
    %c0_92 = arith.constant 0 : index
    %c0_93 = arith.constant 0 : index
    %175 = vector.load %arg13[%c1_91, %c0_92, %c0_93] : memref<3x1x32xf32, #tpu.memory_space<vmem>>, vector<1x1x32xf32>
    %176 = vector.shape_cast %175 : vector<1x1x32xf32> to vector<1x32xf32>
    %c1_94 = arith.constant 1 : index
    %c0_95 = arith.constant 0 : index
    %c0_96 = arith.constant 0 : index
    %177 = vector.load %arg14[%c1_94, %c0_95, %c0_96] : memref<3x1x32xf32, #tpu.memory_space<vmem>>, vector<1x1x32xf32>
    %178 = vector.shape_cast %177 : vector<1x1x32xf32> to vector<1x32xf32>
    %cst_97 = arith.constant dense<0.000000e+00> : vector<8xf32>
    %179 = vector.multi_reduction <add>, %174, %cst_97 [1] : vector<8x32xf32> to vector<8xf32>
    %180 = vector.shape_cast %179 : vector<8xf32> to vector<8x1xf32>
    %cst_98 = arith.constant 3.200000e+01 : f32
    %181 = vector.broadcast %cst_98 : f32 to vector<8x1xf32>
    %182 = arith.divf %180, %181 : vector<8x1xf32>
    %183 = vector.broadcast %182 : vector<8x1xf32> to vector<8x32xf32>
    %184 = arith.subf %174, %183 : vector<8x32xf32>
    %185 = arith.mulf %184, %184 : vector<8x32xf32>
    %cst_99 = arith.constant dense<0.000000e+00> : vector<8xf32>
    %186 = vector.multi_reduction <add>, %185, %cst_99 [1] : vector<8x32xf32> to vector<8xf32>
    %187 = vector.shape_cast %186 : vector<8xf32> to vector<8x1xf32>
    %cst_100 = arith.constant 3.200000e+01 : f32
    %188 = vector.broadcast %cst_100 : f32 to vector<8x1xf32>
    %189 = arith.divf %187, %188 : vector<8x1xf32>
    %190 = vector.broadcast %182 : vector<8x1xf32> to vector<8x32xf32>
    %191 = arith.subf %174, %190 : vector<8x32xf32>
    %cst_101 = arith.constant 9.99999974E-6 : f32
    %192 = vector.broadcast %cst_101 : f32 to vector<8x1xf32>
    %193 = arith.addf %189, %192 : vector<8x1xf32>
    %194 = math.rsqrt %193 : vector<8x1xf32>
    %195 = vector.broadcast %194 : vector<8x1xf32> to vector<8x32xf32>
    %196 = arith.mulf %191, %195 : vector<8x32xf32>
    %197 = vector.broadcast %176 : vector<1x32xf32> to vector<8x32xf32>
    %198 = arith.mulf %196, %197 : vector<8x32xf32>
    %199 = vector.broadcast %178 : vector<1x32xf32> to vector<8x32xf32>
    %200 = arith.addf %198, %199 : vector<8x32xf32>
    %c2_102 = arith.constant 2 : index
    %c0_103 = arith.constant 0 : index
    %c0_104 = arith.constant 0 : index
    %201 = vector.load %arg13[%c2_102, %c0_103, %c0_104] : memref<3x1x32xf32, #tpu.memory_space<vmem>>, vector<1x1x32xf32>
    %202 = vector.shape_cast %201 : vector<1x1x32xf32> to vector<1x32xf32>
    %c2_105 = arith.constant 2 : index
    %c0_106 = arith.constant 0 : index
    %c0_107 = arith.constant 0 : index
    %203 = vector.load %arg14[%c2_105, %c0_106, %c0_107] : memref<3x1x32xf32, #tpu.memory_space<vmem>>, vector<1x1x32xf32>
    %204 = vector.shape_cast %203 : vector<1x1x32xf32> to vector<1x32xf32>
    %cst_108 = arith.constant dense<0.000000e+00> : vector<8xf32>
    %205 = vector.multi_reduction <add>, %200, %cst_108 [1] : vector<8x32xf32> to vector<8xf32>
    %206 = vector.shape_cast %205 : vector<8xf32> to vector<8x1xf32>
    %cst_109 = arith.constant 3.200000e+01 : f32
    %207 = vector.broadcast %cst_109 : f32 to vector<8x1xf32>
    %208 = arith.divf %206, %207 : vector<8x1xf32>
    %209 = vector.broadcast %208 : vector<8x1xf32> to vector<8x32xf32>
    %210 = arith.subf %200, %209 : vector<8x32xf32>
    %211 = arith.mulf %210, %210 : vector<8x32xf32>
    %cst_110 = arith.constant dense<0.000000e+00> : vector<8xf32>
    %212 = vector.multi_reduction <add>, %211, %cst_110 [1] : vector<8x32xf32> to vector<8xf32>
    %213 = vector.shape_cast %212 : vector<8xf32> to vector<8x1xf32>
    %cst_111 = arith.constant 3.200000e+01 : f32
    %214 = vector.broadcast %cst_111 : f32 to vector<8x1xf32>
    %215 = arith.divf %213, %214 : vector<8x1xf32>
    %216 = vector.broadcast %208 : vector<8x1xf32> to vector<8x32xf32>
    %217 = arith.subf %200, %216 : vector<8x32xf32>
    %cst_112 = arith.constant 9.99999974E-6 : f32
    %218 = vector.broadcast %cst_112 : f32 to vector<8x1xf32>
    %219 = arith.addf %215, %218 : vector<8x1xf32>
    %220 = math.rsqrt %219 : vector<8x1xf32>
    %221 = vector.broadcast %220 : vector<8x1xf32> to vector<8x32xf32>
    %222 = arith.mulf %217, %221 : vector<8x32xf32>
    %223 = vector.broadcast %202 : vector<1x32xf32> to vector<8x32xf32>
    %224 = arith.mulf %222, %223 : vector<8x32xf32>
    %225 = vector.broadcast %204 : vector<1x32xf32> to vector<8x32xf32>
    %226 = arith.addf %224, %225 : vector<8x32xf32>
    %227 = arith.truncf %226 : vector<8x32xf32> to vector<8x32xbf16>
    %c0_113 = arith.constant 0 : index
    %c0_114 = arith.constant 0 : index
    %c0_115 = arith.constant 0 : index
    %228 = vector.load %arg15[%c0_113, %c0_114, %c0_115] : memref<1x8x32xbf16, #tpu.memory_space<vmem>>, vector<1x8x32xbf16>
    %229 = vector.shape_cast %228 : vector<1x8x32xbf16> to vector<8x32xbf16>
    %230 = vector.shape_cast %227 : vector<8x32xbf16> to vector<1x8x32xbf16>
    tpu.vector_store %arg15[%c0_113, %c0_114, %c0_115], %230 {strides = array<i32>} : memref<1x8x32xbf16, #tpu.memory_space<vmem>>, vector<1x8x32xbf16>,
    return
  }
  func.func @transform_0(%arg0: i32) -> (i32, i32, i32) {
    %c0_i32 = arith.constant 0 : i32
    %c0_i32_0 = arith.constant 0 : i32
    %c0_i32_1 = arith.constant 0 : i32
    return %arg0, %c0_i32, %c0_i32_0 : i32, i32, i32
  }
  func.func @transform_1(%arg0: i32) -> (i32, i32, i32) {
    %c0_i32 = arith.constant 0 : i32
    %c0_i32_0 = arith.constant 0 : i32
    %c0_i32_1 = arith.constant 0 : i32
    return %arg0, %c0_i32, %c0_i32_0 : i32, i32, i32
  }
  func.func @transform_2(%arg0: i32) -> (i32, i32) {
    %c0_i32 = arith.constant 0 : i32
    %c0_i32_0 = arith.constant 0 : i32
    %c0_i32_1 = arith.constant 0 : i32
    return %c0_i32, %c0_i32_0 : i32, i32
  }
  func.func @transform_3(%arg0: i32) -> (i32, i32) {
    %c0_i32 = arith.constant 0 : i32
    %c0_i32_0 = arith.constant 0 : i32
    %c0_i32_1 = arith.constant 0 : i32
    return %c0_i32, %c0_i32_0 : i32, i32
  }
  func.func @transform_4(%arg0: i32) -> (i32, i32) {
    %c0_i32 = arith.constant 0 : i32
    %c0_i32_0 = arith.constant 0 : i32
    %c0_i32_1 = arith.constant 0 : i32
    return %c0_i32, %c0_i32_0 : i32, i32
  }
  func.func @transform_5(%arg0: i32) -> (i32, i32, i32) {
    %c0_i32 = arith.constant 0 : i32
    %c0_i32_0 = arith.constant 0 : i32
    %c0_i32_1 = arith.constant 0 : i32
    %c0_i32_2 = arith.constant 0 : i32
    return %c0_i32, %c0_i32_0, %c0_i32_1 : i32, i32, i32
  }
  func.func @transform_6(%arg0: i32) -> (i32, i32, i32) {
    %c0_i32 = arith.constant 0 : i32
    %c0_i32_0 = arith.constant 0 : i32
    %c0_i32_1 = arith.constant 0 : i32
    %c0_i32_2 = arith.constant 0 : i32
    return %c0_i32, %c0_i32_0, %c0_i32_1 : i32, i32, i32
  }
  func.func @transform_7(%arg0: i32) -> (i32, i32) {
    %c0_i32 = arith.constant 0 : i32
    %c0_i32_0 = arith.constant 0 : i32
    %c0_i32_1 = arith.constant 0 : i32
    return %c0_i32, %c0_i32_0 : i32, i32
  }
  func.func @transform_8(%arg0: i32) -> (i32, i32) {
    %c0_i32 = arith.constant 0 : i32
    %c0_i32_0 = arith.constant 0 : i32
    %c0_i32_1 = arith.constant 0 : i32
    return %c0_i32, %c0_i32_0 : i32, i32
  }
  func.func @transform_9(%arg0: i32) -> (i32, i32) {
    %c0_i32 = arith.constant 0 : i32
    %c0_i32_0 = arith.constant 0 : i32
    %c0_i32_1 = arith.constant 0 : i32
    return %c0_i32, %c0_i32_0 : i32, i32
  }
  func.func @transform_10(%arg0: i32) -> (i32, i32) {
    %c0_i32 = arith.constant 0 : i32
    %c0_i32_0 = arith.constant 0 : i32
    %c0_i32_1 = arith.constant 0 : i32
    return %c0_i32, %c0_i32_0 : i32, i32
  }
  func.func @transform_11(%arg0: i32) -> (i32, i32) {
    %c0_i32 = arith.constant 0 : i32
    %c0_i32_0 = arith.constant 0 : i32
    %c0_i32_1 = arith.constant 0 : i32
    return %c0_i32, %c0_i32_0 : i32, i32
  }
  func.func @transform_12(%arg0: i32) -> (i32, i32, i32) {
    %c0_i32 = arith.constant 0 : i32
    %c0_i32_0 = arith.constant 0 : i32
    %c0_i32_1 = arith.constant 0 : i32
    %c0_i32_2 = arith.constant 0 : i32
    return %c0_i32, %c0_i32_0, %c0_i32_1 : i32, i32, i32
  }
  func.func @transform_13(%arg0: i32) -> (i32, i32, i32) {
    %c0_i32 = arith.constant 0 : i32
    %c0_i32_0 = arith.constant 0 : i32
    %c0_i32_1 = arith.constant 0 : i32
    %c0_i32_2 = arith.constant 0 : i32
    return %c0_i32, %c0_i32_0, %c0_i32_1 : i32, i32, i32
  }
  func.func @transform_14(%arg0: i32) -> (i32, i32, i32) {
    %c0_i32 = arith.constant 0 : i32
    %c0_i32_0 = arith.constant 0 : i32
    %c0_i32_1 = arith.constant 0 : i32
    return %arg0, %c0_i32, %c0_i32_0 : i32, i32, i32
  }
}

module attributes {stable_mosaic.version = 11 : i64} {
  func.func @_decoder_kernel(%arg0: i32, %arg1: memref<1x16x12xbf16, #tpu.memory_space<vmem>>, %arg2: memref<1x16x1xbf16, #tpu.memory_space<vmem>>, %arg3: memref<16x32xbf16, #tpu.memory_space<vmem>>, %arg4: memref<1x8x32xbf16, #tpu.memory_space<vmem>>, %arg5: memref<12x32xbf16, #tpu.memory_space<vmem>>, %arg6: memref<1x32xbf16, #tpu.memory_space<vmem>>, %arg7: memref<4x32x32xbf16, #tpu.memory_space<vmem>>, %arg8: memref<3x32x1xf32, #tpu.memory_space<vmem>>, %arg9: memref<1x32xf32, #tpu.memory_space<vmem>>, %arg10: memref<4x32x32xbf16, #tpu.memory_space<vmem>>, %arg11: memref<3x32x1xf32, #tpu.memory_space<vmem>>, %arg12: memref<1x32xf32, #tpu.memory_space<vmem>>, %arg13: memref<32x64xbf16, #tpu.memory_space<vmem>>, %arg14: memref<1x64xf32, #tpu.memory_space<vmem>>, %arg15: memref<64x32xbf16, #tpu.memory_space<vmem>>, %arg16: memref<1x32xf32, #tpu.memory_space<vmem>>, %arg17: memref<4x1x32xf32, #tpu.memory_space<vmem>>, %arg18: memref<4x1x32xf32, #tpu.memory_space<vmem>>, %arg19: memref<32x128xbf16, #tpu.memory_space<vmem>>, %arg20: memref<1x128xf32, #tpu.memory_space<vmem>>, %arg21: memref<1x8x128xf32, #tpu.memory_space<vmem>>) attributes {dimension_semantics = [#tpu.dimension_semantics<parallel>], iteration_bounds = array<i64: 2>, scalar_prefetch = 0 : i64, scratch_operands = 0 : i64, tpu.core_type = #tpu.core_type<tc>, window_params = [{transform_indices = @transform_0, window_bounds = array<i64: 1, 16, 12>}, {transform_indices = @transform_1, window_bounds = array<i64: 1, 16, 1>}, {pipeline_mode = #tpu.pipeline_mode<synchronous>, transform_indices = @transform_2, window_bounds = array<i64: 16, 32>}, {transform_indices = @transform_3, window_bounds = array<i64: 1, 8, 32>}, {pipeline_mode = #tpu.pipeline_mode<synchronous>, transform_indices = @transform_4, window_bounds = array<i64: 12, 32>}, {pipeline_mode = #tpu.pipeline_mode<synchronous>, transform_indices = @transform_5, window_bounds = array<i64: 1, 32>}, {pipeline_mode = #tpu.pipeline_mode<synchronous>, transform_indices = @transform_6, window_bounds = array<i64: 4, 32, 32>}, {pipeline_mode = #tpu.pipeline_mode<synchronous>, transform_indices = @transform_7, window_bounds = array<i64: 3, 32, 1>}, {pipeline_mode = #tpu.pipeline_mode<synchronous>, transform_indices = @transform_8, window_bounds = array<i64: 1, 32>}, {pipeline_mode = #tpu.pipeline_mode<synchronous>, transform_indices = @transform_9, window_bounds = array<i64: 4, 32, 32>}, {pipeline_mode = #tpu.pipeline_mode<synchronous>, transform_indices = @transform_10, window_bounds = array<i64: 3, 32, 1>}, {pipeline_mode = #tpu.pipeline_mode<synchronous>, transform_indices = @transform_11, window_bounds = array<i64: 1, 32>}, {pipeline_mode = #tpu.pipeline_mode<synchronous>, transform_indices = @transform_12, window_bounds = array<i64: 32, 64>}, {pipeline_mode = #tpu.pipeline_mode<synchronous>, transform_indices = @transform_13, window_bounds = array<i64: 1, 64>}, {pipeline_mode = #tpu.pipeline_mode<synchronous>, transform_indices = @transform_14, window_bounds = array<i64: 64, 32>}, {pipeline_mode = #tpu.pipeline_mode<synchronous>, transform_indices = @transform_15, window_bounds = array<i64: 1, 32>}, {pipeline_mode = #tpu.pipeline_mode<synchronous>, transform_indices = @transform_16, window_bounds = array<i64: 4, 1, 32>}, {pipeline_mode = #tpu.pipeline_mode<synchronous>, transform_indices = @transform_17, window_bounds = array<i64: 4, 1, 32>}, {pipeline_mode = #tpu.pipeline_mode<synchronous>, transform_indices = @transform_18, window_bounds = array<i64: 32, 128>}, {pipeline_mode = #tpu.pipeline_mode<synchronous>, transform_indices = @transform_19, window_bounds = array<i64: 1, 128>}, {transform_indices = @transform_20, window_bounds = array<i64: 1, 8, 128>}]} {
    %c0 = arith.constant 0 : index
    %c0_0 = arith.constant 0 : index
    %c0_1 = arith.constant 0 : index
    %0 = vector.load %arg1[%c0, %c0_0, %c0_1] : memref<1x16x12xbf16, #tpu.memory_space<vmem>>, vector<1x16x12xbf16>
    %1 = vector.shape_cast %0 : vector<1x16x12xbf16> to vector<16x12xbf16>
    %c0_2 = arith.constant 0 : index
    %c0_3 = arith.constant 0 : index
    %c0_4 = arith.constant 0 : index
    %2 = vector.load %arg2[%c0_2, %c0_3, %c0_4] : memref<1x16x1xbf16, #tpu.memory_space<vmem>>, vector<1x16x1xbf16>
    %3 = vector.shape_cast %2 : vector<1x16x1xbf16> to vector<16x1xbf16>
    %c0_5 = arith.constant 0 : index
    %c0_6 = arith.constant 0 : index
    %4 = vector.load %arg3[%c0_5, %c0_6] : memref<16x32xbf16, #tpu.memory_space<vmem>>, vector<16x32xbf16>
    %c0_7 = arith.constant 0 : index
    %c0_8 = arith.constant 0 : index
    %5 = vector.load %arg5[%c0_7, %c0_8] : memref<12x32xbf16, #tpu.memory_space<vmem>>, vector<12x32xbf16>
    %c0_9 = arith.constant 0 : index
    %c0_10 = arith.constant 0 : index
    %6 = vector.load %arg6[%c0_9, %c0_10] : memref<1x32xbf16, #tpu.memory_space<vmem>>, vector<1x32xbf16>
    %cst = arith.constant dense<0.000000e+00> : vector<16x32xf32>
    %7 = tpu.matmul %1, %5, %cst {dimension_numbers = #tpu.dot_dimension_numbers<[1], [0], [0], [1], [0, 0, 1, 1], [], []>} : vector<16x12xbf16>, vector<12x32xbf16>, vector<16x32xf32> -> vector<16x32xf32>
    %cst_11 = arith.constant dense<0.000000e+00> : vector<16x32xf32>
    %8 = tpu.matmul %3, %6, %cst_11 {dimension_numbers = #tpu.dot_dimension_numbers<[1], [0], [0], [1], [0, 0, 1, 1], [], []>} : vector<16x1xbf16>, vector<1x32xbf16>, vector<16x32xf32> -> vector<16x32xf32>
    %9 = arith.addf %7, %8 : vector<16x32xf32>
    %10 = arith.extf %4 : vector<16x32xbf16> to vector<16x32xf32>
    %11 = arith.addf %9, %10 : vector<16x32xf32>
    %12 = arith.truncf %11 : vector<16x32xf32> to vector<16x32xbf16>
    %c0_12 = arith.constant 0 : index
    %c0_13 = arith.constant 0 : index
    %c0_14 = arith.constant 0 : index
    %13 = vector.load %arg4[%c0_12, %c0_13, %c0_14] : memref<1x8x32xbf16, #tpu.memory_space<vmem>>, vector<1x8x32xbf16>
    %14 = vector.shape_cast %13 : vector<1x8x32xbf16> to vector<8x32xbf16>
    %c0_15 = arith.constant 0 : index
    %c0_16 = arith.constant 0 : index
    %c0_17 = arith.constant 0 : index
    %15 = vector.load %arg7[%c0_15, %c0_16, %c0_17] : memref<4x32x32xbf16, #tpu.memory_space<vmem>>, vector<1x32x32xbf16>
    %16 = vector.shape_cast %15 : vector<1x32x32xbf16> to vector<32x32xbf16>
    %cst_18 = arith.constant dense<0.000000e+00> : vector<32x16xf32>
    %17 = tpu.matmul %16, %12, %cst_18 {dimension_numbers = #tpu.dot_dimension_numbers<[1], [1], [0], [0], [0, 0, 1, 0], [], []>} : vector<32x32xbf16>, vector<16x32xbf16>, vector<32x16xf32> -> vector<32x16xf32>
    %c0_19 = arith.constant 0 : index
    %c0_20 = arith.constant 0 : index
    %c0_21 = arith.constant 0 : index
    %18 = vector.load %arg8[%c0_19, %c0_20, %c0_21] : memref<3x32x1xf32, #tpu.memory_space<vmem>>, vector<1x32x1xf32>
    %19 = vector.shape_cast %18 : vector<1x32x1xf32> to vector<32x1xf32>
    %20 = vector.broadcast %19 : vector<32x1xf32> to vector<32x16xf32>
    %21 = arith.addf %17, %20 : vector<32x16xf32>
    %c1 = arith.constant 1 : index
    %c0_22 = arith.constant 0 : index
    %c0_23 = arith.constant 0 : index
    %22 = vector.load %arg7[%c1, %c0_22, %c0_23] : memref<4x32x32xbf16, #tpu.memory_space<vmem>>, vector<1x32x32xbf16>
    %23 = vector.shape_cast %22 : vector<1x32x32xbf16> to vector<32x32xbf16>
    %cst_24 = arith.constant dense<0.000000e+00> : vector<32x16xf32>
    %24 = tpu.matmul %23, %12, %cst_24 {dimension_numbers = #tpu.dot_dimension_numbers<[1], [1], [0], [0], [0, 0, 1, 0], [], []>} : vector<32x32xbf16>, vector<16x32xbf16>, vector<32x16xf32> -> vector<32x16xf32>
    %c1_25 = arith.constant 1 : index
    %c0_26 = arith.constant 0 : index
    %c0_27 = arith.constant 0 : index
    %25 = vector.load %arg8[%c1_25, %c0_26, %c0_27] : memref<3x32x1xf32, #tpu.memory_space<vmem>>, vector<1x32x1xf32>
    %26 = vector.shape_cast %25 : vector<1x32x1xf32> to vector<32x1xf32>
    %27 = vector.broadcast %26 : vector<32x1xf32> to vector<32x16xf32>
    %28 = arith.addf %24, %27 : vector<32x16xf32>
    %c2 = arith.constant 2 : index
    %c0_28 = arith.constant 0 : index
    %c0_29 = arith.constant 0 : index
    %29 = vector.load %arg7[%c2, %c0_28, %c0_29] : memref<4x32x32xbf16, #tpu.memory_space<vmem>>, vector<1x32x32xbf16>
    %30 = vector.shape_cast %29 : vector<1x32x32xbf16> to vector<32x32xbf16>
    %cst_30 = arith.constant dense<0.000000e+00> : vector<32x16xf32>
    %31 = tpu.matmul %30, %12, %cst_30 {dimension_numbers = #tpu.dot_dimension_numbers<[1], [1], [0], [0], [0, 0, 1, 0], [], []>} : vector<32x32xbf16>, vector<16x32xbf16>, vector<32x16xf32> -> vector<32x16xf32>
    %c2_31 = arith.constant 2 : index
    %c0_32 = arith.constant 0 : index
    %c0_33 = arith.constant 0 : index
    %32 = vector.load %arg8[%c2_31, %c0_32, %c0_33] : memref<3x32x1xf32, #tpu.memory_space<vmem>>, vector<1x32x1xf32>
    %33 = vector.shape_cast %32 : vector<1x32x1xf32> to vector<32x1xf32>
    %34 = vector.broadcast %33 : vector<32x1xf32> to vector<32x16xf32>
    %35 = arith.addf %31, %34 : vector<32x16xf32>
    %cst_34 = arith.constant 0.000000e+00 : f32
    %36 = vector.broadcast %cst_34 : f32 to vector<16x32xf32>
    %37 = vector.extract_strided_slice %21 {offsets = [0, 0], sizes = [8, 16], strides = [1, 1]} : vector<32x16xf32> to vector<8x16xf32>
    %38 = vector.extract_strided_slice %28 {offsets = [0, 0], sizes = [8, 16], strides = [1, 1]} : vector<32x16xf32> to vector<8x16xf32>
    %39 = vector.extract_strided_slice %35 {offsets = [0, 0], sizes = [8, 16], strides = [1, 1]} : vector<32x16xf32> to vector<8x16xf32>
    %cst_35 = arith.constant dense<0.000000e+00> : vector<16x16xf32>
    %40 = tpu.matmul %37, %38, %cst_35 {dimension_numbers = #tpu.dot_dimension_numbers<[0], [0], [1], [1], [0, 1, 1, 1], [], []>} : vector<8x16xf32>, vector<8x16xf32>, vector<16x16xf32> -> vector<16x16xf32>
    %cst_36 = arith.constant 0.353553385 : f32
    %41 = vector.broadcast %cst_36 : f32 to vector<16x16xf32>
    %42 = arith.mulf %40, %41 : vector<16x16xf32>
    %43 = tpu.iota {dimensions = array<i32: 0>} : vector<16x16xi32>
    %44 = tpu.iota {dimensions = array<i32: 1>} : vector<16x16xi32>
    %45 = arith.cmpi sgt, %44, %43 : vector<16x16xi32>
    %cst_37 = arith.constant -1.000000e+30 : f32
    %46 = vector.broadcast %cst_37 : f32 to vector<16x16xf32>
    %47 = arith.select %45, %46, %42 : vector<16x16xi1>, vector<16x16xf32>
    %cst_38 = arith.constant dense<0xFF800000> : vector<16xf32>
    %48 = vector.multi_reduction <maximumf>, %47, %cst_38 [1] : vector<16x16xf32> to vector<16xf32>
    %49 = vector.shape_cast %48 : vector<16xf32> to vector<16x1xf32>
    %50 = vector.broadcast %49 : vector<16x1xf32> to vector<16x16xf32>
    %51 = arith.subf %47, %50 : vector<16x16xf32>
    %52 = math.exp %51 : vector<16x16xf32>
    %cst_39 = arith.constant dense<0.000000e+00> : vector<16xf32>
    %53 = vector.multi_reduction <add>, %52, %cst_39 [1] : vector<16x16xf32> to vector<16xf32>
    %54 = vector.shape_cast %53 : vector<16xf32> to vector<16x1xf32>
    %55 = vector.broadcast %54 : vector<16x1xf32> to vector<16x16xf32>
    %56 = arith.divf %52, %55 : vector<16x16xf32>
    %cst_40 = arith.constant dense<0.000000e+00> : vector<16x8xf32>
    %57 = tpu.matmul %56, %39, %cst_40 {dimension_numbers = #tpu.dot_dimension_numbers<[1], [1], [0], [0], [0, 0, 1, 0], [], []>} : vector<16x16xf32>, vector<8x16xf32>, vector<16x8xf32> -> vector<16x8xf32>
    %58 = arith.truncf %57 : vector<16x8xf32> to vector<16x8xbf16>
    %c3 = arith.constant 3 : index
    %c0_41 = arith.constant 0 : index
    %c0_42 = arith.constant 0 : index
    %59 = vector.load %arg7[%c3, %c0_41, %c0_42] : memref<4x32x32xbf16, #tpu.memory_space<vmem>>, vector<1x8x32xbf16>
    %60 = vector.shape_cast %59 : vector<1x8x32xbf16> to vector<8x32xbf16>
    %cst_43 = arith.constant dense<0.000000e+00> : vector<16x32xf32>
    %61 = tpu.matmul %58, %60, %cst_43 {dimension_numbers = #tpu.dot_dimension_numbers<[1], [0], [0], [1], [0, 0, 1, 1], [], []>} : vector<16x8xbf16>, vector<8x32xbf16>, vector<16x32xf32> -> vector<16x32xf32>
    %62 = arith.addf %36, %61 : vector<16x32xf32>
    %63 = vector.extract_strided_slice %21 {offsets = [8, 0], sizes = [8, 16], strides = [1, 1]} : vector<32x16xf32> to vector<8x16xf32>
    %64 = vector.extract_strided_slice %28 {offsets = [8, 0], sizes = [8, 16], strides = [1, 1]} : vector<32x16xf32> to vector<8x16xf32>
    %65 = vector.extract_strided_slice %35 {offsets = [8, 0], sizes = [8, 16], strides = [1, 1]} : vector<32x16xf32> to vector<8x16xf32>
    %cst_44 = arith.constant dense<0.000000e+00> : vector<16x16xf32>
    %66 = tpu.matmul %63, %64, %cst_44 {dimension_numbers = #tpu.dot_dimension_numbers<[0], [0], [1], [1], [0, 1, 1, 1], [], []>} : vector<8x16xf32>, vector<8x16xf32>, vector<16x16xf32> -> vector<16x16xf32>
    %cst_45 = arith.constant 0.353553385 : f32
    %67 = vector.broadcast %cst_45 : f32 to vector<16x16xf32>
    %68 = arith.mulf %66, %67 : vector<16x16xf32>
    %69 = tpu.iota {dimensions = array<i32: 0>} : vector<16x16xi32>
    %70 = tpu.iota {dimensions = array<i32: 1>} : vector<16x16xi32>
    %71 = arith.cmpi sgt, %70, %69 : vector<16x16xi32>
    %cst_46 = arith.constant -1.000000e+30 : f32
    %72 = vector.broadcast %cst_46 : f32 to vector<16x16xf32>
    %73 = arith.select %71, %72, %68 : vector<16x16xi1>, vector<16x16xf32>
    %cst_47 = arith.constant dense<0xFF800000> : vector<16xf32>
    %74 = vector.multi_reduction <maximumf>, %73, %cst_47 [1] : vector<16x16xf32> to vector<16xf32>
    %75 = vector.shape_cast %74 : vector<16xf32> to vector<16x1xf32>
    %76 = vector.broadcast %75 : vector<16x1xf32> to vector<16x16xf32>
    %77 = arith.subf %73, %76 : vector<16x16xf32>
    %78 = math.exp %77 : vector<16x16xf32>
    %cst_48 = arith.constant dense<0.000000e+00> : vector<16xf32>
    %79 = vector.multi_reduction <add>, %78, %cst_48 [1] : vector<16x16xf32> to vector<16xf32>
    %80 = vector.shape_cast %79 : vector<16xf32> to vector<16x1xf32>
    %81 = vector.broadcast %80 : vector<16x1xf32> to vector<16x16xf32>
    %82 = arith.divf %78, %81 : vector<16x16xf32>
    %cst_49 = arith.constant dense<0.000000e+00> : vector<16x8xf32>
    %83 = tpu.matmul %82, %65, %cst_49 {dimension_numbers = #tpu.dot_dimension_numbers<[1], [1], [0], [0], [0, 0, 1, 0], [], []>} : vector<16x16xf32>, vector<8x16xf32>, vector<16x8xf32> -> vector<16x8xf32>
    %84 = arith.truncf %83 : vector<16x8xf32> to vector<16x8xbf16>
    %c3_50 = arith.constant 3 : index
    %c8 = arith.constant 8 : index
    %c0_51 = arith.constant 0 : index
    %85 = vector.load %arg7[%c3_50, %c8, %c0_51] : memref<4x32x32xbf16, #tpu.memory_space<vmem>>, vector<1x8x32xbf16>
    %86 = vector.shape_cast %85 : vector<1x8x32xbf16> to vector<8x32xbf16>
    %cst_52 = arith.constant dense<0.000000e+00> : vector<16x32xf32>
    %87 = tpu.matmul %84, %86, %cst_52 {dimension_numbers = #tpu.dot_dimension_numbers<[1], [0], [0], [1], [0, 0, 1, 1], [], []>} : vector<16x8xbf16>, vector<8x32xbf16>, vector<16x32xf32> -> vector<16x32xf32>
    %88 = arith.addf %62, %87 : vector<16x32xf32>
    %89 = vector.extract_strided_slice %21 {offsets = [16, 0], sizes = [8, 16], strides = [1, 1]} : vector<32x16xf32> to vector<8x16xf32>
    %90 = vector.extract_strided_slice %28 {offsets = [16, 0], sizes = [8, 16], strides = [1, 1]} : vector<32x16xf32> to vector<8x16xf32>
    %91 = vector.extract_strided_slice %35 {offsets = [16, 0], sizes = [8, 16], strides = [1, 1]} : vector<32x16xf32> to vector<8x16xf32>
    %cst_53 = arith.constant dense<0.000000e+00> : vector<16x16xf32>
    %92 = tpu.matmul %89, %90, %cst_53 {dimension_numbers = #tpu.dot_dimension_numbers<[0], [0], [1], [1], [0, 1, 1, 1], [], []>} : vector<8x16xf32>, vector<8x16xf32>, vector<16x16xf32> -> vector<16x16xf32>
    %cst_54 = arith.constant 0.353553385 : f32
    %93 = vector.broadcast %cst_54 : f32 to vector<16x16xf32>
    %94 = arith.mulf %92, %93 : vector<16x16xf32>
    %95 = tpu.iota {dimensions = array<i32: 0>} : vector<16x16xi32>
    %96 = tpu.iota {dimensions = array<i32: 1>} : vector<16x16xi32>
    %97 = arith.cmpi sgt, %96, %95 : vector<16x16xi32>
    %cst_55 = arith.constant -1.000000e+30 : f32
    %98 = vector.broadcast %cst_55 : f32 to vector<16x16xf32>
    %99 = arith.select %97, %98, %94 : vector<16x16xi1>, vector<16x16xf32>
    %cst_56 = arith.constant dense<0xFF800000> : vector<16xf32>
    %100 = vector.multi_reduction <maximumf>, %99, %cst_56 [1] : vector<16x16xf32> to vector<16xf32>
    %101 = vector.shape_cast %100 : vector<16xf32> to vector<16x1xf32>
    %102 = vector.broadcast %101 : vector<16x1xf32> to vector<16x16xf32>
    %103 = arith.subf %99, %102 : vector<16x16xf32>
    %104 = math.exp %103 : vector<16x16xf32>
    %cst_57 = arith.constant dense<0.000000e+00> : vector<16xf32>
    %105 = vector.multi_reduction <add>, %104, %cst_57 [1] : vector<16x16xf32> to vector<16xf32>
    %106 = vector.shape_cast %105 : vector<16xf32> to vector<16x1xf32>
    %107 = vector.broadcast %106 : vector<16x1xf32> to vector<16x16xf32>
    %108 = arith.divf %104, %107 : vector<16x16xf32>
    %cst_58 = arith.constant dense<0.000000e+00> : vector<16x8xf32>
    %109 = tpu.matmul %108, %91, %cst_58 {dimension_numbers = #tpu.dot_dimension_numbers<[1], [1], [0], [0], [0, 0, 1, 0], [], []>} : vector<16x16xf32>, vector<8x16xf32>, vector<16x8xf32> -> vector<16x8xf32>
    %110 = arith.truncf %109 : vector<16x8xf32> to vector<16x8xbf16>
    %c3_59 = arith.constant 3 : index
    %c16 = arith.constant 16 : index
    %c0_60 = arith.constant 0 : index
    %111 = vector.load %arg7[%c3_59, %c16, %c0_60] : memref<4x32x32xbf16, #tpu.memory_space<vmem>>, vector<1x8x32xbf16>
    %112 = vector.shape_cast %111 : vector<1x8x32xbf16> to vector<8x32xbf16>
    %cst_61 = arith.constant dense<0.000000e+00> : vector<16x32xf32>
    %113 = tpu.matmul %110, %112, %cst_61 {dimension_numbers = #tpu.dot_dimension_numbers<[1], [0], [0], [1], [0, 0, 1, 1], [], []>} : vector<16x8xbf16>, vector<8x32xbf16>, vector<16x32xf32> -> vector<16x32xf32>
    %114 = arith.addf %88, %113 : vector<16x32xf32>
    %115 = vector.extract_strided_slice %21 {offsets = [24, 0], sizes = [8, 16], strides = [1, 1]} : vector<32x16xf32> to vector<8x16xf32>
    %116 = vector.extract_strided_slice %28 {offsets = [24, 0], sizes = [8, 16], strides = [1, 1]} : vector<32x16xf32> to vector<8x16xf32>
    %117 = vector.extract_strided_slice %35 {offsets = [24, 0], sizes = [8, 16], strides = [1, 1]} : vector<32x16xf32> to vector<8x16xf32>
    %cst_62 = arith.constant dense<0.000000e+00> : vector<16x16xf32>
    %118 = tpu.matmul %115, %116, %cst_62 {dimension_numbers = #tpu.dot_dimension_numbers<[0], [0], [1], [1], [0, 1, 1, 1], [], []>} : vector<8x16xf32>, vector<8x16xf32>, vector<16x16xf32> -> vector<16x16xf32>
    %cst_63 = arith.constant 0.353553385 : f32
    %119 = vector.broadcast %cst_63 : f32 to vector<16x16xf32>
    %120 = arith.mulf %118, %119 : vector<16x16xf32>
    %121 = tpu.iota {dimensions = array<i32: 0>} : vector<16x16xi32>
    %122 = tpu.iota {dimensions = array<i32: 1>} : vector<16x16xi32>
    %123 = arith.cmpi sgt, %122, %121 : vector<16x16xi32>
    %cst_64 = arith.constant -1.000000e+30 : f32
    %124 = vector.broadcast %cst_64 : f32 to vector<16x16xf32>
    %125 = arith.select %123, %124, %120 : vector<16x16xi1>, vector<16x16xf32>
    %cst_65 = arith.constant dense<0xFF800000> : vector<16xf32>
    %126 = vector.multi_reduction <maximumf>, %125, %cst_65 [1] : vector<16x16xf32> to vector<16xf32>
    %127 = vector.shape_cast %126 : vector<16xf32> to vector<16x1xf32>
    %128 = vector.broadcast %127 : vector<16x1xf32> to vector<16x16xf32>
    %129 = arith.subf %125, %128 : vector<16x16xf32>
    %130 = math.exp %129 : vector<16x16xf32>
    %cst_66 = arith.constant dense<0.000000e+00> : vector<16xf32>
    %131 = vector.multi_reduction <add>, %130, %cst_66 [1] : vector<16x16xf32> to vector<16xf32>
    %132 = vector.shape_cast %131 : vector<16xf32> to vector<16x1xf32>
    %133 = vector.broadcast %132 : vector<16x1xf32> to vector<16x16xf32>
    %134 = arith.divf %130, %133 : vector<16x16xf32>
    %cst_67 = arith.constant dense<0.000000e+00> : vector<16x8xf32>
    %135 = tpu.matmul %134, %117, %cst_67 {dimension_numbers = #tpu.dot_dimension_numbers<[1], [1], [0], [0], [0, 0, 1, 0], [], []>} : vector<16x16xf32>, vector<8x16xf32>, vector<16x8xf32> -> vector<16x8xf32>
    %136 = arith.truncf %135 : vector<16x8xf32> to vector<16x8xbf16>
    %c3_68 = arith.constant 3 : index
    %c24 = arith.constant 24 : index
    %c0_69 = arith.constant 0 : index
    %137 = vector.load %arg7[%c3_68, %c24, %c0_69] : memref<4x32x32xbf16, #tpu.memory_space<vmem>>, vector<1x8x32xbf16>
    %138 = vector.shape_cast %137 : vector<1x8x32xbf16> to vector<8x32xbf16>
    %cst_70 = arith.constant dense<0.000000e+00> : vector<16x32xf32>
    %139 = tpu.matmul %136, %138, %cst_70 {dimension_numbers = #tpu.dot_dimension_numbers<[1], [0], [0], [1], [0, 0, 1, 1], [], []>} : vector<16x8xbf16>, vector<8x32xbf16>, vector<16x32xf32> -> vector<16x32xf32>
    %140 = arith.addf %114, %139 : vector<16x32xf32>
    %141 = arith.addf %11, %140 : vector<16x32xf32>
    %c0_71 = arith.constant 0 : index
    %c0_72 = arith.constant 0 : index
    %142 = vector.load %arg9[%c0_71, %c0_72] : memref<1x32xf32, #tpu.memory_space<vmem>>, vector<1x32xf32>
    %143 = vector.broadcast %142 : vector<1x32xf32> to vector<16x32xf32>
    %144 = arith.addf %141, %143 : vector<16x32xf32>
    %c0_73 = arith.constant 0 : index
    %c0_74 = arith.constant 0 : index
    %c0_75 = arith.constant 0 : index
    %145 = vector.load %arg17[%c0_73, %c0_74, %c0_75] : memref<4x1x32xf32, #tpu.memory_space<vmem>>, vector<1x1x32xf32>
    %146 = vector.shape_cast %145 : vector<1x1x32xf32> to vector<1x32xf32>
    %c0_76 = arith.constant 0 : index
    %c0_77 = arith.constant 0 : index
    %c0_78 = arith.constant 0 : index
    %147 = vector.load %arg18[%c0_76, %c0_77, %c0_78] : memref<4x1x32xf32, #tpu.memory_space<vmem>>, vector<1x1x32xf32>
    %148 = vector.shape_cast %147 : vector<1x1x32xf32> to vector<1x32xf32>
    %cst_79 = arith.constant dense<0.000000e+00> : vector<16xf32>
    %149 = vector.multi_reduction <add>, %144, %cst_79 [1] : vector<16x32xf32> to vector<16xf32>
    %150 = vector.shape_cast %149 : vector<16xf32> to vector<16x1xf32>
    %cst_80 = arith.constant 3.200000e+01 : f32
    %151 = vector.broadcast %cst_80 : f32 to vector<16x1xf32>
    %152 = arith.divf %150, %151 : vector<16x1xf32>
    %153 = vector.broadcast %152 : vector<16x1xf32> to vector<16x32xf32>
    %154 = arith.subf %144, %153 : vector<16x32xf32>
    %155 = arith.mulf %154, %154 : vector<16x32xf32>
    %cst_81 = arith.constant dense<0.000000e+00> : vector<16xf32>
    %156 = vector.multi_reduction <add>, %155, %cst_81 [1] : vector<16x32xf32> to vector<16xf32>
    %157 = vector.shape_cast %156 : vector<16xf32> to vector<16x1xf32>
    %cst_82 = arith.constant 3.200000e+01 : f32
    %158 = vector.broadcast %cst_82 : f32 to vector<16x1xf32>
    %159 = arith.divf %157, %158 : vector<16x1xf32>
    %160 = vector.broadcast %152 : vector<16x1xf32> to vector<16x32xf32>
    %161 = arith.subf %144, %160 : vector<16x32xf32>
    %cst_83 = arith.constant 9.99999974E-6 : f32
    %162 = vector.broadcast %cst_83 : f32 to vector<16x1xf32>
    %163 = arith.addf %159, %162 : vector<16x1xf32>
    %164 = math.rsqrt %163 : vector<16x1xf32>
    %165 = vector.broadcast %164 : vector<16x1xf32> to vector<16x32xf32>
    %166 = arith.mulf %161, %165 : vector<16x32xf32>
    %167 = vector.broadcast %146 : vector<1x32xf32> to vector<16x32xf32>
    %168 = arith.mulf %166, %167 : vector<16x32xf32>
    %169 = vector.broadcast %148 : vector<1x32xf32> to vector<16x32xf32>
    %170 = arith.addf %168, %169 : vector<16x32xf32>
    %171 = arith.truncf %170 : vector<16x32xf32> to vector<16x32xbf16>
    %c0_84 = arith.constant 0 : index
    %c0_85 = arith.constant 0 : index
    %c0_86 = arith.constant 0 : index
    %172 = vector.load %arg10[%c0_84, %c0_85, %c0_86] : memref<4x32x32xbf16, #tpu.memory_space<vmem>>, vector<1x32x32xbf16>
    %173 = vector.shape_cast %172 : vector<1x32x32xbf16> to vector<32x32xbf16>
    %cst_87 = arith.constant dense<0.000000e+00> : vector<32x16xf32>
    %174 = tpu.matmul %173, %171, %cst_87 {dimension_numbers = #tpu.dot_dimension_numbers<[1], [1], [0], [0], [0, 0, 1, 0], [], []>} : vector<32x32xbf16>, vector<16x32xbf16>, vector<32x16xf32> -> vector<32x16xf32>
    %c0_88 = arith.constant 0 : index
    %c0_89 = arith.constant 0 : index
    %c0_90 = arith.constant 0 : index
    %175 = vector.load %arg11[%c0_88, %c0_89, %c0_90] : memref<3x32x1xf32, #tpu.memory_space<vmem>>, vector<1x32x1xf32>
    %176 = vector.shape_cast %175 : vector<1x32x1xf32> to vector<32x1xf32>
    %177 = vector.broadcast %176 : vector<32x1xf32> to vector<32x16xf32>
    %178 = arith.addf %174, %177 : vector<32x16xf32>
    %c1_91 = arith.constant 1 : index
    %c0_92 = arith.constant 0 : index
    %c0_93 = arith.constant 0 : index
    %179 = vector.load %arg10[%c1_91, %c0_92, %c0_93] : memref<4x32x32xbf16, #tpu.memory_space<vmem>>, vector<1x32x32xbf16>
    %180 = vector.shape_cast %179 : vector<1x32x32xbf16> to vector<32x32xbf16>
    %cst_94 = arith.constant dense<0.000000e+00> : vector<32x8xf32>
    %181 = tpu.matmul %180, %14, %cst_94 {dimension_numbers = #tpu.dot_dimension_numbers<[1], [1], [0], [0], [0, 0, 1, 0], [], []>} : vector<32x32xbf16>, vector<8x32xbf16>, vector<32x8xf32> -> vector<32x8xf32>
    %c1_95 = arith.constant 1 : index
    %c0_96 = arith.constant 0 : index
    %c0_97 = arith.constant 0 : index
    %182 = vector.load %arg11[%c1_95, %c0_96, %c0_97] : memref<3x32x1xf32, #tpu.memory_space<vmem>>, vector<1x32x1xf32>
    %183 = vector.shape_cast %182 : vector<1x32x1xf32> to vector<32x1xf32>
    %184 = vector.broadcast %183 : vector<32x1xf32> to vector<32x8xf32>
    %185 = arith.addf %181, %184 : vector<32x8xf32>
    %c2_98 = arith.constant 2 : index
    %c0_99 = arith.constant 0 : index
    %c0_100 = arith.constant 0 : index
    %186 = vector.load %arg10[%c2_98, %c0_99, %c0_100] : memref<4x32x32xbf16, #tpu.memory_space<vmem>>, vector<1x32x32xbf16>
    %187 = vector.shape_cast %186 : vector<1x32x32xbf16> to vector<32x32xbf16>
    %cst_101 = arith.constant dense<0.000000e+00> : vector<32x8xf32>
    %188 = tpu.matmul %187, %14, %cst_101 {dimension_numbers = #tpu.dot_dimension_numbers<[1], [1], [0], [0], [0, 0, 1, 0], [], []>} : vector<32x32xbf16>, vector<8x32xbf16>, vector<32x8xf32> -> vector<32x8xf32>
    %c2_102 = arith.constant 2 : index
    %c0_103 = arith.constant 0 : index
    %c0_104 = arith.constant 0 : index
    %189 = vector.load %arg11[%c2_102, %c0_103, %c0_104] : memref<3x32x1xf32, #tpu.memory_space<vmem>>, vector<1x32x1xf32>
    %190 = vector.shape_cast %189 : vector<1x32x1xf32> to vector<32x1xf32>
    %191 = vector.broadcast %190 : vector<32x1xf32> to vector<32x8xf32>
    %192 = arith.addf %188, %191 : vector<32x8xf32>
    %cst_105 = arith.constant 0.000000e+00 : f32
    %193 = vector.broadcast %cst_105 : f32 to vector<16x32xf32>
    %194 = vector.extract_strided_slice %178 {offsets = [0, 0], sizes = [8, 16], strides = [1, 1]} : vector<32x16xf32> to vector<8x16xf32>
    %195 = vector.extract_strided_slice %185 {offsets = [0, 0], sizes = [8, 8], strides = [1, 1]} : vector<32x8xf32> to vector<8x8xf32>
    %196 = vector.extract_strided_slice %192 {offsets = [0, 0], sizes = [8, 8], strides = [1, 1]} : vector<32x8xf32> to vector<8x8xf32>
    %cst_106 = arith.constant dense<0.000000e+00> : vector<16x8xf32>
    %197 = tpu.matmul %194, %195, %cst_106 {dimension_numbers = #tpu.dot_dimension_numbers<[0], [0], [1], [1], [0, 1, 1, 1], [], []>} : vector<8x16xf32>, vector<8x8xf32>, vector<16x8xf32> -> vector<16x8xf32>
    %cst_107 = arith.constant 0.353553385 : f32
    %198 = vector.broadcast %cst_107 : f32 to vector<16x8xf32>
    %199 = arith.mulf %197, %198 : vector<16x8xf32>
    %cst_108 = arith.constant dense<0xFF800000> : vector<16xf32>
    %200 = vector.multi_reduction <maximumf>, %199, %cst_108 [1] : vector<16x8xf32> to vector<16xf32>
    %201 = vector.shape_cast %200 : vector<16xf32> to vector<16x1xf32>
    %202 = vector.broadcast %201 : vector<16x1xf32> to vector<16x8xf32>
    %203 = arith.subf %199, %202 : vector<16x8xf32>
    %204 = math.exp %203 : vector<16x8xf32>
    %cst_109 = arith.constant dense<0.000000e+00> : vector<16xf32>
    %205 = vector.multi_reduction <add>, %204, %cst_109 [1] : vector<16x8xf32> to vector<16xf32>
    %206 = vector.shape_cast %205 : vector<16xf32> to vector<16x1xf32>
    %207 = vector.broadcast %206 : vector<16x1xf32> to vector<16x8xf32>
    %208 = arith.divf %204, %207 : vector<16x8xf32>
    %cst_110 = arith.constant dense<0.000000e+00> : vector<16x8xf32>
    %209 = tpu.matmul %208, %196, %cst_110 {dimension_numbers = #tpu.dot_dimension_numbers<[1], [1], [0], [0], [0, 0, 1, 0], [], []>} : vector<16x8xf32>, vector<8x8xf32>, vector<16x8xf32> -> vector<16x8xf32>
    %210 = arith.truncf %209 : vector<16x8xf32> to vector<16x8xbf16>
    %c3_111 = arith.constant 3 : index
    %c0_112 = arith.constant 0 : index
    %c0_113 = arith.constant 0 : index
    %211 = vector.load %arg10[%c3_111, %c0_112, %c0_113] : memref<4x32x32xbf16, #tpu.memory_space<vmem>>, vector<1x8x32xbf16>
    %212 = vector.shape_cast %211 : vector<1x8x32xbf16> to vector<8x32xbf16>
    %cst_114 = arith.constant dense<0.000000e+00> : vector<16x32xf32>
    %213 = tpu.matmul %210, %212, %cst_114 {dimension_numbers = #tpu.dot_dimension_numbers<[1], [0], [0], [1], [0, 0, 1, 1], [], []>} : vector<16x8xbf16>, vector<8x32xbf16>, vector<16x32xf32> -> vector<16x32xf32>
    %214 = arith.addf %193, %213 : vector<16x32xf32>
    %215 = vector.extract_strided_slice %178 {offsets = [8, 0], sizes = [8, 16], strides = [1, 1]} : vector<32x16xf32> to vector<8x16xf32>
    %216 = vector.extract_strided_slice %185 {offsets = [8, 0], sizes = [8, 8], strides = [1, 1]} : vector<32x8xf32> to vector<8x8xf32>
    %217 = vector.extract_strided_slice %192 {offsets = [8, 0], sizes = [8, 8], strides = [1, 1]} : vector<32x8xf32> to vector<8x8xf32>
    %cst_115 = arith.constant dense<0.000000e+00> : vector<16x8xf32>
    %218 = tpu.matmul %215, %216, %cst_115 {dimension_numbers = #tpu.dot_dimension_numbers<[0], [0], [1], [1], [0, 1, 1, 1], [], []>} : vector<8x16xf32>, vector<8x8xf32>, vector<16x8xf32> -> vector<16x8xf32>
    %cst_116 = arith.constant 0.353553385 : f32
    %219 = vector.broadcast %cst_116 : f32 to vector<16x8xf32>
    %220 = arith.mulf %218, %219 : vector<16x8xf32>
    %cst_117 = arith.constant dense<0xFF800000> : vector<16xf32>
    %221 = vector.multi_reduction <maximumf>, %220, %cst_117 [1] : vector<16x8xf32> to vector<16xf32>
    %222 = vector.shape_cast %221 : vector<16xf32> to vector<16x1xf32>
    %223 = vector.broadcast %222 : vector<16x1xf32> to vector<16x8xf32>
    %224 = arith.subf %220, %223 : vector<16x8xf32>
    %225 = math.exp %224 : vector<16x8xf32>
    %cst_118 = arith.constant dense<0.000000e+00> : vector<16xf32>
    %226 = vector.multi_reduction <add>, %225, %cst_118 [1] : vector<16x8xf32> to vector<16xf32>
    %227 = vector.shape_cast %226 : vector<16xf32> to vector<16x1xf32>
    %228 = vector.broadcast %227 : vector<16x1xf32> to vector<16x8xf32>
    %229 = arith.divf %225, %228 : vector<16x8xf32>
    %cst_119 = arith.constant dense<0.000000e+00> : vector<16x8xf32>
    %230 = tpu.matmul %229, %217, %cst_119 {dimension_numbers = #tpu.dot_dimension_numbers<[1], [1], [0], [0], [0, 0, 1, 0], [], []>} : vector<16x8xf32>, vector<8x8xf32>, vector<16x8xf32> -> vector<16x8xf32>
    %231 = arith.truncf %230 : vector<16x8xf32> to vector<16x8xbf16>
    %c3_120 = arith.constant 3 : index
    %c8_121 = arith.constant 8 : index
    %c0_122 = arith.constant 0 : index
    %232 = vector.load %arg10[%c3_120, %c8_121, %c0_122] : memref<4x32x32xbf16, #tpu.memory_space<vmem>>, vector<1x8x32xbf16>
    %233 = vector.shape_cast %232 : vector<1x8x32xbf16> to vector<8x32xbf16>
    %cst_123 = arith.constant dense<0.000000e+00> : vector<16x32xf32>
    %234 = tpu.matmul %231, %233, %cst_123 {dimension_numbers = #tpu.dot_dimension_numbers<[1], [0], [0], [1], [0, 0, 1, 1], [], []>} : vector<16x8xbf16>, vector<8x32xbf16>, vector<16x32xf32> -> vector<16x32xf32>
    %235 = arith.addf %214, %234 : vector<16x32xf32>
    %236 = vector.extract_strided_slice %178 {offsets = [16, 0], sizes = [8, 16], strides = [1, 1]} : vector<32x16xf32> to vector<8x16xf32>
    %237 = vector.extract_strided_slice %185 {offsets = [16, 0], sizes = [8, 8], strides = [1, 1]} : vector<32x8xf32> to vector<8x8xf32>
    %238 = vector.extract_strided_slice %192 {offsets = [16, 0], sizes = [8, 8], strides = [1, 1]} : vector<32x8xf32> to vector<8x8xf32>
    %cst_124 = arith.constant dense<0.000000e+00> : vector<16x8xf32>
    %239 = tpu.matmul %236, %237, %cst_124 {dimension_numbers = #tpu.dot_dimension_numbers<[0], [0], [1], [1], [0, 1, 1, 1], [], []>} : vector<8x16xf32>, vector<8x8xf32>, vector<16x8xf32> -> vector<16x8xf32>
    %cst_125 = arith.constant 0.353553385 : f32
    %240 = vector.broadcast %cst_125 : f32 to vector<16x8xf32>
    %241 = arith.mulf %239, %240 : vector<16x8xf32>
    %cst_126 = arith.constant dense<0xFF800000> : vector<16xf32>
    %242 = vector.multi_reduction <maximumf>, %241, %cst_126 [1] : vector<16x8xf32> to vector<16xf32>
    %243 = vector.shape_cast %242 : vector<16xf32> to vector<16x1xf32>
    %244 = vector.broadcast %243 : vector<16x1xf32> to vector<16x8xf32>
    %245 = arith.subf %241, %244 : vector<16x8xf32>
    %246 = math.exp %245 : vector<16x8xf32>
    %cst_127 = arith.constant dense<0.000000e+00> : vector<16xf32>
    %247 = vector.multi_reduction <add>, %246, %cst_127 [1] : vector<16x8xf32> to vector<16xf32>
    %248 = vector.shape_cast %247 : vector<16xf32> to vector<16x1xf32>
    %249 = vector.broadcast %248 : vector<16x1xf32> to vector<16x8xf32>
    %250 = arith.divf %246, %249 : vector<16x8xf32>
    %cst_128 = arith.constant dense<0.000000e+00> : vector<16x8xf32>
    %251 = tpu.matmul %250, %238, %cst_128 {dimension_numbers = #tpu.dot_dimension_numbers<[1], [1], [0], [0], [0, 0, 1, 0], [], []>} : vector<16x8xf32>, vector<8x8xf32>, vector<16x8xf32> -> vector<16x8xf32>
    %252 = arith.truncf %251 : vector<16x8xf32> to vector<16x8xbf16>
    %c3_129 = arith.constant 3 : index
    %c16_130 = arith.constant 16 : index
    %c0_131 = arith.constant 0 : index
    %253 = vector.load %arg10[%c3_129, %c16_130, %c0_131] : memref<4x32x32xbf16, #tpu.memory_space<vmem>>, vector<1x8x32xbf16>
    %254 = vector.shape_cast %253 : vector<1x8x32xbf16> to vector<8x32xbf16>
    %cst_132 = arith.constant dense<0.000000e+00> : vector<16x32xf32>
    %255 = tpu.matmul %252, %254, %cst_132 {dimension_numbers = #tpu.dot_dimension_numbers<[1], [0], [0], [1], [0, 0, 1, 1], [], []>} : vector<16x8xbf16>, vector<8x32xbf16>, vector<16x32xf32> -> vector<16x32xf32>
    %256 = arith.addf %235, %255 : vector<16x32xf32>
    %257 = vector.extract_strided_slice %178 {offsets = [24, 0], sizes = [8, 16], strides = [1, 1]} : vector<32x16xf32> to vector<8x16xf32>
    %258 = vector.extract_strided_slice %185 {offsets = [24, 0], sizes = [8, 8], strides = [1, 1]} : vector<32x8xf32> to vector<8x8xf32>
    %259 = vector.extract_strided_slice %192 {offsets = [24, 0], sizes = [8, 8], strides = [1, 1]} : vector<32x8xf32> to vector<8x8xf32>
    %cst_133 = arith.constant dense<0.000000e+00> : vector<16x8xf32>
    %260 = tpu.matmul %257, %258, %cst_133 {dimension_numbers = #tpu.dot_dimension_numbers<[0], [0], [1], [1], [0, 1, 1, 1], [], []>} : vector<8x16xf32>, vector<8x8xf32>, vector<16x8xf32> -> vector<16x8xf32>
    %cst_134 = arith.constant 0.353553385 : f32
    %261 = vector.broadcast %cst_134 : f32 to vector<16x8xf32>
    %262 = arith.mulf %260, %261 : vector<16x8xf32>
    %cst_135 = arith.constant dense<0xFF800000> : vector<16xf32>
    %263 = vector.multi_reduction <maximumf>, %262, %cst_135 [1] : vector<16x8xf32> to vector<16xf32>
    %264 = vector.shape_cast %263 : vector<16xf32> to vector<16x1xf32>
    %265 = vector.broadcast %264 : vector<16x1xf32> to vector<16x8xf32>
    %266 = arith.subf %262, %265 : vector<16x8xf32>
    %267 = math.exp %266 : vector<16x8xf32>
    %cst_136 = arith.constant dense<0.000000e+00> : vector<16xf32>
    %268 = vector.multi_reduction <add>, %267, %cst_136 [1] : vector<16x8xf32> to vector<16xf32>
    %269 = vector.shape_cast %268 : vector<16xf32> to vector<16x1xf32>
    %270 = vector.broadcast %269 : vector<16x1xf32> to vector<16x8xf32>
    %271 = arith.divf %267, %270 : vector<16x8xf32>
    %cst_137 = arith.constant dense<0.000000e+00> : vector<16x8xf32>
    %272 = tpu.matmul %271, %259, %cst_137 {dimension_numbers = #tpu.dot_dimension_numbers<[1], [1], [0], [0], [0, 0, 1, 0], [], []>} : vector<16x8xf32>, vector<8x8xf32>, vector<16x8xf32> -> vector<16x8xf32>
    %273 = arith.truncf %272 : vector<16x8xf32> to vector<16x8xbf16>
    %c3_138 = arith.constant 3 : index
    %c24_139 = arith.constant 24 : index
    %c0_140 = arith.constant 0 : index
    %274 = vector.load %arg10[%c3_138, %c24_139, %c0_140] : memref<4x32x32xbf16, #tpu.memory_space<vmem>>, vector<1x8x32xbf16>
    %275 = vector.shape_cast %274 : vector<1x8x32xbf16> to vector<8x32xbf16>
    %cst_141 = arith.constant dense<0.000000e+00> : vector<16x32xf32>
    %276 = tpu.matmul %273, %275, %cst_141 {dimension_numbers = #tpu.dot_dimension_numbers<[1], [0], [0], [1], [0, 0, 1, 1], [], []>} : vector<16x8xbf16>, vector<8x32xbf16>, vector<16x32xf32> -> vector<16x32xf32>
    %277 = arith.addf %256, %276 : vector<16x32xf32>
    %278 = arith.addf %170, %277 : vector<16x32xf32>
    %c0_142 = arith.constant 0 : index
    %c0_143 = arith.constant 0 : index
    %279 = vector.load %arg12[%c0_142, %c0_143] : memref<1x32xf32, #tpu.memory_space<vmem>>, vector<1x32xf32>
    %280 = vector.broadcast %279 : vector<1x32xf32> to vector<16x32xf32>
    %281 = arith.addf %278, %280 : vector<16x32xf32>
    %c1_144 = arith.constant 1 : index
    %c0_145 = arith.constant 0 : index
    %c0_146 = arith.constant 0 : index
    %282 = vector.load %arg17[%c1_144, %c0_145, %c0_146] : memref<4x1x32xf32, #tpu.memory_space<vmem>>, vector<1x1x32xf32>
    %283 = vector.shape_cast %282 : vector<1x1x32xf32> to vector<1x32xf32>
    %c1_147 = arith.constant 1 : index
    %c0_148 = arith.constant 0 : index
    %c0_149 = arith.constant 0 : index
    %284 = vector.load %arg18[%c1_147, %c0_148, %c0_149] : memref<4x1x32xf32, #tpu.memory_space<vmem>>, vector<1x1x32xf32>
    %285 = vector.shape_cast %284 : vector<1x1x32xf32> to vector<1x32xf32>
    %cst_150 = arith.constant dense<0.000000e+00> : vector<16xf32>
    %286 = vector.multi_reduction <add>, %281, %cst_150 [1] : vector<16x32xf32> to vector<16xf32>
    %287 = vector.shape_cast %286 : vector<16xf32> to vector<16x1xf32>
    %cst_151 = arith.constant 3.200000e+01 : f32
    %288 = vector.broadcast %cst_151 : f32 to vector<16x1xf32>
    %289 = arith.divf %287, %288 : vector<16x1xf32>
    %290 = vector.broadcast %289 : vector<16x1xf32> to vector<16x32xf32>
    %291 = arith.subf %281, %290 : vector<16x32xf32>
    %292 = arith.mulf %291, %291 : vector<16x32xf32>
    %cst_152 = arith.constant dense<0.000000e+00> : vector<16xf32>
    %293 = vector.multi_reduction <add>, %292, %cst_152 [1] : vector<16x32xf32> to vector<16xf32>
    %294 = vector.shape_cast %293 : vector<16xf32> to vector<16x1xf32>
    %cst_153 = arith.constant 3.200000e+01 : f32
    %295 = vector.broadcast %cst_153 : f32 to vector<16x1xf32>
    %296 = arith.divf %294, %295 : vector<16x1xf32>
    %297 = vector.broadcast %289 : vector<16x1xf32> to vector<16x32xf32>
    %298 = arith.subf %281, %297 : vector<16x32xf32>
    %cst_154 = arith.constant 9.99999974E-6 : f32
    %299 = vector.broadcast %cst_154 : f32 to vector<16x1xf32>
    %300 = arith.addf %296, %299 : vector<16x1xf32>
    %301 = math.rsqrt %300 : vector<16x1xf32>
    %302 = vector.broadcast %301 : vector<16x1xf32> to vector<16x32xf32>
    %303 = arith.mulf %298, %302 : vector<16x32xf32>
    %304 = vector.broadcast %283 : vector<1x32xf32> to vector<16x32xf32>
    %305 = arith.mulf %303, %304 : vector<16x32xf32>
    %306 = vector.broadcast %285 : vector<1x32xf32> to vector<16x32xf32>
    %307 = arith.addf %305, %306 : vector<16x32xf32>
    %308 = arith.truncf %307 : vector<16x32xf32> to vector<16x32xbf16>
    %c0_155 = arith.constant 0 : index
    %c0_156 = arith.constant 0 : index
    %309 = vector.load %arg13[%c0_155, %c0_156] : memref<32x64xbf16, #tpu.memory_space<vmem>>, vector<32x64xbf16>
    %c0_157 = arith.constant 0 : index
    %c0_158 = arith.constant 0 : index
    %310 = vector.load %arg14[%c0_157, %c0_158] : memref<1x64xf32, #tpu.memory_space<vmem>>, vector<1x64xf32>
    %c0_159 = arith.constant 0 : index
    %c0_160 = arith.constant 0 : index
    %311 = vector.load %arg15[%c0_159, %c0_160] : memref<64x32xbf16, #tpu.memory_space<vmem>>, vector<64x32xbf16>
    %c0_161 = arith.constant 0 : index
    %c0_162 = arith.constant 0 : index
    %312 = vector.load %arg16[%c0_161, %c0_162] : memref<1x32xf32, #tpu.memory_space<vmem>>, vector<1x32xf32>
    %cst_163 = arith.constant dense<0.000000e+00> : vector<16x64xf32>
    %313 = tpu.matmul %308, %309, %cst_163 {dimension_numbers = #tpu.dot_dimension_numbers<[1], [0], [0], [1], [0, 0, 1, 1], [], []>} : vector<16x32xbf16>, vector<32x64xbf16>, vector<16x64xf32> -> vector<16x64xf32>
    %314 = vector.broadcast %310 : vector<1x64xf32> to vector<16x64xf32>
    %315 = arith.addf %313, %314 : vector<16x64xf32>
    %316 = arith.mulf %315, %315 : vector<16x64xf32>
    %317 = arith.mulf %315, %316 : vector<16x64xf32>
    %cst_164 = arith.constant 4.471500e-02 : f32
    %318 = vector.broadcast %cst_164 : f32 to vector<16x64xf32>
    %319 = arith.mulf %318, %317 : vector<16x64xf32>
    %320 = arith.addf %315, %319 : vector<16x64xf32>
    %cst_165 = arith.constant 0.797884583 : f32
    %321 = vector.broadcast %cst_165 : f32 to vector<16x64xf32>
    %322 = arith.mulf %321, %320 : vector<16x64xf32>
    %323 = math.tanh %322 : vector<16x64xf32>
    %cst_166 = arith.constant 1.000000e+00 : f32
    %324 = vector.broadcast %cst_166 : f32 to vector<16x64xf32>
    %325 = arith.addf %324, %323 : vector<16x64xf32>
    %cst_167 = arith.constant 5.000000e-01 : f32
    %326 = vector.broadcast %cst_167 : f32 to vector<16x64xf32>
    %327 = arith.mulf %326, %325 : vector<16x64xf32>
    %328 = arith.mulf %315, %327 : vector<16x64xf32>
    %329 = arith.truncf %328 : vector<16x64xf32> to vector<16x64xbf16>
    %cst_168 = arith.constant dense<0.000000e+00> : vector<16x32xf32>
    %330 = tpu.matmul %329, %311, %cst_168 {dimension_numbers = #tpu.dot_dimension_numbers<[1], [0], [0], [1], [0, 0, 1, 1], [], []>} : vector<16x64xbf16>, vector<64x32xbf16>, vector<16x32xf32> -> vector<16x32xf32>
    %331 = vector.broadcast %312 : vector<1x32xf32> to vector<16x32xf32>
    %332 = arith.addf %330, %331 : vector<16x32xf32>
    %333 = arith.addf %307, %332 : vector<16x32xf32>
    %c2_169 = arith.constant 2 : index
    %c0_170 = arith.constant 0 : index
    %c0_171 = arith.constant 0 : index
    %334 = vector.load %arg17[%c2_169, %c0_170, %c0_171] : memref<4x1x32xf32, #tpu.memory_space<vmem>>, vector<1x1x32xf32>
    %335 = vector.shape_cast %334 : vector<1x1x32xf32> to vector<1x32xf32>
    %c2_172 = arith.constant 2 : index
    %c0_173 = arith.constant 0 : index
    %c0_174 = arith.constant 0 : index
    %336 = vector.load %arg18[%c2_172, %c0_173, %c0_174] : memref<4x1x32xf32, #tpu.memory_space<vmem>>, vector<1x1x32xf32>
    %337 = vector.shape_cast %336 : vector<1x1x32xf32> to vector<1x32xf32>
    %cst_175 = arith.constant dense<0.000000e+00> : vector<16xf32>
    %338 = vector.multi_reduction <add>, %333, %cst_175 [1] : vector<16x32xf32> to vector<16xf32>
    %339 = vector.shape_cast %338 : vector<16xf32> to vector<16x1xf32>
    %cst_176 = arith.constant 3.200000e+01 : f32
    %340 = vector.broadcast %cst_176 : f32 to vector<16x1xf32>
    %341 = arith.divf %339, %340 : vector<16x1xf32>
    %342 = vector.broadcast %341 : vector<16x1xf32> to vector<16x32xf32>
    %343 = arith.subf %333, %342 : vector<16x32xf32>
    %344 = arith.mulf %343, %343 : vector<16x32xf32>
    %cst_177 = arith.constant dense<0.000000e+00> : vector<16xf32>
    %345 = vector.multi_reduction <add>, %344, %cst_177 [1] : vector<16x32xf32> to vector<16xf32>
    %346 = vector.shape_cast %345 : vector<16xf32> to vector<16x1xf32>
    %cst_178 = arith.constant 3.200000e+01 : f32
    %347 = vector.broadcast %cst_178 : f32 to vector<16x1xf32>
    %348 = arith.divf %346, %347 : vector<16x1xf32>
    %349 = vector.broadcast %341 : vector<16x1xf32> to vector<16x32xf32>
    %350 = arith.subf %333, %349 : vector<16x32xf32>
    %cst_179 = arith.constant 9.99999974E-6 : f32
    %351 = vector.broadcast %cst_179 : f32 to vector<16x1xf32>
    %352 = arith.addf %348, %351 : vector<16x1xf32>
    %353 = math.rsqrt %352 : vector<16x1xf32>
    %354 = vector.broadcast %353 : vector<16x1xf32> to vector<16x32xf32>
    %355 = arith.mulf %350, %354 : vector<16x32xf32>
    %356 = vector.broadcast %335 : vector<1x32xf32> to vector<16x32xf32>
    %357 = arith.mulf %355, %356 : vector<16x32xf32>
    %358 = vector.broadcast %337 : vector<1x32xf32> to vector<16x32xf32>
    %359 = arith.addf %357, %358 : vector<16x32xf32>
    %360 = vector.extract_strided_slice %359 {offsets = [8, 0], sizes = [8, 32], strides = [1, 1]} : vector<16x32xf32> to vector<8x32xf32>
    %c3_180 = arith.constant 3 : index
    %c0_181 = arith.constant 0 : index
    %c0_182 = arith.constant 0 : index
    %361 = vector.load %arg17[%c3_180, %c0_181, %c0_182] : memref<4x1x32xf32, #tpu.memory_space<vmem>>, vector<1x1x32xf32>
    %362 = vector.shape_cast %361 : vector<1x1x32xf32> to vector<1x32xf32>
    %c3_183 = arith.constant 3 : index
    %c0_184 = arith.constant 0 : index
    %c0_185 = arith.constant 0 : index
    %363 = vector.load %arg18[%c3_183, %c0_184, %c0_185] : memref<4x1x32xf32, #tpu.memory_space<vmem>>, vector<1x1x32xf32>
    %364 = vector.shape_cast %363 : vector<1x1x32xf32> to vector<1x32xf32>
    %cst_186 = arith.constant dense<0.000000e+00> : vector<8xf32>
    %365 = vector.multi_reduction <add>, %360, %cst_186 [1] : vector<8x32xf32> to vector<8xf32>
    %366 = vector.shape_cast %365 : vector<8xf32> to vector<8x1xf32>
    %cst_187 = arith.constant 3.200000e+01 : f32
    %367 = vector.broadcast %cst_187 : f32 to vector<8x1xf32>
    %368 = arith.divf %366, %367 : vector<8x1xf32>
    %369 = vector.broadcast %368 : vector<8x1xf32> to vector<8x32xf32>
    %370 = arith.subf %360, %369 : vector<8x32xf32>
    %371 = arith.mulf %370, %370 : vector<8x32xf32>
    %cst_188 = arith.constant dense<0.000000e+00> : vector<8xf32>
    %372 = vector.multi_reduction <add>, %371, %cst_188 [1] : vector<8x32xf32> to vector<8xf32>
    %373 = vector.shape_cast %372 : vector<8xf32> to vector<8x1xf32>
    %cst_189 = arith.constant 3.200000e+01 : f32
    %374 = vector.broadcast %cst_189 : f32 to vector<8x1xf32>
    %375 = arith.divf %373, %374 : vector<8x1xf32>
    %376 = vector.broadcast %368 : vector<8x1xf32> to vector<8x32xf32>
    %377 = arith.subf %360, %376 : vector<8x32xf32>
    %cst_190 = arith.constant 9.99999974E-6 : f32
    %378 = vector.broadcast %cst_190 : f32 to vector<8x1xf32>
    %379 = arith.addf %375, %378 : vector<8x1xf32>
    %380 = math.rsqrt %379 : vector<8x1xf32>
    %381 = vector.broadcast %380 : vector<8x1xf32> to vector<8x32xf32>
    %382 = arith.mulf %377, %381 : vector<8x32xf32>
    %383 = vector.broadcast %362 : vector<1x32xf32> to vector<8x32xf32>
    %384 = arith.mulf %382, %383 : vector<8x32xf32>
    %385 = vector.broadcast %364 : vector<1x32xf32> to vector<8x32xf32>
    %386 = arith.addf %384, %385 : vector<8x32xf32>
    %387 = arith.truncf %386 : vector<8x32xf32> to vector<8x32xbf16>
    %c0_191 = arith.constant 0 : index
    %c0_192 = arith.constant 0 : index
    %388 = vector.load %arg19[%c0_191, %c0_192] : memref<32x128xbf16, #tpu.memory_space<vmem>>, vector<32x128xbf16>
    %cst_193 = arith.constant dense<0.000000e+00> : vector<8x128xf32>
    %389 = tpu.matmul %387, %388, %cst_193 {dimension_numbers = #tpu.dot_dimension_numbers<[1], [0], [0], [1], [0, 0, 1, 1], [], []>} : vector<8x32xbf16>, vector<32x128xbf16>, vector<8x128xf32> -> vector<8x128xf32>
    %c0_194 = arith.constant 0 : index
    %c0_195 = arith.constant 0 : index
    %390 = vector.load %arg20[%c0_194, %c0_195] : memref<1x128xf32, #tpu.memory_space<vmem>>, vector<1x128xf32>
    %391 = vector.broadcast %390 : vector<1x128xf32> to vector<8x128xf32>
    %392 = arith.addf %389, %391 : vector<8x128xf32>
    %c0_196 = arith.constant 0 : index
    %c0_197 = arith.constant 0 : index
    %c0_198 = arith.constant 0 : index
    %393 = vector.load %arg21[%c0_196, %c0_197, %c0_198] : memref<1x8x128xf32, #tpu.memory_space<vmem>>, vector<1x8x128xf32>
    %394 = vector.shape_cast %393 : vector<1x8x128xf32> to vector<8x128xf32>
    %395 = vector.shape_cast %392 : vector<8x128xf32> to vector<1x8x128xf32>
    tpu.vector_store %arg21[%c0_196, %c0_197, %c0_198], %395 {strides = array<i32>} : memref<1x8x128xf32, #tpu.memory_space<vmem>>, vector<1x8x128xf32>,
    return
  }
  func.func @transform_0(%arg0: i32) -> (i32, i32, i32) {
    %c0_i32 = arith.constant 0 : i32
    %c0_i32_0 = arith.constant 0 : i32
    %c0_i32_1 = arith.constant 0 : i32
    return %arg0, %c0_i32, %c0_i32_0 : i32, i32, i32
  }
  func.func @transform_1(%arg0: i32) -> (i32, i32, i32) {
    %c0_i32 = arith.constant 0 : i32
    %c0_i32_0 = arith.constant 0 : i32
    %c0_i32_1 = arith.constant 0 : i32
    return %arg0, %c0_i32, %c0_i32_0 : i32, i32, i32
  }
  func.func @transform_2(%arg0: i32) -> (i32, i32) {
    %c0_i32 = arith.constant 0 : i32
    %c0_i32_0 = arith.constant 0 : i32
    %c0_i32_1 = arith.constant 0 : i32
    return %c0_i32, %c0_i32_0 : i32, i32
  }
  func.func @transform_3(%arg0: i32) -> (i32, i32, i32) {
    %c0_i32 = arith.constant 0 : i32
    %c0_i32_0 = arith.constant 0 : i32
    %c0_i32_1 = arith.constant 0 : i32
    return %arg0, %c0_i32, %c0_i32_0 : i32, i32, i32
  }
  func.func @transform_4(%arg0: i32) -> (i32, i32) {
    %c0_i32 = arith.constant 0 : i32
    %c0_i32_0 = arith.constant 0 : i32
    %c0_i32_1 = arith.constant 0 : i32
    return %c0_i32, %c0_i32_0 : i32, i32
  }
  func.func @transform_5(%arg0: i32) -> (i32, i32) {
    %c0_i32 = arith.constant 0 : i32
    %c0_i32_0 = arith.constant 0 : i32
    %c0_i32_1 = arith.constant 0 : i32
    return %c0_i32, %c0_i32_0 : i32, i32
  }
  func.func @transform_6(%arg0: i32) -> (i32, i32, i32) {
    %c0_i32 = arith.constant 0 : i32
    %c0_i32_0 = arith.constant 0 : i32
    %c0_i32_1 = arith.constant 0 : i32
    %c0_i32_2 = arith.constant 0 : i32
    return %c0_i32, %c0_i32_0, %c0_i32_1 : i32, i32, i32
  }
  func.func @transform_7(%arg0: i32) -> (i32, i32, i32) {
    %c0_i32 = arith.constant 0 : i32
    %c0_i32_0 = arith.constant 0 : i32
    %c0_i32_1 = arith.constant 0 : i32
    %c0_i32_2 = arith.constant 0 : i32
    return %c0_i32, %c0_i32_0, %c0_i32_1 : i32, i32, i32
  }
  func.func @transform_8(%arg0: i32) -> (i32, i32) {
    %c0_i32 = arith.constant 0 : i32
    %c0_i32_0 = arith.constant 0 : i32
    %c0_i32_1 = arith.constant 0 : i32
    return %c0_i32, %c0_i32_0 : i32, i32
  }
  func.func @transform_9(%arg0: i32) -> (i32, i32, i32) {
    %c0_i32 = arith.constant 0 : i32
    %c0_i32_0 = arith.constant 0 : i32
    %c0_i32_1 = arith.constant 0 : i32
    %c0_i32_2 = arith.constant 0 : i32
    return %c0_i32, %c0_i32_0, %c0_i32_1 : i32, i32, i32
  }
  func.func @transform_10(%arg0: i32) -> (i32, i32, i32) {
    %c0_i32 = arith.constant 0 : i32
    %c0_i32_0 = arith.constant 0 : i32
    %c0_i32_1 = arith.constant 0 : i32
    %c0_i32_2 = arith.constant 0 : i32
    return %c0_i32, %c0_i32_0, %c0_i32_1 : i32, i32, i32
  }
  func.func @transform_11(%arg0: i32) -> (i32, i32) {
    %c0_i32 = arith.constant 0 : i32
    %c0_i32_0 = arith.constant 0 : i32
    %c0_i32_1 = arith.constant 0 : i32
    return %c0_i32, %c0_i32_0 : i32, i32
  }
  func.func @transform_12(%arg0: i32) -> (i32, i32) {
    %c0_i32 = arith.constant 0 : i32
    %c0_i32_0 = arith.constant 0 : i32
    %c0_i32_1 = arith.constant 0 : i32
    return %c0_i32, %c0_i32_0 : i32, i32
  }
  func.func @transform_13(%arg0: i32) -> (i32, i32) {
    %c0_i32 = arith.constant 0 : i32
    %c0_i32_0 = arith.constant 0 : i32
    %c0_i32_1 = arith.constant 0 : i32
    return %c0_i32, %c0_i32_0 : i32, i32
  }
  func.func @transform_14(%arg0: i32) -> (i32, i32) {
    %c0_i32 = arith.constant 0 : i32
    %c0_i32_0 = arith.constant 0 : i32
    %c0_i32_1 = arith.constant 0 : i32
    return %c0_i32, %c0_i32_0 : i32, i32
  }
  func.func @transform_15(%arg0: i32) -> (i32, i32) {
    %c0_i32 = arith.constant 0 : i32
    %c0_i32_0 = arith.constant 0 : i32
    %c0_i32_1 = arith.constant 0 : i32
    return %c0_i32, %c0_i32_0 : i32, i32
  }
  func.func @transform_16(%arg0: i32) -> (i32, i32, i32) {
    %c0_i32 = arith.constant 0 : i32
    %c0_i32_0 = arith.constant 0 : i32
    %c0_i32_1 = arith.constant 0 : i32
    %c0_i32_2 = arith.constant 0 : i32
    return %c0_i32, %c0_i32_0, %c0_i32_1 : i32, i32, i32
  }
  func.func @transform_17(%arg0: i32) -> (i32, i32, i32) {
    %c0_i32 = arith.constant 0 : i32
    %c0_i32_0 = arith.constant 0 : i32
    %c0_i32_1 = arith.constant 0 : i32
    %c0_i32_2 = arith.constant 0 : i32
    return %c0_i32, %c0_i32_0, %c0_i32_1 : i32, i32, i32
  }
  func.func @transform_18(%arg0: i32) -> (i32, i32) {
    %c0_i32 = arith.constant 0 : i32
    %c0_i32_0 = arith.constant 0 : i32
    %c0_i32_1 = arith.constant 0 : i32
    return %c0_i32, %c0_i32_0 : i32, i32
  }
  func.func @transform_19(%arg0: i32) -> (i32, i32) {
    %c0_i32 = arith.constant 0 : i32
    %c0_i32_0 = arith.constant 0 : i32
    %c0_i32_1 = arith.constant 0 : i32
    return %c0_i32, %c0_i32_0 : i32, i32
  }
  func.func @transform_20(%arg0: i32) -> (i32, i32, i32) {
    %c0_i32 = arith.constant 0 : i32
    %c0_i32_0 = arith.constant 0 : i32
    %c0_i32_1 = arith.constant 0 : i32
    return %arg0, %c0_i32, %c0_i32_0 : i32, i32, i32
  }
}

</mosaic_0001>

<bundles_post_ra>
// kernel: wr_xformer_forward.2
= control target key start
LH: loop header
LB: loop body
LE: loop exit
PB: predicated region body
PF: predicated region fallthrough
CT: control target
= control target key end

     0   :  { %s2559_s29 = smov 0   ;;  %s2828_s0 = inlined_call_operand.vmem [shape: bf16[2,8,12], index: 0, kind: input, shape index: {}]   ;;  %s2829_s1 = inlined_call_operand.vmem [shape: bf16[2,8,1], index: 1, kind: input, shape index: {}]   ;;  %s2830_s2 = inlined_call_operand.vmem [shape: bf16[8,32], index: 2, kind: input, shape index: {}]   ;;  %s2831_s3 = inlined_call_operand.vmem [shape: bf16[12,32], index: 3, kind: input, shape index: {}]   ;;  %s2832_s4 = inlined_call_operand.vmem [shape: bf16[1,32], index: 4, kind: input, shape index: {}]   ;;  %s2833_s5 = inlined_call_operand.vmem [shape: bf16[4,32,32], index: 5, kind: input, shape index: {}]   ;;  %s2834_s6 = inlined_call_operand.vmem [shape: f32[3,32,1], index: 6, kind: input, shape index: {}]   ;;  %s2835_s7 = inlined_call_operand.vmem [shape: f32[1,32], index: 7, kind: input, shape index: {}]   ;;  %s2836_s8 = inlined_call_operand.vmem [shape: bf16[32,64], index: 8, kind: input, shape index: {}]   ;;  %s2837_s9 = inlined_call_operand.vmem [shape: f32[1,64], index: 9, kind: input, shape index: {}]   ;;  %s2838_s10 = inlined_call_operand.vmem [shape: bf16[64,32], index: 10, kind: input, shape index: {}]   ;;  %s2839_s11 = inlined_call_operand.vmem [shape: f32[1,32], index: 11, kind: input, shape index: {}]   ;;  %s2840_s12 = inlined_call_operand.vmem [shape: f32[3,1,32], index: 12, kind: input, shape index: {}]   ;;  %s2841_s13 = inlined_call_operand.vmem [shape: f32[3,1,32], index: 13, kind: input, shape index: {}]   ;;  %s2842_s14 = inlined_call_operand.vmem [shape: bf16[2,8,32], index: 14, kind: output, shape index: {}]  }
   0x1 LB: > { %s2179_s30 = sadd.s32 4294967295, %s2479_s29   ;;  %p2183_p0 = scmp.ge.s32.totalorder %s2479_s29, 1  ;;  %s2479_s29 = sphi %s2559_s29, %s24_s29  }
   0x2   : > { %p420_p1 = scmp.lt.s32.totalorder %s2479_s29, 3 }
   0x4   : > { %p421_p2 = pnand %p2183_p0, %p420_p1 }
   0x5   : > { %v486_v0 = vld [vmem:[%s2832_s4] sm:$0x1] (!%p421_p2)  ;;  %vm491_vm0 = vcmask (!%p421_p2), 1040384   ;;  %vm546_vm1 = vcmask (!%p421_p2), 1045504   ;;  %v2481_v1 = vmov (!%p421_p2), 0.0   ;;  %v2482_v2 = vmov (!%p421_p2), 0  }
   0x6   : > { %424 = sbr.rel (%p421_p2) target bundleno = 4265 (0x10a9), region = 76  ;;  %2306 = vmatprep.subr.bf16.mxu0 (!%p421_p2), %v2481_v1  ;;  %2312 = vmatprep.subr.bf16.mxu1 (!%p421_p2), %v2481_v1  ;;  %v493_v3 = vsel (!%p421_p2), %vm491_vm0, 65535, %v2482_v2  ;;  %v2436_v5 = vld [vmem:[%s2831_s3] sm:$0x3f] (!%p421_p2)   ;;  %vm2483_vm2 = vmmov (!%p421_p2), 0   ;;  %p468_p3 = scmp.lt.s32.totalorder (!%p421_p2), %s2179_s30, 1 }
   0x7   : > { %v495_v4 = vand.u32 (!%p421_p2), %v493_v3, %v486_v0  ;;  %2308 = vmatprep.mubr.msk.bf16.mxu0 (!%p421_p2), %vm2483_vm2, %v2481_v1  ;;  %2314 = vmatprep.mubr.msk.bf16.mxu1 (!%p421_p2), %vm2483_vm2, %v2481_v1  ;;  %vm487_vm3 = vcmask (!%p421_p2), 7168   ;;  %v548_v6 = vsel (!%p421_p2), %vm546_vm1, %v2436_v5, 0  ;;  %vm542_vm4 = vcmask (!%p421_p2), 97280   ;;  %v2437_v9 = vld [vmem:[%s2833_s5] sm:$0xff] (!%p421_p2)   ;;  %v2439_v11 = vld [vmem:[%s2833_s5 + $0x10] sm:$0xff] (!%p421_p2)   ;;  %v598_v13 = vld [vmem:[%s2834_s6 + $0x8] sm:$0xff] (!%p421_p2) }
   0x8   : > { %2434 = vset.pattern.permute.xlu0 (!%p421_p2), %v2482_v2  ;;  %2435 = vset.pattern.permute.xlu1 (!%p421_p2), %v2482_v2  ;;  %vm631_vm5 = vcmask (!%p421_p2), 261120   ;;  %v597_v10 = vld [vmem:[%s2834_s6] sm:$0xff] (!%p421_p2)  ;;  %v2199_v14 = vld [vmem:[%s2834_s6 + $0x28] sm:$0xff] (!%p421_p2)  ;;  %v2440_v30 = vld [vmem:[%s2833_s5 + $0x18] sm:$0xff] (!%p421_p2)   ;;  %vm912_vm6 = vcmask (!%p421_p2), 64512   ;;  %vm1275_vm7 = vcmask (!%p421_p2), 1043456  }
   0x9   : > { %2307 = vmatpush3.bf16.msra.mxu0 (!%p421_p2), %v495_v4  ;;  %2313 = vmatpush3.bf16.msra.mxu1 (!%p421_p2), %v548_v6  ;;  %v2198_v12 = vld [vmem:[%s2834_s6 + $0x20] sm:$0xff] (!%p421_p2)  ;;  %v2438_v29 = vld [vmem:[%s2833_s5 + $0x8] sm:$0xff] (!%p421_p2)   ;;  %v599_v0 = vld [vmem:[%s2834_s6 + $0x10] sm:$0xff] (!%p421_p2)  ;;  %vm2004_vm8 = vcmask (!%p421_p2), 523264   ;;  %vm2112_vm9 = vcmask (!%p421_p2), 257024  }
   0xa   : > { %603 = vperm.xlu0 (!%p421_p2), %2434, %v597_v10   ;;  %702 = vperm.xlu1 (!%p421_p2), %2435, %v2198_v12   ;;  %v483_v15 = vld [vmem:[%s2830_s2] sm:$0xf] (!%p421_p2)  ;;  %v2442_v32 = vld [vmem:[%s2833_s5 + $0x28] sm:$0xff] (!%p421_p2)   ;;  %v2200_v2 = vld [vmem:[%s2834_s6 + $0x30] sm:$0xff] (!%p421_p2) }
   0xb   : > { %v590_v17 = vunpack.c.l.bf16 (!%p421_p2), %v483_v15  ;;  %v2441_v31 = vld [vmem:[%s2833_s5 + $0x20] sm:$0xff] (!%p421_p2)   ;;  %v2211_v15 = vld [vmem:[%s2834_s6 + $0x48] sm:$0xff] (!%p421_p2) }
   0xc   : > { %v2210_v63 = vld [vmem:[%s2834_s6 + $0x40] sm:$0xff] (!%p421_p2) }
   0xd   : > { %s2844_s30 = smov (!%p468_p3, %s2179_s30), 1 }
   0xe   : > { %s2580_s19 = sshll.u32 %s2844_s30, 2  ;;  %608 = vperm.xlu0 %2434, %v598_v13   ;;  %707 = vperm.xlu1 %2435, %v2199_v14  }
   0xf   : > { %s475_s22 = scalar_lea.vmem %s2829_s1, %s2580_s19  ;;  %s471_s25 = scalar_lea.vmem %s2828_s0, %s2580_s19 }
  0x10   : > { %v482_v7 = vld [vmem:[%s475_s22] sm:$0xf]  ;;  %s479_s20 = scalar_lea.vmem %s2842_s14, %s2580_s19 }
  0x11   : > { %2309 = vmatmul.mubr.msk.bf16.vlgmr.msra.gmra.mrb[0].mxu0 %vm487_vm3, %v482_v7  ;;  %v481_v8 = vld [vmem:[%s471_s25] sm:$0xf] }
  0x12   : > { %2315 = vmatmul.mubr.msk.bf16.vlgmr.msra.gmra.mrb[0].mxu1 %vm542_vm4, %v481_v8  ;;  %2320 = vmatprep.mubr.msk.bf16.mxu0 %vm631_vm5, %v2437_v9 }
  0x13   : > { %2326 = vmatprep.mubr.msk.bf16.mxu1 %vm631_vm5, %v2439_v11 }
  0x89   : > { %v604_v33 = vpop.permute.xlu0 %603  ;;  %v703_v34 = vpop.permute.xlu1 %702 }
  0x8d   : > { %v609_v35 = vpop.permute.xlu0 %608  ;;  %v708_v36 = vpop.permute.xlu1 %707 }
  0xe4   : > { %v531_v16 = vpop.f32.mrb[0].mxu0 }
  0xe5   : > { %v584_v18 = vpop.f32.mrb[0].mxu1  ;;  %v2310_v19 = vpop.f32.mrb[1].mxu0 }
  0xe6   : > { %v585_v20 = vadd.f32 %v584_v18, %v531_v16  ;;  %v2316_v21 = vpop.f32.mrb[1].mxu1  ;;  %v534_v22 = vpop.f32.mrb[2].mxu0  ;;  %v600_v18 = vld [vmem:[%s2834_s6 + $0x18] sm:$0xff] }
  0xe7   : > { %v587_v23 = vpop.f32.mrb[2].mxu1  ;;  %v2311_v24 = vpop.f32.mrb[3].mxu0 }
  0xe8   : > { %v2613_v25 = vadd.f32 %v590_v17, %v585_v20  ;;  %v2317_v26 = vpop.f32.mrb[3].mxu1 }
  0xea   : > { %v592_v27 = vpack.c.bf16 %v2613_v25, %v2613_v25 }
  0xec   : > { %2420 = vmatprep.subr.msk.bf16.mxu0 %vm631_vm5, %v592_v27  ;;  %2421 = vmatprep.subr.msk.bf16.mxu1 %vm631_vm5, %v592_v27  ;;  %v639_v28 = vsel %vm631_vm5, %v592_v27, 0 }
  0xed   : > { %2319 = vmatpush3.bf16.xpose.msra.mxu0 %v639_v28  ;;  %2325 = vmatpush3.bf16.xpose.msra.mxu1 %v639_v28 }
  0xee   : > { %2422 = vmatprep.subr.msk.bf16.mxu0 %vm631_vm5, %v592_v27  ;;  %2336 = vmatprep.subr.mxu1 %v2481_v1 }
  0xf4   : > { %2321 = vmatmul.mubr.msk.bf16.vlgmr.msra.gmra.mrb[4].mxu0 %vm631_vm5, %v2438_v29  ;;  %2327 = vmatmul.mubr.msk.bf16.vlgmr.msra.gmra.mrb[4].mxu1 %vm631_vm5, %v2440_v30  ;;  %v2225_v30 = vld [vmem:[%s2833_s5 + $0x34] sm:$0xf] }
  0xf5   : > { %2331 = vmatpush3.bf16.xpose.msra.mxu0 %v639_v28  ;;  %2338 = vmatprep.mubr.msk.f32.mxu1 %vm2483_vm2, %v2481_v1  ;;  %v2221_v28 = vld [vmem:[%s2833_s5 + $0x30] sm:$0xf] }
  0xf6   : > { %2346 = vmatprep.subr.mxu0 %v2481_v1  ;;  %2332 = vmatprep.mubr.msk.bf16.mxu0 %vm631_vm5, %v2441_v31  ;;  %v1323_v29 = vsel %vm1275_vm7, %v2221_v28, 0  ;;  %v1277_v31 = vsel %vm1275_vm7, %v2225_v30, 0 }
  0xfc   : > { %2333 = vmatmul.mubr.msk.bf16.vlgmr.msra.gmra.mrb[8].mxu0 %vm631_vm5, %v2442_v32 }
  0xfd   : > { %2348 = vmatprep.mubr.msk.f32.mxu0 %vm2483_vm2, %v2481_v1 }
 0x1c7   : > { %v2643_v37 = vpop.f32.mrb[4].mxu0  ;;  %v2645_v38 = vpop.f32.mrb[4].mxu1 }
 0x1c8   : > { %v675_v39 = vpop.f32.mrb[5].mxu0  ;;  %v770_v40 = vpop.f32.mrb[5].mxu1 }
 0x1c9   : > { %v676_v41 = vadd.f32 %v675_v39, %v604_v33  ;;  %v2647_v42 = vpop.f32.mrb[6].mxu0  ;;  %v771_v43 = vadd.f32 %v770_v40, %v703_v34  ;;  %v2649_v44 = vpop.f32.mrb[6].mxu1 }
 0x1ca   : > { %v678_v45 = vpop.f32.mrb[7].mxu0  ;;  %v773_v46 = vpop.f32.mrb[7].mxu1 }
 0x1cb   : > { %v679_v47 = vadd.f32 %v678_v45, %v609_v35  ;;  %880 = vxpose.xlu0.b32.start.end [1/1] (short) (narrow) %v676_v41, 8  ;;  %v774_v48 = vadd.f32 %v773_v46, %v708_v36  ;;  %2337 = vmatpush3.msra.mxu1 %v771_v43 }
 0x1cc   : > { %2341 = vmatprep.subr.mxu1 %v2481_v1 }
 0x1cd   : > { %1077 = vxpose.xlu1.b32.start.end [1/1] (short) (narrow) %v679_v47, 8  ;;  %2347 = vmatpush3.msra.mxu0 %v774_v48 }
 0x1ce   : > { %2356 = vmatprep.subr.bf16.mxu0 %v2481_v1 }
 0x1cf   : > { %v2653_v49 = vpop.f32.mrb[8].mxu0 }
 0x1d0   : > { %v865_v50 = vpop.f32.mrb[9].mxu0 }
 0x1d1   : > { %v2655_v51 = vpop.f32.mrb[10].mxu0 }
 0x1d2   : > { %v868_v52 = vpop.f32.mrb[11].mxu0 }
 0x24b   : > { %v896_v53 = vpop.trf.xlu0 }
 0x24c   : > { %2339 = vmatmul.mubr.msk.f32.vlgmr.msra.gmra.mrb[8].mxu1 %vm912_vm6, %v896_v53 }
 0x24d   : > { %v1093_v54 = vpop.trf.xlu1  ;;  %2343 = vmatprep.mubr.msk.f32.mxu1 %vm2483_vm2, %v2481_v1 }
 0x24e   : > { %2349 = vmatmul.mubr.msk.f32.vlgmr.msra.gmra.mrb[12].mxu0 %vm912_vm6, %v1093_v54 }
 0x24f   : > { %2358 = vmatprep.mubr.msk.bf16.mxu0 %vm2483_vm2, %v2481_v1  ;;  %2357 = vmatpush3.bf16.msra.mxu0 %v1277_v31 }
 0x250   : > { %2368 = vmatprep.subr.mxu0 %v2481_v1 }
 0x31f   : > { %v982_v55 = vpop.f32.mrb[8].mxu1 }
 0x320   : > { %v986_v56 = vmul.f32 0.35355338, %v982_v55  ;;  %v2340_v57 = vpop.f32.mrb[9].mxu1 }
 0x321   : > { %v1178_v58 = vpop.f32.mrb[12].mxu0 }
 0x322   : > { %v1182_v59 = vmul.f32 0.35355338, %v1178_v58  ;;  %v2350_v60 = vpop.f32.mrb[13].mxu0  ;;  %v987_v61 = vsel %vm912_vm6, %v986_v56, -inf  ;;  %v2212_v58 = vld [vmem:[%s2834_s6 + $0x50] sm:$0xff] }
 0x323   : > { %988 = vmax.xlane.f32.xlu0 %v987_v61 }
 0x324   : > { %v1183_v62 = vsel %vm912_vm6, %v1182_v59, -inf }
 0x325   : > { %1184 = vmax.xlane.f32.xlu1 %v1183_v62 }
 0x336   : > { %797 = vperm.xlu1 %2435, %v2210_v63  }
 0x33a   : > { %613 = vperm.xlu1 %2435, %v599_v0  }
 0x33e   : > { %712 = vperm.xlu1 %2435, %v2200_v2  }
 0x3b0   : > { %v989_v3 = vpop.xlane.xlu0 %988 }
 0x3b1   : > { %v990_v4 = vsub.f32 %v986_v56, %v989_v3  ;;  %v2201_v3 = vld [vmem:[%s2834_s6 + $0x38] sm:$0xff] }
 0x3b2   : > { %v1185_v5 = vpop.xlane.xlu1 %1184 }
 0x3b3   : > { %v991_v6 = vmul.f32 1.442695, %v990_v4  ;;  %v1186_v7 = vsub.f32 %v1182_v59, %v1185_v5 }
 0x3b5   : > { %2449 = vpow2.f32 %v991_v6  ;;  %v1187_v8 = vmul.f32 1.442695, %v1186_v7 }
 0x3b6   : > { %v798_v9 = vpop.permute.xlu1 %797 }
 0x3b7   : > { %2451 = vpow2.f32 %v1187_v8  ;;  %v866_v10 = vadd.f32 %v865_v50, %v798_v9 }
 0x3b9   : > { %2342 = vmatpush3.xpose.msk.msra.mxu1 %vm912_vm6, %v866_v10 }
 0x3ba   : > { %2351 = vmatprep.subr.mxu1 %v2481_v1  ;;  %v614_v16 = vpop.permute.xlu1 %613 }
 0x3bb   : > { %v684_v17 = vadd.f32 %v2643_v37, %v614_v16 }
 0x3be   : > { %v713_v35 = vpop.permute.xlu1 %712 }
 0x3bf   : > { %v2450_v11 = vpop.eup %2449  ;;  %v779_v40 = vadd.f32 %v2645_v38, %v713_v35 }
 0x3c0   : > { %v993_v12 = vsel %vm912_vm6, %v2450_v11, 0.0 }
 0x3c1   : > { %v2452_v13 = vpop.eup %2451  ;;  %994 = vadd.xlane.f32.xlu0 %v993_v12 }
 0x3c2   : > { %v1189_v14 = vsel %vm912_vm6, %v2452_v13, 0.0 }
 0x3c5   : > { %1190 = vadd.xlane.f32.xlu0 %v1189_v14 }
 0x3db   : > { %802 = vperm.xlu0 %2434, %v2211_v15  }
 0x3f9   : > { %1365 = vxpose.xlu0.b32.start.end [1/1] (short) (narrow) %v684_v17, 8 }
 0x422   : > { %618 = vperm.xlu0 %2434, %v600_v18  }
 0x44e   : > { %v995_v19 = vpop.xlane.xlu0 %994 }
 0x44f   : > { %2453 = vrcp.f32 %v995_v19 }
 0x452   : > { %v1191_v20 = vpop.xlane.xlu0 %1190 }
 0x453   : > { %2455 = vrcp.f32 %v1191_v20 }
 0x459   : > { %v2454_v21 = vpop.eup %2453 }
 0x45a   : > { %v997_v22 = vmul.f32 %v2454_v21, %v2450_v11  ;;  %v803_v23 = vpop.permute.xlu0 %802 }
 0x45b   : > { %v869_v24 = vadd.f32 %v868_v52, %v803_v23 }
 0x45c   : > { %2344 = vmatmul.mubr.msk.f32.vlgmr.msra.gmra.mrb[10].mxu1 %vm912_vm6, %v997_v22 }
 0x45d   : > { %v2456_v26 = vpop.eup %2455  ;;  %2352 = vmatpush3.xpose.msk.msra.mxu1 %vm912_vm6, %v869_v24  ;;  %2353 = vmatprep.mubr.msk.f32.mxu1 %vm2483_vm2, %v2481_v1 }
 0x45e   : > { %v1193_v27 = vmul.f32 %v2456_v26, %v2452_v13  ;;  %2362 = vmatprep.subr.bf16.mxu1 %v2481_v1 }
 0x460   : > { %2354 = vmatmul.mubr.msk.f32.vlgmr.msra.gmra.mrb[12].mxu1 %vm912_vm6, %v1193_v27 }
 0x461   : > { %2364 = vmatprep.mubr.msk.bf16.mxu1 %vm2483_vm2, %v2481_v1  ;;  %2363 = vmatpush3.bf16.msra.mxu1 %v1323_v29 }
 0x462   : > { %2373 = vmatprep.subr.mxu1 %v2481_v1 }
 0x479   : > { %v1381_v41 = vpop.trf.xlu0 }
 0x4a1   : > { %v619_v4 = vpop.permute.xlu0 %618 }
 0x4a2   : > { %v687_v5 = vadd.f32 %v2647_v42, %v619_v4 }
 0x52f   : > { %v1070_v32 = vpop.f32.mrb[10].mxu1 }
 0x530   : > { %v1074_v33 = vpack.c.bf16 %v1070_v32, %v1070_v32  ;;  %v2345_v34 = vpop.f32.mrb[11].mxu1 }
 0x531   : > { %v2236_v34 = vld [vmem:[%s2833_s5 + $0x3c] sm:$0xf] }
 0x532   : > { %2365 = vmatmul.mubr.msk.bf16.vlgmr.msra.gmra.mrb[16].mxu1 %vm912_vm6, %v1074_v33  ;;  %v1806_v35 = vsel %vm1275_vm7, %v2236_v34, 0 }
 0x533   : > { %v1266_v36 = vpop.f32.mrb[12].mxu1  ;;  %2375 = vmatprep.mubr.msk.f32.mxu1 %vm2483_vm2, %v2481_v1 }
 0x534   : > { %v1270_v37 = vpack.c.bf16 %v1266_v36, %v1266_v36  ;;  %v2355_v39 = vpop.f32.mrb[13].mxu1 }
 0x536   : > { %2359 = vmatmul.mubr.msk.bf16.vlgmr.msra.gmra.mrb[16].mxu0 %vm912_vm6, %v1270_v37 }
 0x537   : > { %2369 = vmatpush3.msra.mxu0 %v779_v40  ;;  %2370 = vmatprep.mubr.msk.f32.mxu0 %vm2483_vm2, %v2481_v1 }
 0x538   : > { %2378 = vmatprep.subr.bf16.mxu0 %v2481_v1 }
 0x53e   : > { %2371 = vmatmul.mubr.msk.f32.vlgmr.msra.gmra.mrb[14].mxu0 %vm912_vm6, %v1381_v41 }
 0x53f   : > { %2380 = vmatprep.mubr.msk.bf16.mxu0 %vm2483_vm2, %v2481_v1 }
 0x605   : > { %v1359_v43 = vpop.f32.mrb[16].mxu1 }
 0x606   : > { %v2366_v45 = vpop.f32.mrb[17].mxu1 }
 0x607   : > { %v1362_v46 = vpop.f32.mrb[18].mxu1 }
 0x608   : > { %v2367_v47 = vpop.f32.mrb[19].mxu1  ;;  %v2238_v46 = vld [vmem:[%s2835_s7] ss:$0 sm:$0xff] }
 0x609   : > { %v1313_v48 = vpop.f32.mrb[16].mxu0 }
 0x60a   : > { %v2714_v38 = vadd.f32 %v1359_v43, %v1313_v48  ;;  %v2360_v50 = vpop.f32.mrb[17].mxu0 }
 0x60b   : > { %v1316_v52 = vpop.f32.mrb[18].mxu0 }
 0x60c   : > { %v2361_v53 = vpop.f32.mrb[19].mxu0 }
 0x611   : > { %v1466_v54 = vpop.f32.mrb[14].mxu0 }
 0x612   : > { %v1470_v55 = vmul.f32 0.35355338, %v1466_v54  ;;  %v2372_v56 = vpop.f32.mrb[15].mxu0 }
 0x614   : > { %v1471_v57 = vsel %vm912_vm6, %v1470_v55, -inf }
 0x615   : > { %1472 = vmax.xlane.f32.xlu1 %v1471_v57  ;;  %v2443_v57 = vld [vmem:[%s2836_s8] sm:$0xff]  }
 0x626   : > { %807 = vperm.xlu1 %2435, %v2212_v58  }
 0x6a2   : > { %v1473_v59 = vpop.xlane.xlu1 %1472 }
 0x6a3   : > { %v1474_v60 = vsub.f32 %v1470_v55, %v1473_v59 }
 0x6a5   : > { %v1475_v61 = vmul.f32 1.442695, %v1474_v60 }
 0x6a6   : > { %v808_v62 = vpop.permute.xlu1 %807 }
 0x6a7   : > { %2457 = vpow2.f32 %v1475_v61  ;;  %v874_v63 = vadd.f32 %v2653_v49, %v808_v62  ;;  %v2213_v49 = vld [vmem:[%s2834_s6 + $0x58] sm:$0xff]  ;;  %v2239_v62 = vld [vmem:[%s2840_s12] ss:$0 sm:$0xff] }
 0x6a9   : > { %2374 = vmatpush3.xpose.msk.msra.mxu1 %vm912_vm6, %v874_v63 }
 0x6aa   : > { %2384 = vmatprep.subr.mxu1 %v2481_v1 }
 0x6b1   : > { %v2458_v0 = vpop.eup %2457 }
 0x6b2   : > { %v1477_v2 = vsel %vm912_vm6, %v2458_v0, 0.0 }
 0x6b3   : > { %1478 = vadd.xlane.f32.xlu1 %v1477_v2 }
 0x6c4   : > { %717 = vperm.xlu1 %2435, %v2201_v3  }
 0x6ed   : > { %1607 = vxpose.xlu1.b32.start.end [1/1] (short) (narrow) %v687_v5, 8  ;;  %v2445_v5 = vld [vmem:[%s2838_s10] sm:$0xff]  }
 0x70b   : > { %812 = vperm.xlu1 %2435, %v2213_v49   ;;  %v2446_v49 = vld [vmem:[%s2838_s10 + $0x8] sm:$0xff]  }
 0x740   : > { %v1479_v6 = vpop.xlane.xlu1 %1478 }
 0x741   : > { %2459 = vrcp.f32 %v1479_v6  ;;  %v2447_v6 = vld [vmem:[%s2838_s10 + $0x10] sm:$0xff]  }
 0x744   : > { %v718_v7 = vpop.permute.xlu1 %717 }
 0x745   : > { %v782_v10 = vadd.f32 %v2649_v44, %v718_v7  ;;  %v2231_v44 = vld [vmem:[%s2833_s5 + $0x38] sm:$0xf] }
 0x746   : > { %v1564_v13 = vsel %vm1275_vm7, %v2231_v44, 0  ;;  %v2448_v7 = vld [vmem:[%s2838_s10 + $0x18] sm:$0xff]  }
 0x747   : > { %2379 = vmatpush3.bf16.msra.mxu0 %v1564_v13 }
 0x748   : > { %2408 = vmatprep.subr.bf16.mxu0 %v2481_v1 }
 0x74b   : > { %v2460_v8 = vpop.eup %2459 }
 0x74c   : > { %v1481_v9 = vmul.f32 %v2460_v8, %v2458_v0  ;;  %v2240_v0 = vld [vmem:[%s2841_s13] ss:$0 sm:$0xff] }
 0x74d   : > { %v2241_v8 = vld [vmem:[%s2837_s9] ss:$0 sm:$0xff] }
 0x74e   : > { %2376 = vmatmul.mubr.msk.f32.vlgmr.msra.gmra.mrb[14].mxu1 %vm912_vm6, %v1481_v9 }
 0x74f   : > { %2385 = vmatpush3.msra.mxu1 %v782_v10  ;;  %2386 = vmatprep.mubr.msk.f32.mxu1 %vm2483_vm2, %v2481_v1 }
 0x750   : > { %2389 = vmatprep.subr.mxu1 %v2481_v1 }
 0x76d   : > { %v1623_v42 = vpop.trf.xlu1 }
 0x76e   : > { %2387 = vmatmul.mubr.msk.f32.vlgmr.msra.gmra.mrb[20].mxu1 %vm912_vm6, %v1623_v42 }
 0x76f   : > { %2391 = vmatprep.mubr.msk.f32.mxu1 %vm2483_vm2, %v2481_v1 }
 0x78a   : > { %v813_v11 = vpop.permute.xlu1 %812 }
 0x78b   : > { %v877_v12 = vadd.f32 %v2655_v51, %v813_v11 }
 0x78d   : > { %2390 = vmatpush3.xpose.msk.msra.mxu1 %vm912_vm6, %v877_v12 }
 0x78e   : > { %2394 = vmatprep.subr.bf16.mxu1 %v2481_v1 }
 0x821   : > { %v1554_v14 = vpop.f32.mrb[14].mxu1 }
 0x822   : > { %v1558_v15 = vpack.c.bf16 %v1554_v14, %v1554_v14  ;;  %v2377_v16 = vpop.f32.mrb[15].mxu1 }
 0x824   : > { %2381 = vmatmul.mubr.msk.bf16.vlgmr.msra.gmra.mrb[20].mxu0 %vm912_vm6, %v1558_v15 }
 0x825   : > { %2416 = vmatprep.mubr.msk.bf16.mxu0 %vm2483_vm2, %v2481_v1  ;;  %2409 = vmatpush3.bf16.msra.mxu0 %v2445_v5 }
 0x826   : > { %2410 = vmatprep.subr.bf16.mxu0 %v2481_v1 }
 0x829   : > { %2411 = vmatpush3.bf16.msra.mxu0 %v2446_v49 }
 0x82a   : > { %2412 = vmatprep.subr.bf16.mxu0 %v2481_v1 }
 0x82d   : > { %2413 = vmatpush3.bf16.msra.mxu0 %v2447_v6 }
 0x82e   : > { %2414 = vmatprep.subr.bf16.mxu0 %v2481_v1 }
 0x831   : > { %2415 = vmatpush3.bf16.msra.mxu0 %v2448_v7 }
 0x841   : > { %v1708_v51 = vpop.f32.mrb[20].mxu1 }
 0x842   : > { %v1712_v17 = vmul.f32 0.35355338, %v1708_v51  ;;  %v2388_v18 = vpop.f32.mrb[21].mxu1 }
 0x844   : > { %v1713_v19 = vsel %vm912_vm6, %v1712_v17, -inf }
 0x845   : > { %1714 = vmax.xlane.f32.xlu0 %v1713_v19 }
 0x8d2   : > { %v1715_v20 = vpop.xlane.xlu0 %1714 }
 0x8d3   : > { %v1716_v21 = vsub.f32 %v1712_v17, %v1715_v20  ;;  %v2245_v20 = vld [vmem:[%s2839_s11] ss:$0 sm:$0xff] }
 0x8d5   : > { %v1717_v22 = vmul.f32 1.442695, %v1716_v21 }
 0x8d7   : > { %2461 = vpow2.f32 %v1717_v22 }
 0x8e1   : > { %v2462_v23 = vpop.eup %2461 }
 0x8e2   : > { %v1719_v24 = vsel %vm912_vm6, %v2462_v23, 0.0 }
 0x8e3   : > { %1720 = vadd.xlane.f32.xlu0 %v1719_v24 }
 0x8f7   : > { %v1600_v26 = vpop.f32.mrb[20].mxu0 }
 0x8f8   : > { %v1606_v27 = vadd.f32 %v1600_v26, %v2714_v38  ;;  %v2382_v28 = vpop.f32.mrb[21].mxu0 }
 0x8f9   : > { %v1603_v29 = vpop.f32.mrb[22].mxu0 }
 0x8fa   : > { %v2383_v30 = vpop.f32.mrb[23].mxu0 }
 0x970   : > { %v1721_v31 = vpop.xlane.xlu0 %1720 }
 0x971   : > { %2463 = vrcp.f32 %v1721_v31 }
 0x97b   : > { %v2464_v32 = vpop.eup %2463 }
 0x97c   : > { %v1723_v33 = vmul.f32 %v2464_v32, %v2462_v23 }
 0x97e   : > { %2392 = vmatmul.mubr.msk.f32.vlgmr.msra.gmra.mrb[22].mxu1 %vm912_vm6, %v1723_v33 }
 0x97f   : > { %2396 = vmatprep.mubr.msk.bf16.mxu1 %vm2483_vm2, %v2481_v1  ;;  %2395 = vmatpush3.bf16.msra.mxu1 %v1806_v35 }
 0x980   : > { %2400 = vmatprep.subr.bf16.mxu1 %v2481_v1 }
 0xa51   : > { %v1796_v36 = vpop.f32.mrb[22].mxu1 }
 0xa52   : > { %v1800_v37 = vpack.c.bf16 %v1796_v36, %v1796_v36  ;;  %v2393_v39 = vpop.f32.mrb[23].mxu1 }
 0xa53   : > { %v2253_v39 = vld [vmem:[%s2840_s12 + $0x1] ss:$0 sm:$0xff] }
 0xa54   : > { %2397 = vmatmul.mubr.msk.bf16.vlgmr.msra.gmra.mrb[24].mxu1 %vm912_vm6, %v1800_v37 }
 0xa55   : > { %2404 = vmatprep.mubr.msk.bf16.mxu1 %vm2483_vm2, %v2481_v1  ;;  %2401 = vmatpush3.bf16.msra.mxu1 %v2443_v57  ;;  %v2257_v57 = vld [vmem:[%s2840_s12 + $0x2] ss:$0 sm:$0xff] }
 0xa56   : > { %2402 = vmatprep.subr.bf16.mxu1 %v2481_v1 }
 0xb27   : > { %v1842_v40 = vpop.f32.mrb[24].mxu1 }
 0xb28   : > { %v1848_v41 = vadd.f32 %v1842_v40, %v1606_v27  ;;  %v2398_v43 = vpop.f32.mrb[25].mxu1 }
 0xb29   : > { %v1845_v45 = vpop.f32.mrb[26].mxu1 }
 0xb2a   : > { %v1849_v47 = vadd.f32 %v1848_v41, %v2613_v25  ;;  %v2399_v48 = vpop.f32.mrb[27].mxu1  ;;  %v2444_v25 = vld [vmem:[%s2836_s8 + $0x8] sm:$0xff]   ;;  %v2254_v41 = vld [vmem:[%s2841_s13 + $0x1] ss:$0 sm:$0xff] }
 0xb2b   : > { %2403 = vmatpush3.bf16.msra.mxu1 %v2444_v25 }
 0xb2c   : > { %v1857_v38 = vadd.f32 %v2238_v46, %v1849_v47 }
 0xb2e   : > { %v1860_v50 = vsel %vm631_vm5, %v1857_v38, 0.0 }
 0xb2f   : > { %1861 = vadd.xlane.f32.xlu0 %v1860_v50 }
 0xbbc   : > { %v1862_v52 = vpop.xlane.xlu0 %1861 }
 0xbbd   : > { %v1864_v53 = vmul.f32 0.03125, %v1862_v52 }
 0xbbf   : > { %v1865_v54 = vsub.f32 %v1857_v38, %v1864_v53 }
 0xbc1   : > { %v1866_v55 = vmul.f32 %v1865_v54, %v1865_v54 }
 0xbc3   : > { %v1867_v56 = vsel %vm631_vm5, %v1866_v55, 0.0 }
 0xbc4   : > { %1868 = vadd.xlane.f32.xlu0 %v1867_v56 }
 0xc51   : > { %v1869_v58 = vpop.xlane.xlu0 %1868 }
 0xc52   : > { %v1870_v59 = vmul.f32 0.03125, %v1869_v58  ;;  %v2258_v58 = vld [vmem:[%s2841_s13 + $0x2] ss:$0 sm:$0xff] }
 0xc54   : > { %v1871_v60 = vadd.f32 1e-05, %v1870_v59 }
 0xc56   : > { %2465 = vrsqrt.f32 %v1871_v60 }
 0xc60   : > { %v2466_v61 = vpop.eup %2465 }
 0xc61   : > { %v1873_v63 = vmul.f32 %v2466_v61, %v1865_v54 }
 0xc63   : > { %v1880_v2 = vmul.f32 %v2239_v62, %v1873_v63 }
 0xc65   : > { %v1887_v3 = vadd.f32 %v2240_v0, %v1880_v2 }
 0xc67   : > { %v1888_v4 = vpack.c.bf16 %v1887_v3, %v1887_v3 }
 0xc69   : > { %2405 = vmatmul.mubr.msk.bf16.vlgmr.msra.gmra.mrb[28].mxu1 %vm631_vm5, %v1888_v4 }
 0xd3c   : > { %v1958_v9 = vpop.f32.mrb[28].mxu1 }
 0xd3d   : > { %v1959_v10 = vadd.f32 %v2241_v8, %v1958_v9  ;;  %v2406_v42 = vpop.f32.mrb[29].mxu1 }
 0xd3e   : > { %v1961_v11 = vpop.f32.mrb[30].mxu1 }
 0xd3f   : > { %v1964_v12 = vmul.f32 %v1959_v10, %v1959_v10  ;;  %v2407_v44 = vpop.f32.mrb[31].mxu1 }
 0xd41   : > { %v1965_v13 = vmul.f32 %v1964_v12, %v1959_v10 }
 0xd43   : > { %v1966_v14 = vmul.f32 0.044715, %v1965_v13 }
 0xd45   : > { %v1967_v15 = vadd.f32 %v1966_v14, %v1959_v10 }
 0xd47   : > { %v1968_v16 = vmul.f32 0.7978846, %v1967_v15 }
 0xd49   : > { %2467 = vtanh.f32 %v1968_v16 }
 0xd53   : > { %v2468_v1 = vpop.eup %2467 }
 0xd54   : > { %v1970_v51 = vadd.f32 1.0, %v2468_v1 }
 0xd56   : > { %v1971_v17 = vmul.f32 0.5, %v1970_v51 }
 0xd58   : > { %v1972_v18 = vmul.f32 %v1971_v17, %v1959_v10 }
 0xd5a   : > { %v1973_v19 = vpack.c.bf16 %v1972_v18, %v1972_v18 }
 0xd5c   : > { %2417 = vmatmul.mubr.msk.bf16.vlgmr.msra.gmra.mrb[24].mxu0 %vm2004_vm8, %v1973_v19 }
 0xe2f   : > { %v2042_v21 = vpop.f32.mrb[24].mxu0 }
 0xe30   : > { %v2043_v22 = vadd.f32 %v2245_v20, %v2042_v21  ;;  %v2418_v23 = vpop.f32.mrb[25].mxu0 }
 0xe31   : > { %v2045_v24 = vpop.f32.mrb[26].mxu0 }
 0xe32   : > { %v2419_v26 = vpop.f32.mrb[27].mxu0  ;;  %v2048_v27 = vadd.f32 %v2043_v22, %v1887_v3 }
 0xe34   : > { %v2053_v28 = vsel %vm631_vm5, %v2048_v27, 0.0 }
 0xe35   : > { %2054 = vadd.xlane.f32.xlu0 %v2053_v28 }
 0xec2   : > { %v2055_v29 = vpop.xlane.xlu0 %2054 }
 0xec3   : > { %v2056_v30 = vmul.f32 0.03125, %v2055_v29 }
 0xec5   : > { %v2057_v31 = vsub.f32 %v2048_v27, %v2056_v30 }
 0xec7   : > { %v2058_v32 = vmul.f32 %v2057_v31, %v2057_v31 }
 0xec9   : > { %v2059_v33 = vsel %vm631_vm5, %v2058_v32, 0.0 }
 0xeca   : > { %2060 = vadd.xlane.f32.xlu0 %v2059_v33 }
 0xf57   : > { %v2061_v34 = vpop.xlane.xlu0 %2060 }
 0xf58   : > { %v2062_v35 = vmul.f32 0.03125, %v2061_v34 }
 0xf5a   : > { %v2063_v36 = vadd.f32 1e-05, %v2062_v35 }
 0xf5c   : > { %2469 = vrsqrt.f32 %v2063_v36 }
 0xf66   : > { %v2470_v37 = vpop.eup %2469 }
 0xf67   : > { %v2065_v40 = vmul.f32 %v2470_v37, %v2057_v31 }
 0xf69   : > { %v2072_v43 = vmul.f32 %v2253_v39, %v2065_v40 }
 0xf6b   : > { %v2079_v45 = vadd.f32 %v2254_v41, %v2072_v43 }
 0xf6d   : > { %v2084_v46 = vsel %vm631_vm5, %v2079_v45, 0.0 }
 0xf6e   : > { %2085 = vadd.xlane.f32.xlu0 %v2084_v46 }
 0xffb   : > { %v2086_v47 = vpop.xlane.xlu0 %2085 }
 0xffc   : > { %v2087_v48 = vmul.f32 0.03125, %v2086_v47 }
 0xffe   : > { %v2088_v38 = vsub.f32 %v2079_v45, %v2087_v48 }
0x1000   : > { %v2089_v50 = vmul.f32 %v2088_v38, %v2088_v38 }
0x1002   : > { %v2090_v52 = vsel %vm631_vm5, %v2089_v50, 0.0 }
0x1003   : > { %2091 = vadd.xlane.f32.xlu0 %v2090_v52 }
0x1090   : > { %v2092_v53 = vpop.xlane.xlu0 %2091 }
0x1091   : > { %v2093_v54 = vmul.f32 0.03125, %v2092_v53 }
0x1093   : > { %v2094_v55 = vadd.f32 1e-05, %v2093_v54 }
0x1095   : > { %2471 = vrsqrt.f32 %v2094_v55 }
0x109f   : > { %v2472_v56 = vpop.eup %2471 }
0x10a0   : > { %v2096_v25 = vmul.f32 %v2472_v56, %v2088_v38 }
0x10a2   : > { %v2103_v59 = vmul.f32 %v2257_v57, %v2096_v25 }
0x10a4   : > { %v2110_v60 = vadd.f32 %v2258_v58, %v2103_v59 }
0x10a6   : > { %v2111_v61 = vpack.c.bf16 %v2110_v60, %v2110_v60 }
0x10a8   : > { %2113 = vst.msk [vmem:[%s479_s20] sm:$0xf] %vm2112_vm9, %v2111_v61 }
0x10a9 PF: > { %s24_s29 = sadd.s32 1, %s2479_s29  }
0x10aa   : > { %p21_p4 = scmp.ge.s32.totalorder %s24_s29, 4  }
0x10ac   :  { %23 = sbr.rel (!%p21_p4) target bundleno = 1 (0x1), region = 118 }

// kernel: wr_xformer_forward.3
= control target key start
LH: loop header
LB: loop body
LE: loop exit
PB: predicated region body
PF: predicated region fallthrough
CT: control target
= control target key end

     0   :  { %s5288_s0 = inlined_call_operand.vmem [shape: bf16[2,16,12], index: 0, kind: input, shape index: {}]   ;;  %s5289_s1 = inlined_call_operand.vmem [shape: bf16[2,16,1], index: 1, kind: input, shape index: {}]   ;;  %s5290_s2 = inlined_call_operand.vmem [shape: bf16[16,32], index: 2, kind: input, shape index: {}]   ;;  %s5291_s3 = inlined_call_operand.vmem [shape: bf16[2,8,32], index: 3, kind: input, shape index: {}]   ;;  %s5292_s4 = inlined_call_operand.vmem [shape: bf16[12,32], index: 4, kind: input, shape index: {}]   ;;  %s5293_s5 = inlined_call_operand.vmem [shape: bf16[1,32], index: 5, kind: input, shape index: {}]   ;;  %s5294_s6 = inlined_call_operand.vmem [shape: bf16[4,32,32], index: 6, kind: input, shape index: {}]   ;;  %s5295_s7 = inlined_call_operand.vmem [shape: f32[3,32,1], index: 7, kind: input, shape index: {}]   ;;  %s5296_s8 = inlined_call_operand.vmem [shape: f32[1,32], index: 8, kind: input, shape index: {}]   ;;  %s5297_s9 = inlined_call_operand.vmem [shape: bf16[4,32,32], index: 9, kind: input, shape index: {}]   ;;  %s5298_s10 = inlined_call_operand.vmem [shape: f32[3,32,1], index: 10, kind: input, shape index: {}]   ;;  %s5299_s11 = inlined_call_operand.vmem [shape: f32[1,32], index: 11, kind: input, shape index: {}]   ;;  %s5300_s12 = inlined_call_operand.vmem [shape: bf16[32,64], index: 12, kind: input, shape index: {}]   ;;  %s5301_s13 = inlined_call_operand.vmem [shape: f32[1,64], index: 13, kind: input, shape index: {}]   ;;  %s5302_s14 = inlined_call_operand.vmem [shape: bf16[64,32], index: 14, kind: input, shape index: {}]   ;;  %s5303_s15 = inlined_call_operand.vmem [shape: f32[1,32], index: 15, kind: input, shape index: {}]   ;;  %s5304_s16 = inlined_call_operand.vmem [shape: f32[4,1,32], index: 16, kind: input, shape index: {}]   ;;  %s5305_s17 = inlined_call_operand.vmem [shape: f32[4,1,32], index: 17, kind: input, shape index: {}]   ;;  %s5306_s18 = inlined_call_operand.vmem [shape: bf16[32,128], index: 18, kind: input, shape index: {}]   ;;  %s5307_s19 = inlined_call_operand.vmem [shape: f32[1,128], index: 19, kind: input, shape index: {}]   ;;  %s5308_s20 = inlined_call_operand.vmem [shape: f32[2,8,128], index: 20, kind: output, shape index: {}]  }
   0x1   :  { %5309 = sst [smem:[#allocation2_spill]] %s5288_s0 }
   0x2   :  { %5310 = sst [smem:[#allocation3_spill]] %s5289_s1  ;;  %s4757_s1 = smov 0  }
   0x3   :  { %5311 = sst [smem:[#allocation4_spill]] %s5290_s2 }
   0x4   :  { %5312 = sst [smem:[#allocation5_spill]] %s5291_s3 }
   0x5   :  { %5313 = sst [smem:[#allocation6_spill]] %s5292_s4 }
   0x6 LB: > { %s4052_s22 = sadd.s32 4294967295, %s4647_s1   ;;  %p4056_p0 = scmp.ge.s32.totalorder %s4647_s1, 1  ;;  %s4647_s1 = sphi %s4757_s1, %s30_s1  }
   0x7   : > { %p581_p1 = scmp.lt.s32.totalorder %s4647_s1, 3 }
   0x9   : > { %p582_p2 = pnand %p4056_p0, %p581_p1 }
   0xa   : > { %v674_v0 = vld [vmem:[%s5293_s5] sm:$0x1] (!%p582_p2)  ;;  %vm684_vm0 = vcmask (!%p582_p2), 1040384   ;;  %vm745_vm1 = vcmask (!%p582_p2), 1045504   ;;  %v4649_v1 = vmov (!%p582_p2), 0.0   ;;  %v4650_v2 = vmov (!%p582_p2), 0  }
   0xb   : > { %585 = sbr.rel (%p582_p2) target bundleno = 7472 (0x1d30), region = 100  ;;  %4315 = vmatprep.subr.bf16.mxu0 (!%p582_p2), %v4649_v1  ;;  %4321 = vmatprep.subr.bf16.mxu1 (!%p582_p2), %v4649_v1  ;;  %v686_v3 = vsel (!%p582_p2), %vm684_vm0, 65535, %v4650_v2  ;;  %s5314_s3 = sld [smem:[#allocation6_spill]] (!%p582_p2)  ;;  %vm4651_vm2 = vmmov (!%p582_p2), 0   ;;  %vm680_vm3 = vcmask (!%p582_p2), 7168   ;;  %vm741_vm4 = vcmask (!%p582_p2), 97280  }
   0xc   : > { %v688_v4 = vand.u32 (!%p582_p2), %v686_v3, %v674_v0  ;;  %4317 = vmatprep.mubr.msk.bf16.mxu0 (!%p582_p2), %vm4651_vm2, %v4649_v1  ;;  %4323 = vmatprep.mubr.msk.bf16.mxu1 (!%p582_p2), %vm4651_vm2, %v4649_v1  ;;  %p647_p3 = scmp.lt.s32.totalorder (!%p582_p2), %s4052_s22, 1  ;;  %s5315_s4 = sld [smem:[#allocation3_spill]] (!%p582_p2)  ;;  %v4541_v9 = vld [vmem:[%s5294_s6] sm:$0xff] (!%p582_p2)   ;;  %vm834_vm5 = vcmask (!%p582_p2), 261120   ;;  %v4543_v11 = vld [vmem:[%s5294_s6 + $0x10] sm:$0xff] (!%p582_p2)   ;;  %v801_v13 = vld [vmem:[%s5295_s7 + $0x8] sm:$0xff] (!%p582_p2)  ;;  %v1199_v60 = vlaneseq (!%p582_p2) }
   0xd   : > { %4536 = vset.pattern.permute.xlu0 (!%p582_p2), %v4650_v2  ;;  %4537 = vset.pattern.permute.xlu1 (!%p582_p2), %v4650_v2  ;;  %s5316_s21 = sld [smem:[#allocation2_spill]] (!%p582_p2)  ;;  %v800_v10 = vld [vmem:[%s5295_s7] sm:$0xff] (!%p582_p2)  ;;  %v4077_v14 = vld [vmem:[%s5295_s7 + $0x28] sm:$0xff] (!%p582_p2)  ;;  %s5317_s25 = sld [smem:[#allocation4_spill]] (!%p582_p2)  ;;  %v4544_v33 = vld [vmem:[%s5294_s6 + $0x18] sm:$0xff] (!%p582_p2)   ;;  %vm1115_vm6 = vcmask (!%p582_p2), 64512  }
   0xe   : > { %4316 = vmatpush3.bf16.msra.mxu0 (!%p582_p2), %v688_v4  ;;  %806 = vperm.xlu0 (!%p582_p2), %4536, %v800_v10   ;;  %v4076_v12 = vld [vmem:[%s5295_s7 + $0x20] sm:$0xff] (!%p582_p2)  ;;  %v4542_v32 = vld [vmem:[%s5294_s6 + $0x8] sm:$0xff] (!%p582_p2)   ;;  %v4862_v61 = vshrl.u32 (!%p582_p2), %v1199_v60, 7  ;;  %v4867_v63 = vand.u32 (!%p582_p2), 127, %v1199_v60  ;;  %vm1208_vm8 = vcmask (!%p582_p2), 130048   ;;  %vm1546_vm10 = vcmask (!%p582_p2), 1043456  }
   0xf   : > { %905 = vperm.xlu1 (!%p582_p2), %4537, %v4076_v12   ;;  %v4545_v34 = vld [vmem:[%s5294_s6 + $0x20] sm:$0xff] (!%p582_p2)   ;;  %v4546_v35 = vld [vmem:[%s5294_s6 + $0x28] sm:$0xff] (!%p582_p2)   ;;  %vm3800_vm11 = vcmask (!%p582_p2), 523264  }
  0x10   : > { %v4865_v62 = vadd.s32 (!%p582_p2), 8, %v4862_v61  ;;  %vm1204_vm9 = vcmp.gt.s32.totalorder (!%p582_p2), %v4867_v63, %v4862_v61 }
  0x11   : > { %v4538_v5 = vld [vmem:[%s5314_s3] sm:$0x3f] (!%p582_p2)  }
  0x12   : > { %v747_v6 = vsel %vm745_vm1, %v4538_v5, 0  ;;  %s5320_s22 = smov (!%p647_p3, %s4052_s22), 1  ;;  %811 = vperm.xlu0 %4536, %v801_v13   ;;  %vm1205_vm7 = vcmp.gt.s32.totalorder %v4867_v63, %v4865_v62  ;;  %v4091_v63 = vld [vmem:[%s5295_s7 + $0x58] sm:$0xff] }
  0x13   : > { %4322 = vmatpush3.bf16.msra.mxu1 %v747_v6  ;;  %s4780_s26 = sshll.u32 %s5320_s22, 3  ;;  %910 = vperm.xlu1 %4537, %v4077_v14   ;;  %v4215_v15 = vld [vmem:[%s5317_s25] sm:$0xff]   ;;  %s5318_s25 = sld [smem:[#allocation5_spill]] }
  0x14   : > { %s656_s29 = scalar_lea.vmem %s5315_s4, %s4780_s26  ;;  %s651_s23 = scalar_lea.vmem %s5316_s21, %s4780_s26  ;;  %v4216_v19 = vunpack.c.l.bf16 %v4215_v15  ;;  %v4217_v23 = vunpack.c.h.bf16 %v4215_v15 }
  0x15   : > { %v4539_v7 = vld [vmem:[%s656_s29] sm:$0xff]   ;;  %s664_s2 = scalar_lea.vmem %s5308_s20, %s4780_s26 }
  0x16   : > { %v4540_v8 = vld [vmem:[%s651_s23] sm:$0xff]   ;;  %4318 = vmatmul.mubr.msk.bf16.vlgmr.msra.gmra.mrb[0].mxu0 %vm680_vm3, %v4539_v7  ;;  %s4061_s23 = sshll.u32 %s5320_s22, 2 }
  0x17   : > { %4324 = vmatmul.mubr.msk.bf16.vlgmr.msra.gmra.mrb[0].mxu1 %vm741_vm4, %v4540_v8  ;;  %4329 = vmatprep.mubr.msk.bf16.mxu0 %vm834_vm5, %v4541_v9 }
  0x18   : > { %4335 = vmatprep.mubr.msk.bf16.mxu1 %vm834_vm5, %v4543_v11 }
  0x19   : > { %s660_s3 = scalar_lea.vmem %s5318_s25, %s4061_s23 }
  0x8d   : > { %v807_v36 = vpop.permute.xlu0 %806 }
  0x8e   : > { %v906_v37 = vpop.permute.xlu1 %905 }
  0x91   : > { %v812_v38 = vpop.permute.xlu0 %811 }
  0x92   : > { %v911_v39 = vpop.permute.xlu1 %910 }
  0xe9   : > { %v724_v16 = vpop.f32.mrb[0].mxu0 }
  0xea   : > { %v783_v17 = vpop.f32.mrb[0].mxu1  ;;  %v4319_v18 = vpop.f32.mrb[1].mxu0 }
  0xeb   : > { %v784_v20 = vadd.f32 %v783_v17, %v724_v16  ;;  %v4325_v21 = vpop.f32.mrb[1].mxu1  ;;  %v727_v22 = vpop.f32.mrb[2].mxu0 }
  0xec   : > { %v786_v24 = vpop.f32.mrb[2].mxu1  ;;  %v4320_v25 = vpop.f32.mrb[3].mxu0 }
  0xed   : > { %v787_v26 = vadd.f32 %v786_v24, %v727_v22  ;;  %v4326_v27 = vpop.f32.mrb[3].mxu1  ;;  %v4813_v28 = vadd.f32 %v4216_v19, %v784_v20 }
  0xef   : > { %v4815_v29 = vadd.f32 %v4217_v23, %v787_v26 }
  0xf1   : > { %v794_v30 = vpack.c.bf16 %v4815_v29, %v4813_v28 }
  0xf3   : > { %4519 = vmatprep.subr.msk.bf16.mxu0 %vm834_vm5, %v794_v30  ;;  %4520 = vmatprep.subr.msk.bf16.mxu1 %vm834_vm5, %v794_v30  ;;  %v842_v31 = vsel %vm834_vm5, %v794_v30, 0 }
  0xf4   : > { %4328 = vmatpush3.bf16.xpose.msra.mxu0 %v842_v31  ;;  %4334 = vmatpush3.bf16.xpose.msra.mxu1 %v842_v31 }
  0xf5   : > { %4521 = vmatprep.subr.msk.bf16.mxu0 %vm834_vm5, %v794_v30 }
  0xfb   : > { %4330 = vmatmul.mubr.msk.bf16.vlgmr.msra.gmra.mrb[4].mxu0 %vm834_vm5, %v4542_v32  ;;  %4336 = vmatmul.mubr.msk.bf16.vlgmr.msra.gmra.mrb[4].mxu1 %vm834_vm5, %v4544_v33 }
  0xfc   : > { %4340 = vmatpush3.bf16.xpose.msra.mxu0 %v842_v31  ;;  %4341 = vmatprep.mubr.msk.bf16.mxu0 %vm834_vm5, %v4545_v34 }
 0x103   : > { %4342 = vmatmul.mubr.msk.bf16.vlgmr.msra.gmra.mrb[8].mxu0 %vm834_vm5, %v4546_v35 }
 0x1ce   : > { %v4839_v40 = vpop.f32.mrb[4].mxu0  ;;  %v4841_v41 = vpop.f32.mrb[4].mxu1 }
 0x1cf   : > { %v878_v42 = vpop.f32.mrb[5].mxu0  ;;  %v973_v43 = vpop.f32.mrb[5].mxu1 }
 0x1d0   : > { %v879_v44 = vadd.f32 %v878_v42, %v807_v36  ;;  %v4843_v45 = vpop.f32.mrb[6].mxu0  ;;  %v974_v46 = vadd.f32 %v973_v43, %v906_v37  ;;  %v4845_v47 = vpop.f32.mrb[6].mxu1  ;;  %v802_v42 = vld [vmem:[%s5295_s7 + $0x10] sm:$0xff] }
 0x1d1   : > { %v881_v48 = vpop.f32.mrb[7].mxu0  ;;  %v976_v49 = vpop.f32.mrb[7].mxu1  ;;  %v4078_v43 = vld [vmem:[%s5295_s7 + $0x30] sm:$0xff] }
 0x1d2   : > { %v882_v50 = vadd.f32 %v881_v48, %v812_v38  ;;  %1083 = vxpose.xlu0.b32.start.end [1/1] (short) (narrow) %v879_v44, 16  ;;  %v977_v51 = vadd.f32 %v976_v49, %v911_v39  ;;  %4345 = vmatprep.subr.mxu1 %v974_v46  ;;  %v4088_v39 = vld [vmem:[%s5295_s7 + $0x40] sm:$0xff]  ;;  %v4089_v44 = vld [vmem:[%s5295_s7 + $0x48] sm:$0xff] }
 0x1d3   : > { %4346 = vmatpush3.msra.mxu1 %v974_v46  ;;  %v4107_v46 = vld [vmem:[%s5294_s6 + $0x34] sm:$0xf] }
 0x1d4   : > { %1318 = vxpose.xlu1.b32.start.end [1/1] (short) (narrow) %v882_v50, 16  ;;  %4355 = vmatprep.subr.mxu0 %v977_v51  ;;  %v1548_v48 = vsel %vm1546_vm10, %v4107_v46, 0 }
 0x1d5   : > { %4356 = vmatpush3.msra.mxu0 %v977_v51 }
 0x1d6   : > { %4365 = vmatprep.subr.bf16.mxu0 %v4649_v1  ;;  %v4848_v52 = vpop.f32.mrb[8].mxu0 }
 0x1d7   : > { %v4850_v53 = vpop.f32.mrb[9].mxu0 }
 0x1d8   : > { %v4852_v54 = vpop.f32.mrb[10].mxu0 }
 0x1d9   : > { %v4854_v55 = vpop.f32.mrb[11].mxu0 }
 0x252   : > { %v1099_v56 = vpop.trf.xlu0 }
 0x253   : > { %4347 = vmatprep.mubr.msk.f32.mxu1 %vm1115_vm6, %v1099_v56 }
 0x254   : > { %v1334_v57 = vpop.trf.xlu1 }
 0x255   : > { %4357 = vmatprep.mubr.msk.f32.mxu0 %vm1115_vm6, %v1334_v57 }
 0x256   : > { %v1100_v58 = vpop.trf.xlu0 }
 0x257   : > { %4348 = vmatmul.mubr.msk.f32.vlgmr.msra.gmra.mrb[8].mxu1 %vm1115_vm6, %v1100_v58 }
 0x258   : > { %v1335_v59 = vpop.trf.xlu1 }
 0x259   : > { %4358 = vmatmul.mubr.msk.f32.vlgmr.msra.gmra.mrb[12].mxu0 %vm1115_vm6, %v1335_v59 }
 0x25a   : > { %4367 = vmatprep.mubr.msk.bf16.mxu0 %vm4651_vm2, %v4649_v1  ;;  %4366 = vmatpush3.bf16.msra.mxu0 %v1548_v48 }
 0x32a   : > { %v4349_v0 = vpop.f32.mrb[8].mxu1 }
 0x32b   : > { %v1198_v2 = vmul.f32 0.35355338, %v4349_v0  ;;  %v1188_v3 = vpop.f32.mrb[9].mxu1 }
 0x32c   : > { %v1197_v4 = vmul.f32 0.35355338, %v1188_v3  ;;  %v4359_v5 = vpop.f32.mrb[12].mxu0 }
 0x32d   : > { %v1422_v6 = vpop.f32.mrb[13].mxu0  ;;  %v1207_v7 = vsel %vm1205_vm7, -1e+30, %v1198_v2  ;;  %v1432_v12 = vmul.f32 0.35355338, %v4359_v5 }
 0x32e   : > { %v1431_v8 = vmul.f32 0.35355338, %v1422_v6  ;;  %v1212_v9 = vsel %vm1208_vm8, %v1207_v7, -inf  ;;  %v1206_v10 = vsel %vm1204_vm9, -1e+30, %v1197_v4 }
 0x32f   : > { %1213 = vmax.xlane.f32.xlu1 %v1212_v9  ;;  %v1209_v11 = vsel %vm1208_vm8, %v1206_v10, -inf  ;;  %v1434_v15 = vsel %vm1205_vm7, -1e+30, %v1432_v12 }
 0x330   : > { %1210 = vmax.xlane.f32.xlu0 %v1209_v11  ;;  %v1433_v13 = vsel %vm1204_vm9, -1e+30, %v1431_v8  ;;  %v1438_v16 = vsel %vm1208_vm8, %v1434_v15, -inf }
 0x331   : > { %v1435_v14 = vsel %vm1208_vm8, %v1433_v13, -inf }
 0x334   : > { %1436 = vmax.xlane.f32.xlu0 %v1435_v14 }
 0x338   : > { %1439 = vmax.xlane.f32.xlu0 %v1438_v16 }
 0x3bc   : > { %v1214_v17 = vpop.xlane.xlu1 %1213 }
 0x3bd   : > { %v1216_v18 = vsub.f32 %v1207_v7, %v1214_v17  ;;  %v1211_v19 = vpop.xlane.xlu0 %1210 }
 0x3be   : > { %v1215_v20 = vsub.f32 %v1206_v10, %v1211_v19 }
 0x3bf   : > { %v1219_v21 = vmul.f32 1.442695, %v1216_v18 }
 0x3c0   : > { %v1217_v22 = vmul.f32 1.442695, %v1215_v20 }
 0x3c1   : > { %4561 = vpow2.f32 %v1219_v21  ;;  %v1437_v23 = vpop.xlane.xlu0 %1436 }
 0x3c2   : > { %4563 = vpow2.f32 %v1217_v22  ;;  %v1441_v24 = vsub.f32 %v1433_v13, %v1437_v23 }
 0x3c4   : > { %v1443_v25 = vmul.f32 1.442695, %v1441_v24 }
 0x3c5   : > { %v1440_v26 = vpop.xlane.xlu0 %1439 }
 0x3c6   : > { %4565 = vpow2.f32 %v1443_v25  ;;  %v1442_v27 = vsub.f32 %v1434_v15, %v1440_v26 }
 0x3c8   : > { %v1445_v30 = vmul.f32 1.442695, %v1442_v27 }
 0x3ca   : > { %4567 = vpow2.f32 %v1445_v30 }
 0x3cb   : > { %v4562_v31 = vpop.eup %4561 }
 0x3cc   : > { %v4564_v32 = vpop.eup %4563  ;;  %v1224_v33 = vsel %vm1208_vm8, %v4562_v31, 0.0 }
 0x3cd   : > { %1225 = vadd.xlane.f32.xlu0 %v1224_v33  ;;  %v1221_v34 = vsel %vm1208_vm8, %v4564_v32, 0.0 }
 0x3ce   : > { %1222 = vadd.xlane.f32.xlu1 %v1221_v34 }
 0x3d0   : > { %v4566_v35 = vpop.eup %4565 }
 0x3d1   : > { %v1447_v36 = vsel %vm1208_vm8, %v4566_v35, 0.0 }
 0x3d2   : > { %1448 = vadd.xlane.f32.xlu1 %v1447_v36 }
 0x3d4   : > { %v4568_v37 = vpop.eup %4567 }
 0x3d5   : > { %v1450_v38 = vsel %vm1208_vm8, %v4568_v37, 0.0 }
 0x3d6   : > { %1451 = vadd.xlane.f32.xlu0 %v1450_v38 }
 0x3e3   : > { %1000 = vperm.xlu1 %4537, %v4088_v39   ;;  %v803_v39 = vld [vmem:[%s5295_s7 + $0x18] sm:$0xff] }
 0x3e7   : > { %816 = vperm.xlu1 %4537, %v802_v42  }
 0x3eb   : > { %915 = vperm.xlu1 %4537, %v4078_v43  }
 0x3ec   : > { %1005 = vperm.xlu0 %4536, %v4089_v44  }
 0x45a   : > { %v1226_v49 = vpop.xlane.xlu0 %1225 }
 0x45b   : > { %4569 = vrcp.f32 %v1226_v49  ;;  %v1223_v50 = vpop.xlane.xlu1 %1222 }
 0x45c   : > { %4571 = vrcp.f32 %v1223_v50 }
 0x45f   : > { %v1449_v51 = vpop.xlane.xlu1 %1448 }
 0x460   : > { %4573 = vrcp.f32 %v1449_v51 }
 0x463   : > { %v1001_v56 = vpop.permute.xlu1 %1000  ;;  %v1452_v57 = vpop.xlane.xlu0 %1451 }
 0x464   : > { %v1069_v58 = vadd.f32 %v4850_v53, %v1001_v56  ;;  %4575 = vrcp.f32 %v1452_v57 }
 0x465   : > { %v4570_v59 = vpop.eup %4569 }
 0x466   : > { %v4572_v60 = vpop.eup %4571  ;;  %4350 = vmatprep.subr.msk.mxu1 %vm1208_vm8, %v1069_v58  ;;  %v1230_v3 = vmul.f32 %v4570_v59, %v4562_v31  ;;  %v4090_v59 = vld [vmem:[%s5295_s7 + $0x50] sm:$0xff] }
 0x467   : > { %4351 = vmatpush3.xpose.msk.msra.mxu1 %vm1208_vm8, %v1069_v58  ;;  %v817_v0 = vpop.permute.xlu1 %816  ;;  %v1228_v2 = vmul.f32 %v4572_v60, %v4564_v32  ;;  %v4079_v58 = vld [vmem:[%s5295_s7 + $0x38] sm:$0xff] }
 0x468   : > { %v887_v4 = vadd.f32 %v4839_v40, %v817_v0 }
 0x469   : > { %4352 = vmatprep.mubr.msk.f32.mxu1 %vm1208_vm8, %v1228_v2 }
 0x46a   : > { %v4574_v5 = vpop.eup %4573  ;;  %1638 = vxpose.xlu0.b32.start.end [1/1] (short) (narrow) %v887_v4, 16  ;;  %4353 = vmatmul.mubr.msk.f32.vlgmr.msra.gmra.mrb[10].mxu1 %vm1208_vm8, %v1230_v3 }
 0x46b   : > { %v916_v6 = vpop.permute.xlu1 %915  ;;  %v1006_v53 = vpop.permute.xlu0 %1005  ;;  %v1454_v7 = vmul.f32 %v4574_v5, %v4566_v35 }
 0x46c   : > { %v982_v8 = vadd.f32 %v4841_v41, %v916_v6  ;;  %v1072_v9 = vadd.f32 %v4854_v55, %v1006_v53  ;;  %v4101_v41 = vld [vmem:[%s5294_s6 + $0x30] sm:$0xf] }
 0x46d   : > { %4362 = vmatprep.mubr.msk.f32.mxu1 %vm1208_vm8, %v1454_v7  ;;  %v1595_v55 = vsel %vm1546_vm10, %v4101_v41, 0 }
 0x46e   : > { %v4576_v10 = vpop.eup %4575  ;;  %4360 = vmatprep.subr.msk.mxu1 %vm1208_vm8, %v1072_v9  ;;  %4377 = vmatprep.subr.mxu0 %v982_v8 }
 0x46f   : > { %v1456_v40 = vmul.f32 %v4576_v10, %v4568_v37  ;;  %4361 = vmatpush3.xpose.msk.msra.mxu1 %vm1208_vm8, %v1072_v9 }
 0x470   : > { %4371 = vmatprep.subr.bf16.mxu1 %v4649_v1 }
 0x472   : > { %4363 = vmatmul.mubr.msk.f32.vlgmr.msra.gmra.mrb[12].mxu1 %vm1208_vm8, %v1456_v40 }
 0x473   : > { %4373 = vmatprep.mubr.msk.bf16.mxu1 %vm4651_vm2, %v4649_v1  ;;  %4372 = vmatpush3.bf16.msra.mxu1 %v1595_v55 }
 0x4ea   : > { %v1654_v17 = vpop.trf.xlu0 }
 0x4ee   : > { %v1655_v18 = vpop.trf.xlu0 }
 0x53d   : > { %v4354_v11 = vpop.f32.mrb[10].mxu1 }
 0x53e   : > { %v1306_v12 = vpop.f32.mrb[11].mxu1 }
 0x53f   : > { %v1315_v13 = vpack.c.bf16 %v4354_v11, %v1306_v12 }
 0x541   : > { %4374 = vmatmul.mubr.msk.bf16.vlgmr.msra.gmra.mrb[16].mxu1 %vm1115_vm6, %v1315_v13 }
 0x545   : > { %v4364_v14 = vpop.f32.mrb[12].mxu1 }
 0x546   : > { %v1532_v15 = vpop.f32.mrb[13].mxu1 }
 0x547   : > { %v1541_v16 = vpack.c.bf16 %v4364_v14, %v1532_v15 }
 0x549   : > { %4368 = vmatmul.mubr.msk.bf16.vlgmr.msra.gmra.mrb[16].mxu0 %vm1115_vm6, %v1541_v16 }
 0x54a   : > { %4378 = vmatpush3.msra.mxu0 %v982_v8  ;;  %4379 = vmatprep.mubr.msk.f32.mxu0 %vm1115_vm6, %v1654_v17 }
 0x54b   : > { %4387 = vmatprep.subr.bf16.mxu0 %v4649_v1 }
 0x551   : > { %4380 = vmatmul.mubr.msk.f32.vlgmr.msra.gmra.mrb[14].mxu0 %vm1115_vm6, %v1655_v18 }
 0x552   : > { %4389 = vmatprep.mubr.msk.bf16.mxu0 %vm4651_vm2, %v4649_v1 }
 0x614   : > { %v1631_v19 = vpop.f32.mrb[16].mxu1 }
 0x615   : > { %v4375_v20 = vpop.f32.mrb[17].mxu1 }
 0x616   : > { %v1634_v21 = vpop.f32.mrb[18].mxu1 }
 0x617   : > { %v4376_v22 = vpop.f32.mrb[19].mxu1 }
 0x61c   : > { %v1584_v23 = vpop.f32.mrb[16].mxu0 }
 0x61d   : > { %v4935_v24 = vadd.f32 %v1631_v19, %v1584_v23  ;;  %v4369_v25 = vpop.f32.mrb[17].mxu0 }
 0x61e   : > { %v1587_v26 = vpop.f32.mrb[18].mxu0 }
 0x61f   : > { %v4937_v27 = vadd.f32 %v1634_v21, %v1587_v26  ;;  %v4370_v30 = vpop.f32.mrb[19].mxu0 }
 0x624   : > { %v4381_v31 = vpop.f32.mrb[14].mxu0 }
 0x625   : > { %v1752_v32 = vmul.f32 0.35355338, %v4381_v31  ;;  %v1742_v33 = vpop.f32.mrb[15].mxu0 }
 0x626   : > { %v1751_v34 = vmul.f32 0.35355338, %v1742_v33 }
 0x627   : > { %v1754_v35 = vsel %vm1205_vm7, -1e+30, %v1752_v32 }
 0x628   : > { %v1758_v36 = vsel %vm1208_vm8, %v1754_v35, -inf  ;;  %v1753_v37 = vsel %vm1204_vm9, -1e+30, %v1751_v34 }
 0x629   : > { %1759 = vmax.xlane.f32.xlu0 %v1758_v36  ;;  %v1755_v38 = vsel %vm1208_vm8, %v1753_v37, -inf }
 0x62a   : > { %1756 = vmax.xlane.f32.xlu1 %v1755_v38  ;;  %v4122_v38 = vld [vmem:[%s5294_s6 + $0x3c] sm:$0xf] }
 0x63b   : > { %821 = vperm.xlu1 %4537, %v803_v39   ;;  %v2141_v39 = vsel %vm1546_vm10, %v4122_v38, 0 }
 0x6b6   : > { %v1760_v42 = vpop.xlane.xlu0 %1759 }
 0x6b7   : > { %v1762_v43 = vsub.f32 %v1754_v35, %v1760_v42  ;;  %v1757_v44 = vpop.xlane.xlu1 %1756 }
 0x6b8   : > { %v1761_v46 = vsub.f32 %v1753_v37, %v1757_v44 }
 0x6b9   : > { %v1765_v48 = vmul.f32 1.442695, %v1762_v43 }
 0x6ba   : > { %v1763_v49 = vmul.f32 1.442695, %v1761_v46 }
 0x6bb   : > { %4577 = vpow2.f32 %v1765_v48  ;;  %v822_v60 = vpop.permute.xlu1 %821 }
 0x6bc   : > { %4579 = vpow2.f32 %v1763_v49  ;;  %v890_v0 = vadd.f32 %v4843_v45, %v822_v60 }
 0x6c5   : > { %v4578_v50 = vpop.eup %4577 }
 0x6c6   : > { %v4580_v51 = vpop.eup %4579  ;;  %v1770_v56 = vsel %vm1208_vm8, %v4578_v50, 0.0 }
 0x6c7   : > { %1771 = vadd.xlane.f32.xlu0 %v1770_v56  ;;  %v1767_v57 = vsel %vm1208_vm8, %v4580_v51, 0.0  ;;  %v4547_v56 = vld [vmem:[%s5297_s9 + $0x10] sm:$0xff]  }
 0x6c8   : > { %1768 = vadd.xlane.f32.xlu1 %v1767_v57 }
 0x6d9   : > { %920 = vperm.xlu1 %4537, %v4079_v58  }
 0x6dd   : > { %1010 = vperm.xlu0 %4536, %v4090_v59   ;;  %v4548_v59 = vld [vmem:[%s5297_s9 + $0x18] sm:$0xff]  }
 0x6fb   : > { %1912 = vxpose.xlu0.b32.start.end [1/1] (short) (narrow) %v890_v0, 16 }
 0x754   : > { %v1772_v2 = vpop.xlane.xlu0 %1771 }
 0x755   : > { %4581 = vrcp.f32 %v1772_v2  ;;  %v1769_v3 = vpop.xlane.xlu1 %1768 }
 0x756   : > { %4583 = vrcp.f32 %v1769_v3 }
 0x759   : > { %v921_v4 = vpop.permute.xlu1 %920 }
 0x75a   : > { %v985_v7 = vadd.f32 %v4845_v47, %v921_v4  ;;  %v4115_v47 = vld [vmem:[%s5294_s6 + $0x38] sm:$0xf]  ;;  %v4124_v4 = vld [vmem:[%s5296_s8] ss:$0 sm:$0xff] }
 0x75b   : > { %v1867_v40 = vsel %vm1546_vm10, %v4115_v47, 0 }
 0x75c   : > { %v1011_v5 = vpop.permute.xlu0 %1010  ;;  %4388 = vmatpush3.bf16.msra.mxu0 %v1867_v40 }
 0x75d   : > { %v1077_v6 = vadd.f32 %v4848_v52, %v1011_v5  ;;  %4403 = vmatprep.subr.bf16.mxu0 %v4649_v1 }
 0x75f   : > { %v4582_v53 = vpop.eup %4581  ;;  %4382 = vmatprep.subr.msk.mxu1 %vm1208_vm8, %v1077_v6 }
 0x760   : > { %v4584_v8 = vpop.eup %4583  ;;  %4383 = vmatpush3.xpose.msk.msra.mxu1 %vm1208_vm8, %v1077_v6  ;;  %v1776_v45 = vmul.f32 %v4582_v53, %v4578_v50  ;;  %v5003_v50 = vld [vmem:[%s660_s3] sm:$0xf] }
 0x761   : > { %4393 = vmatprep.subr.mxu1 %v985_v7  ;;  %v1774_v9 = vmul.f32 %v4584_v8, %v4580_v51  ;;  %v5012_v58 = vsel %vm834_vm5, %v5003_v50, 0 }
 0x763   : > { %4384 = vmatprep.mubr.msk.f32.mxu1 %vm1208_vm8, %v1774_v9 }
 0x764   : > { %4385 = vmatmul.mubr.msk.f32.vlgmr.msra.gmra.mrb[14].mxu1 %vm1208_vm8, %v1776_v45 }
 0x765   : > { %4394 = vmatpush3.msra.mxu1 %v985_v7 }
 0x77b   : > { %v1928_v10 = vpop.trf.xlu0 }
 0x77c   : > { %4395 = vmatprep.mubr.msk.f32.mxu1 %vm1115_vm6, %v1928_v10 }
 0x77f   : > { %v1929_v52 = vpop.trf.xlu0 }
 0x780   : > { %4396 = vmatmul.mubr.msk.f32.vlgmr.msra.gmra.mrb[20].mxu1 %vm1115_vm6, %v1929_v52  ;;  %v2248_v52 = vld [vmem:[%s5298_s10 + $0x8] sm:$0xff] }
 0x837   : > { %v4386_v41 = vpop.f32.mrb[14].mxu1 }
 0x838   : > { %v1852_v55 = vpop.f32.mrb[15].mxu1 }
 0x839   : > { %v1861_v11 = vpack.c.bf16 %v4386_v41, %v1852_v55 }
 0x83b   : > { %4390 = vmatmul.mubr.msk.bf16.vlgmr.msra.gmra.mrb[20].mxu0 %vm1115_vm6, %v1861_v11 }
 0x83c   : > { %4405 = vmatprep.mubr.msk.bf16.mxu0 %vm4651_vm2, %v4649_v1  ;;  %4404 = vmatpush3.bf16.msra.mxu0 %v2141_v39  ;;  %v4126_v39 = vld [vmem:[%s5305_s17] ss:$0 sm:$0xff] }
 0x83d   : > { %4523 = vmatprep.subr.msk.bf16.mxu0 %vm834_vm5, %v5003_v50 }
 0x853   : > { %v4397_v12 = vpop.f32.mrb[20].mxu1 }
 0x854   : > { %v2026_v13 = vmul.f32 0.35355338, %v4397_v12  ;;  %v2016_v14 = vpop.f32.mrb[21].mxu1 }
 0x855   : > { %v2025_v15 = vmul.f32 0.35355338, %v2016_v14 }
 0x856   : > { %v2028_v16 = vsel %vm1205_vm7, -1e+30, %v2026_v13 }
 0x857   : > { %v2032_v17 = vsel %vm1208_vm8, %v2028_v16, -inf  ;;  %v2027_v18 = vsel %vm1204_vm9, -1e+30, %v2025_v15 }
 0x858   : > { %2033 = vmax.xlane.f32.xlu0 %v2032_v17  ;;  %v2029_v19 = vsel %vm1208_vm8, %v2027_v18, -inf }
 0x859   : > { %2030 = vmax.xlane.f32.xlu1 %v2029_v19 }
 0x8e5   : > { %v2034_v20 = vpop.xlane.xlu0 %2033 }
 0x8e6   : > { %v2036_v21 = vsub.f32 %v2028_v16, %v2034_v20  ;;  %v2031_v22 = vpop.xlane.xlu1 %2030  ;;  %v2247_v20 = vld [vmem:[%s5298_s10] sm:$0xff] }
 0x8e7   : > { %v2035_v23 = vsub.f32 %v2027_v18, %v2031_v22  ;;  %v4549_v22 = vld [vmem:[%s5297_s9] sm:$0xff]  }
 0x8e8   : > { %v2039_v25 = vmul.f32 1.442695, %v2036_v21  ;;  %v4135_v21 = vld [vmem:[%s5298_s10 + $0x20] sm:$0xff] }
 0x8e9   : > { %v2037_v26 = vmul.f32 1.442695, %v2035_v23 }
 0x8ea   : > { %4585 = vpow2.f32 %v2039_v25 }
 0x8eb   : > { %4587 = vpow2.f32 %v2037_v26 }
 0x8f4   : > { %v4586_v62 = vpop.eup %4585 }
 0x8f5   : > { %v2044_v30 = vsel %vm1208_vm8, %v4586_v62, 0.0  ;;  %v4588_v31 = vpop.eup %4587 }
 0x8f6   : > { %2045 = vadd.xlane.f32.xlu1 %v2044_v30  ;;  %v2041_v61 = vsel %vm1208_vm8, %v4588_v31, 0.0 }
 0x8fa   : > { %2042 = vadd.xlane.f32.xlu1 %v2041_v61 }
 0x90b   : > { %1015 = vperm.xlu1 %4537, %v4091_v63  }
 0x90e   : > { %v1903_v32 = vpop.f32.mrb[20].mxu0 }
 0x90f   : > { %v1910_v33 = vadd.f32 %v1903_v32, %v4935_v24  ;;  %v4391_v34 = vpop.f32.mrb[21].mxu0 }
 0x910   : > { %v1906_v35 = vpop.f32.mrb[22].mxu0 }
 0x911   : > { %v1911_v36 = vadd.f32 %v1906_v35, %v4937_v27  ;;  %v4392_v37 = vpop.f32.mrb[23].mxu0  ;;  %v4125_v35 = vld [vmem:[%s5304_s16] ss:$0 sm:$0xff] }
 0x983   : > { %v2046_v42 = vpop.xlane.xlu1 %2045 }
 0x984   : > { %4589 = vrcp.f32 %v2046_v42 }
 0x987   : > { %v2043_v43 = vpop.xlane.xlu1 %2042 }
 0x988   : > { %4591 = vrcp.f32 %v2043_v43 }
 0x98b   : > { %v1016_v44 = vpop.permute.xlu1 %1015 }
 0x98c   : > { %v1080_v24 = vadd.f32 %v4852_v54, %v1016_v44 }
 0x98e   : > { %4398 = vmatprep.subr.msk.mxu1 %vm1208_vm8, %v1080_v24  ;;  %v4590_v27 = vpop.eup %4589 }
 0x98f   : > { %4399 = vmatpush3.xpose.msk.msra.mxu1 %vm1208_vm8, %v1080_v24  ;;  %v2050_v49 = vmul.f32 %v4590_v27, %v4586_v62 }
 0x992   : > { %v4592_v46 = vpop.eup %4591 }
 0x993   : > { %v2048_v48 = vmul.f32 %v4592_v46, %v4588_v31 }
 0x995   : > { %4400 = vmatprep.mubr.msk.f32.mxu1 %vm1208_vm8, %v2048_v48  ;;  %v4550_v48 = vld [vmem:[%s5297_s9 + $0x8] sm:$0xff]  }
 0x996   : > { %4401 = vmatmul.mubr.msk.f32.vlgmr.msra.gmra.mrb[22].mxu1 %vm1208_vm8, %v2050_v49 }
 0x997   : > { %4411 = vmatprep.mubr.msk.bf16.mxu1 %vm834_vm5, %v4549_v22 }
 0xa69   : > { %v4402_v54 = vpop.f32.mrb[22].mxu1 }
 0xa6a   : > { %v2126_v51 = vpop.f32.mrb[23].mxu1 }
 0xa6b   : > { %v2135_v57 = vpack.c.bf16 %v4402_v54, %v2126_v51  ;;  %v4551_v54 = vld [vmem:[%s5297_s9 + $0x20] sm:$0xff]  }
 0xa6d   : > { %4406 = vmatmul.mubr.msk.bf16.vlgmr.msra.gmra.mrb[24].mxu0 %vm1115_vm6, %v2135_v57 }
 0xa6e   : > { %4416 = vmatpush3.bf16.xpose.msra.mxu0 %v5012_v58  ;;  %4417 = vmatprep.mubr.msk.bf16.mxu0 %vm834_vm5, %v4547_v56 }
 0xa75   : > { %4418 = vmatmul.mubr.msk.bf16.vlgmr.msra.gmra.mrb[28].mxu0 %vm834_vm5, %v4548_v59 }
 0xb40   : > { %v2177_v60 = vpop.f32.mrb[24].mxu0 }
 0xb41   : > { %v2184_v0 = vadd.f32 %v2177_v60, %v1910_v33  ;;  %v4407_v2 = vpop.f32.mrb[25].mxu0 }
 0xb42   : > { %v2180_v3 = vpop.f32.mrb[26].mxu0 }
 0xb43   : > { %v2186_v5 = vadd.f32 %v2184_v0, %v4813_v28  ;;  %v2185_v6 = vadd.f32 %v2180_v3, %v1911_v36  ;;  %v4408_v53 = vpop.f32.mrb[27].mxu0  ;;  %v4136_v28 = vld [vmem:[%s5298_s10 + $0x28] sm:$0xff] }
 0xb45   : > { %v2187_v7 = vadd.f32 %v2185_v6, %v4815_v29  ;;  %v2195_v8 = vadd.f32 %v4124_v4, %v2186_v5 }
 0xb47   : > { %v2199_v9 = vsel %vm834_vm5, %v2195_v8, 0.0  ;;  %v2196_v45 = vadd.f32 %v4124_v4, %v2187_v7 }
 0xb48   : > { %2200 = vadd.xlane.f32.xlu1 %v2199_v9  ;;  %v5034_v47 = vpop.f32.mrb[28].mxu0 }
 0xb49   : > { %v2202_v10 = vsel %vm834_vm5, %v2196_v45, 0.0  ;;  %v2422_v29 = vpop.f32.mrb[29].mxu0 }
 0xb4a   : > { %2203 = vadd.xlane.f32.xlu0 %v2202_v10  ;;  %v5036_v40 = vpop.f32.mrb[30].mxu0 }
 0xb4b   : > { %v2425_v41 = vpop.f32.mrb[31].mxu0 }
 0xb59   : > { %2258 = vperm.xlu1 %4537, %v2248_v52  }
 0xb5d   : > { %2356 = vperm.xlu1 %4537, %v4136_v28  }
 0xbd5   : > { %v2201_v55 = vpop.xlane.xlu1 %2200 }
 0xbd6   : > { %v2206_v11 = vmul.f32 0.03125, %v2201_v55 }
 0xbd7   : > { %v2204_v12 = vpop.xlane.xlu0 %2203 }
 0xbd8   : > { %v2208_v13 = vsub.f32 %v2195_v8, %v2206_v11  ;;  %v2207_v14 = vmul.f32 0.03125, %v2204_v12 }
 0xbd9   : > { %v2259_v27 = vpop.permute.xlu1 %2258 }
 0xbda   : > { %v2209_v15 = vsub.f32 %v2196_v45, %v2207_v14  ;;  %v2210_v16 = vmul.f32 %v2208_v13, %v2208_v13 }
 0xbdc   : > { %v2212_v17 = vsel %vm834_vm5, %v2210_v16, 0.0  ;;  %v2211_v18 = vmul.f32 %v2209_v15, %v2209_v15 }
 0xbdd   : > { %2213 = vadd.xlane.f32.xlu0 %v2212_v17  ;;  %v2357_v49 = vpop.permute.xlu1 %2356 }
 0xbde   : > { %v2215_v19 = vsel %vm834_vm5, %v2211_v18, 0.0  ;;  %v2426_v51 = vadd.f32 %v2425_v41, %v2357_v49 }
 0xbe1   : > { %2216 = vadd.xlane.f32.xlu0 %v2215_v19 }
 0xbf7   : > { %2253 = vperm.xlu0 %4536, %v2247_v20  }
 0xbfb   : > { %2351 = vperm.xlu0 %4536, %v4135_v21  }
 0xc6a   : > { %v2214_v23 = vpop.xlane.xlu0 %2213 }
 0xc6b   : > { %v2218_v25 = vmul.f32 0.03125, %v2214_v23 }
 0xc6d   : > { %v2220_v26 = vadd.f32 1e-05, %v2218_v25 }
 0xc6e   : > { %v2217_v62 = vpop.xlane.xlu0 %2216 }
 0xc6f   : > { %4593 = vrsqrt.f32 %v2220_v26  ;;  %v2219_v30 = vmul.f32 0.03125, %v2217_v62 }
 0xc71   : > { %v2221_v31 = vadd.f32 1e-05, %v2219_v30 }
 0xc73   : > { %4595 = vrsqrt.f32 %v2221_v31 }
 0xc76   : > { %v2254_v61 = vpop.permute.xlu0 %2253 }
 0xc79   : > { %v4594_v63 = vpop.eup %4593 }
 0xc7a   : > { %v2224_v32 = vmul.f32 %v4594_v63, %v2208_v13  ;;  %v2352_v33 = vpop.permute.xlu0 %2351 }
 0xc7b   : > { %v2423_v34 = vadd.f32 %v2422_v29, %v2352_v33 }
 0xc7c   : > { %v2232_v38 = vmul.f32 %v4125_v35, %v2224_v32 }
 0xc7d   : > { %v4596_v36 = vpop.eup %4595  ;;  %4427 = vmatprep.subr.mxu0 %v2423_v34 }
 0xc7e   : > { %v2225_v37 = vmul.f32 %v4596_v36, %v2209_v15  ;;  %4428 = vmatpush3.msra.mxu0 %v2423_v34  ;;  %v5056_v43 = vadd.f32 %v4126_v39, %v2232_v38  ;;  %v4147_v36 = vld [vmem:[%s5298_s10 + $0x40] sm:$0xff]  ;;  %v4137_v38 = vld [vmem:[%s5298_s10 + $0x30] sm:$0xff] }
 0xc80   : > { %v2233_v42 = vmul.f32 %v4125_v35, %v2225_v37  ;;  %v2249_v37 = vld [vmem:[%s5298_s10 + $0x10] sm:$0xff] }
 0xc82   : > { %v5058_v44 = vadd.f32 %v4126_v39, %v2233_v42  ;;  %v4148_v39 = vld [vmem:[%s5298_s10 + $0x48] sm:$0xff]  ;;  %v4166_v42 = vld [vmem:[%s5297_s9 + $0x34] sm:$0xf] }
 0xc84   : > { %v2242_v24 = vpack.c.bf16 %v5058_v44, %v5056_v43 }
 0xc86   : > { %4522 = vmatprep.subr.msk.bf16.mxu1 %vm834_vm5, %v2242_v24  ;;  %v2288_v46 = vsel %vm834_vm5, %v2242_v24, 0  ;;  %v2983_v24 = vsel %vm1546_vm10, %v4166_v42, 0 }
 0xc87   : > { %4410 = vmatpush3.bf16.xpose.msra.mxu1 %v2288_v46 }
 0xc88   : > { %4524 = vmatprep.subr.msk.bf16.mxu1 %vm834_vm5, %v5003_v50  ;;  %v4552_v50 = vld [vmem:[%s5297_s9 + $0x28] sm:$0xff]  }
 0xc8e   : > { %4412 = vmatmul.mubr.msk.bf16.vlgmr.msra.gmra.mrb[24].mxu1 %vm834_vm5, %v4550_v48 }
 0xc8f   : > { %4422 = vmatpush3.bf16.xpose.msra.mxu1 %v5012_v58  ;;  %4423 = vmatprep.mubr.msk.bf16.mxu1 %vm834_vm5, %v4551_v54 }
 0xc90   : > { %4437 = vmatprep.subr.mxu1 %v2426_v51 }
 0xc96   : > { %4424 = vmatmul.mubr.msk.bf16.vlgmr.msra.gmra.mrb[28].mxu1 %vm834_vm5, %v4552_v50 }
 0xc97   : > { %4438 = vmatpush3.msra.mxu1 %v2426_v51 }
 0xc98   : > { %4447 = vmatprep.subr.bf16.mxu1 %v4649_v1 }
 0xd61   : > { %v5080_v56 = vpop.f32.mrb[24].mxu1 }
 0xd62   : > { %v2324_v57 = vpop.f32.mrb[25].mxu1 }
 0xd63   : > { %v2325_v59 = vadd.f32 %v2324_v57, %v2254_v61  ;;  %v5082_v60 = vpop.f32.mrb[26].mxu1 }
 0xd64   : > { %v2327_v0 = vpop.f32.mrb[27].mxu1 }
 0xd65   : > { %v2328_v58 = vadd.f32 %v2327_v0, %v2259_v27  ;;  %2532 = vxpose.xlu0.b32.start.end [1/1] (short) (narrow) %v2325_v59, 16 }
 0xd67   : > { %2756 = vxpose.xlu1.b32.start.end [1/1] (short) (narrow) %v2328_v58, 16 }
 0xd69   : > { %v5084_v2 = vpop.f32.mrb[28].mxu1 }
 0xd6a   : > { %v5086_v3 = vpop.f32.mrb[29].mxu1 }
 0xd6b   : > { %v5088_v4 = vpop.f32.mrb[30].mxu1 }
 0xd6c   : > { %v5090_v5 = vpop.f32.mrb[31].mxu1 }
 0xde5   : > { %v2548_v6 = vpop.trf.xlu0 }
 0xde6   : > { %4429 = vmatprep.mubr.msk.f32.mxu0 %vm1115_vm6, %v2548_v6 }
 0xde7   : > { %v2772_v53 = vpop.trf.xlu1 }
 0xde8   : > { %4439 = vmatprep.mubr.msk.f32.mxu1 %vm1115_vm6, %v2772_v53 }
 0xde9   : > { %v2549_v7 = vpop.trf.xlu0 }
 0xdea   : > { %4430 = vmatmul.mubr.msk.f32.vlgmr.msra.gmra.mrb[32].mxu0 %vm1115_vm6, %v2549_v7 }
 0xdeb   : > { %v2773_v8 = vpop.trf.xlu1 }
 0xdec   : > { %4440 = vmatmul.mubr.msk.f32.vlgmr.msra.gmra.mrb[32].mxu1 %vm1115_vm6, %v2773_v8 }
 0xded   : > { %4449 = vmatprep.mubr.msk.bf16.mxu1 %vm4651_vm2, %v4649_v1  ;;  %4448 = vmatpush3.bf16.msra.mxu1 %v2983_v24 }
 0xebd   : > { %v4431_v9 = vpop.f32.mrb[32].mxu0 }
 0xebe   : > { %v2646_v45 = vmul.f32 0.35355338, %v4431_v9  ;;  %v2636_v10 = vpop.f32.mrb[33].mxu0 }
 0xebf   : > { %v2645_v52 = vmul.f32 0.35355338, %v2636_v10  ;;  %v4441_v28 = vpop.f32.mrb[32].mxu1 }
 0xec0   : > { %v2860_v29 = vpop.f32.mrb[33].mxu1  ;;  %v2650_v41 = vsel %vm1115_vm6, %v2646_v45, -inf  ;;  %v2870_v13 = vmul.f32 0.35355338, %v4441_v28 }
 0xec1   : > { %v2869_v55 = vmul.f32 0.35355338, %v2860_v29  ;;  %2651 = vmax.xlane.f32.xlu1 %v2650_v41  ;;  %v2647_v11 = vsel %vm1115_vm6, %v2645_v52, -inf }
 0xec2   : > { %2648 = vmax.xlane.f32.xlu0 %v2647_v11  ;;  %v2874_v14 = vsel %vm1115_vm6, %v2870_v13, -inf }
 0xec3   : > { %v2871_v12 = vsel %vm1115_vm6, %v2869_v55, -inf }
 0xec6   : > { %2872 = vmax.xlane.f32.xlu0 %v2871_v12 }
 0xeca   : > { %2875 = vmax.xlane.f32.xlu0 %v2874_v14 }
 0xf4e   : > { %v2652_v15 = vpop.xlane.xlu1 %2651 }
 0xf4f   : > { %v2654_v16 = vsub.f32 %v2646_v45, %v2652_v15  ;;  %v2649_v17 = vpop.xlane.xlu0 %2648 }
 0xf50   : > { %v2653_v18 = vsub.f32 %v2645_v52, %v2649_v17 }
 0xf51   : > { %v2657_v19 = vmul.f32 1.442695, %v2654_v16 }
 0xf52   : > { %v2655_v20 = vmul.f32 1.442695, %v2653_v18 }
 0xf53   : > { %4597 = vpow2.f32 %v2657_v19  ;;  %v2873_v21 = vpop.xlane.xlu0 %2872 }
 0xf54   : > { %4599 = vpow2.f32 %v2655_v20  ;;  %v2877_v22 = vsub.f32 %v2869_v55, %v2873_v21 }
 0xf56   : > { %v2879_v23 = vmul.f32 1.442695, %v2877_v22 }
 0xf57   : > { %v2876_v25 = vpop.xlane.xlu0 %2875 }
 0xf58   : > { %4601 = vpow2.f32 %v2879_v23  ;;  %v2878_v26 = vsub.f32 %v2870_v13, %v2876_v25 }
 0xf5a   : > { %v2881_v62 = vmul.f32 1.442695, %v2878_v26 }
 0xf5c   : > { %4603 = vpow2.f32 %v2881_v62 }
 0xf5d   : > { %v4598_v30 = vpop.eup %4597 }
 0xf5e   : > { %v4600_v31 = vpop.eup %4599  ;;  %v2662_v61 = vsel %vm1115_vm6, %v4598_v30, 0.0 }
 0xf5f   : > { %2663 = vadd.xlane.f32.xlu0 %v2662_v61  ;;  %v2659_v63 = vsel %vm1115_vm6, %v4600_v31, 0.0 }
 0xf60   : > { %2660 = vadd.xlane.f32.xlu1 %v2659_v63  ;;  %v2250_v63 = vld [vmem:[%s5298_s10 + $0x18] sm:$0xff] }
 0xf62   : > { %v4602_v32 = vpop.eup %4601 }
 0xf63   : > { %v2883_v33 = vsel %vm1115_vm6, %v4602_v32, 0.0 }
 0xf64   : > { %2884 = vadd.xlane.f32.xlu1 %v2883_v33 }
 0xf66   : > { %v4604_v34 = vpop.eup %4603 }
 0xf67   : > { %v2886_v35 = vsel %vm1115_vm6, %v4604_v34, 0.0 }
 0xf68   : > { %2887 = vadd.xlane.f32.xlu0 %v2886_v35 }
 0xf75   : > { %2449 = vperm.xlu1 %4537, %v4147_v36  }
 0xf79   : > { %2263 = vperm.xlu1 %4537, %v2249_v37  }
 0xf7d   : > { %2361 = vperm.xlu1 %4537, %v4137_v38  }
 0xf7e   : > { %2454 = vperm.xlu0 %4536, %v4148_v39  }
 0xfec   : > { %v2664_v27 = vpop.xlane.xlu0 %2663 }
 0xfed   : > { %4605 = vrcp.f32 %v2664_v27  ;;  %v2661_v46 = vpop.xlane.xlu1 %2660  ;;  %v4138_v27 = vld [vmem:[%s5298_s10 + $0x38] sm:$0xff] }
 0xfee   : > { %4607 = vrcp.f32 %v2661_v46  ;;  %v4149_v46 = vld [vmem:[%s5298_s10 + $0x50] sm:$0xff] }
 0xff1   : > { %v2885_v48 = vpop.xlane.xlu1 %2884 }
 0xff2   : > { %4609 = vrcp.f32 %v2885_v48 }
 0xff5   : > { %v2450_v49 = vpop.permute.xlu1 %2449  ;;  %v2888_v54 = vpop.xlane.xlu0 %2887 }
 0xff6   : > { %v2518_v51 = vadd.f32 %v5086_v3, %v2450_v49  ;;  %4611 = vrcp.f32 %v2888_v54 }
 0xff7   : > { %v4606_v50 = vpop.eup %4605 }
 0xff8   : > { %v4608_v57 = vpop.eup %4607  ;;  %4432 = vmatprep.subr.msk.mxu0 %vm1115_vm6, %v2518_v51  ;;  %v2668_v58 = vmul.f32 %v4606_v50, %v4598_v30 }
 0xff9   : > { %4433 = vmatpush3.xpose.msk.msra.mxu0 %vm1115_vm6, %v2518_v51  ;;  %v2264_v59 = vpop.permute.xlu1 %2263  ;;  %v2666_v0 = vmul.f32 %v4608_v57, %v4600_v31 }
 0xffa   : > { %v2333_v6 = vadd.f32 %v5080_v56, %v2264_v59 }
 0xffb   : > { %4434 = vmatprep.mubr.msk.f32.mxu0 %vm1115_vm6, %v2666_v0 }
 0xffc   : > { %v4610_v53 = vpop.eup %4609  ;;  %3073 = vxpose.xlu0.b32.start.end [1/1] (short) (narrow) %v2333_v6, 16  ;;  %4435 = vmatmul.mubr.msk.f32.vlgmr.msra.gmra.mrb[34].mxu0 %vm1115_vm6, %v2668_v58 }
 0xffd   : > { %v2362_v7 = vpop.permute.xlu1 %2361  ;;  %v2455_v3 = vpop.permute.xlu0 %2454  ;;  %v2890_v8 = vmul.f32 %v4610_v53, %v4602_v32 }
 0xffe   : > { %v2431_v9 = vadd.f32 %v5034_v47, %v2362_v7  ;;  %v2521_v45 = vadd.f32 %v5090_v5, %v2455_v3  ;;  %v4160_v47 = vld [vmem:[%s5297_s9 + $0x30] sm:$0xf] }
 0xfff   : > { %4444 = vmatprep.mubr.msk.f32.mxu0 %vm1115_vm6, %v2890_v8  ;;  %v3030_v5 = vsel %vm1546_vm10, %v4160_v47, 0 }
0x1000   : > { %v4612_v10 = vpop.eup %4611  ;;  %4442 = vmatprep.subr.msk.mxu0 %vm1115_vm6, %v2521_v45  ;;  %4459 = vmatprep.subr.mxu1 %v2431_v9 }
0x1001   : > { %v2892_v56 = vmul.f32 %v4612_v10, %v4604_v34  ;;  %4443 = vmatpush3.xpose.msk.msra.mxu0 %vm1115_vm6, %v2521_v45 }
0x1002   : > { %4453 = vmatprep.subr.bf16.mxu0 %v4649_v1 }
0x1004   : > { %4445 = vmatmul.mubr.msk.f32.vlgmr.msra.gmra.mrb[36].mxu0 %vm1115_vm6, %v2892_v56 }
0x1005   : > { %4455 = vmatprep.mubr.msk.bf16.mxu0 %vm4651_vm2, %v4649_v1  ;;  %4454 = vmatpush3.bf16.msra.mxu0 %v3030_v5 }
0x107c   : > { %v3089_v12 = vpop.trf.xlu0 }
0x1080   : > { %v3090_v13 = vpop.trf.xlu0 }
0x10cf   : > { %v4436_v52 = vpop.f32.mrb[34].mxu0 }
0x10d0   : > { %v2744_v28 = vpop.f32.mrb[35].mxu0 }
0x10d1   : > { %v2753_v29 = vpack.c.bf16 %v4436_v52, %v2744_v28 }
0x10d3   : > { %4456 = vmatmul.mubr.msk.bf16.vlgmr.msra.gmra.mrb[40].mxu0 %vm1115_vm6, %v2753_v29 }
0x10d7   : > { %v4446_v41 = vpop.f32.mrb[36].mxu0 }
0x10d8   : > { %v2968_v55 = vpop.f32.mrb[37].mxu0 }
0x10d9   : > { %v2977_v11 = vpack.c.bf16 %v4446_v41, %v2968_v55 }
0x10db   : > { %4450 = vmatmul.mubr.msk.bf16.vlgmr.msra.gmra.mrb[36].mxu1 %vm1115_vm6, %v2977_v11 }
0x10dc   : > { %4460 = vmatpush3.msra.mxu1 %v2431_v9  ;;  %4461 = vmatprep.mubr.msk.f32.mxu1 %vm1115_vm6, %v3089_v12 }
0x10dd   : > { %4469 = vmatprep.subr.bf16.mxu1 %v4649_v1 }
0x10e3   : > { %4462 = vmatmul.mubr.msk.f32.vlgmr.msra.gmra.mrb[34].mxu1 %vm1115_vm6, %v3090_v13 }
0x10e4   : > { %4471 = vmatprep.mubr.msk.bf16.mxu1 %vm4651_vm2, %v4649_v1 }
0x11a6   : > { %v3066_v14 = vpop.f32.mrb[40].mxu0 }
0x11a7   : > { %v4457_v15 = vpop.f32.mrb[41].mxu0 }
0x11a8   : > { %v3069_v16 = vpop.f32.mrb[42].mxu0 }
0x11a9   : > { %v4458_v17 = vpop.f32.mrb[43].mxu0 }
0x11ae   : > { %v3019_v18 = vpop.f32.mrb[36].mxu1 }
0x11af   : > { %v5148_v19 = vadd.f32 %v3066_v14, %v3019_v18  ;;  %v4451_v20 = vpop.f32.mrb[37].mxu1  ;;  %v4150_v18 = vld [vmem:[%s5298_s10 + $0x58] sm:$0xff] }
0x11b0   : > { %v3022_v21 = vpop.f32.mrb[38].mxu1 }
0x11b1   : > { %v5150_v22 = vadd.f32 %v3069_v16, %v3022_v21  ;;  %v4452_v23 = vpop.f32.mrb[39].mxu1 }
0x11b6   : > { %v4463_v25 = vpop.f32.mrb[34].mxu1 }
0x11b7   : > { %v3187_v26 = vmul.f32 0.35355338, %v4463_v25  ;;  %v3177_v62 = vpop.f32.mrb[35].mxu1 }
0x11b8   : > { %v3186_v30 = vmul.f32 0.35355338, %v3177_v62 }
0x11b9   : > { %v3191_v31 = vsel %vm1115_vm6, %v3187_v26, -inf }
0x11ba   : > { %3192 = vmax.xlane.f32.xlu0 %v3191_v31  ;;  %v3188_v61 = vsel %vm1115_vm6, %v3186_v30, -inf }
0x11bb   : > { %3189 = vmax.xlane.f32.xlu1 %v3188_v61 }
0x11cc   : > { %2268 = vperm.xlu1 %4537, %v2250_v63  }
0x1247   : > { %v3193_v32 = vpop.xlane.xlu0 %3192 }
0x1248   : > { %v3195_v33 = vsub.f32 %v3187_v26, %v3193_v32  ;;  %v3190_v34 = vpop.xlane.xlu1 %3189 }
0x1249   : > { %v3194_v35 = vsub.f32 %v3186_v30, %v3190_v34  ;;  %v4181_v30 = vld [vmem:[%s5297_s9 + $0x3c] sm:$0xf] }
0x124a   : > { %v3198_v36 = vmul.f32 1.442695, %v3195_v33  ;;  %v3572_v31 = vsel %vm1546_vm10, %v4181_v30, 0 }
0x124b   : > { %v3196_v37 = vmul.f32 1.442695, %v3194_v35 }
0x124c   : > { %4613 = vpow2.f32 %v3198_v36  ;;  %v2269_v48 = vpop.permute.xlu1 %2268 }
0x124d   : > { %4615 = vpow2.f32 %v3196_v37  ;;  %v2336_v49 = vadd.f32 %v5082_v60, %v2269_v48 }
0x1256   : > { %v4614_v38 = vpop.eup %4613 }
0x1257   : > { %v4616_v39 = vpop.eup %4615  ;;  %v3203_v42 = vsel %vm1115_vm6, %v4614_v38, 0.0 }
0x1258   : > { %3204 = vadd.xlane.f32.xlu0 %v3203_v42  ;;  %v3200_v24 = vsel %vm1115_vm6, %v4616_v39, 0.0 }
0x1259   : > { %3201 = vadd.xlane.f32.xlu1 %v3200_v24 }
0x126a   : > { %2366 = vperm.xlu1 %4537, %v4138_v27   ;;  %v4183_v27 = vld [vmem:[%s5299_s11] ss:$0 sm:$0xff] }
0x126e   : > { %2459 = vperm.xlu0 %4536, %v4149_v46  }
0x128c   : > { %3345 = vxpose.xlu0.b32.start.end [1/1] (short) (narrow) %v2336_v49, 16 }
0x12e5   : > { %v3205_v54 = vpop.xlane.xlu0 %3204 }
0x12e6   : > { %4617 = vrcp.f32 %v3205_v54  ;;  %v3202_v51 = vpop.xlane.xlu1 %3201 }
0x12e7   : > { %4619 = vrcp.f32 %v3202_v51 }
0x12ea   : > { %v2367_v50 = vpop.permute.xlu1 %2366 }
0x12eb   : > { %v2434_v58 = vadd.f32 %v5036_v40, %v2367_v50  ;;  %v4174_v40 = vld [vmem:[%s5297_s9 + $0x38] sm:$0xf] }
0x12ec   : > { %v3300_v3 = vsel %vm1546_vm10, %v4174_v40, 0 }
0x12ed   : > { %v2460_v57 = vpop.permute.xlu0 %2459  ;;  %4470 = vmatpush3.bf16.msra.mxu1 %v3300_v3  ;;  %v4553_v3 = vld [vmem:[%s5300_s12] sm:$0xff]  }
0x12ee   : > { %v2526_v59 = vadd.f32 %v5084_v2, %v2460_v57  ;;  %4485 = vmatprep.subr.bf16.mxu1 %v4649_v1 }
0x12f0   : > { %v4618_v0 = vpop.eup %4617  ;;  %4464 = vmatprep.subr.msk.mxu0 %vm1115_vm6, %v2526_v59 }
0x12f1   : > { %v4620_v6 = vpop.eup %4619  ;;  %4465 = vmatpush3.xpose.msk.msra.mxu0 %vm1115_vm6, %v2526_v59  ;;  %v3209_v60 = vmul.f32 %v4618_v0, %v4614_v38 }
0x12f2   : > { %4475 = vmatprep.subr.mxu0 %v2434_v58  ;;  %v3207_v53 = vmul.f32 %v4620_v6, %v4616_v39 }
0x12f4   : > { %4466 = vmatprep.mubr.msk.f32.mxu0 %vm1115_vm6, %v3207_v53 }
0x12f5   : > { %4467 = vmatmul.mubr.msk.f32.vlgmr.msra.gmra.mrb[38].mxu0 %vm1115_vm6, %v3209_v60 }
0x12f6   : > { %4476 = vmatpush3.msra.mxu0 %v2434_v58 }
0x130c   : > { %v3361_v7 = vpop.trf.xlu0 }
0x130d   : > { %4477 = vmatprep.mubr.msk.f32.mxu0 %vm1115_vm6, %v3361_v7 }
0x1310   : > { %v3362_v2 = vpop.trf.xlu0 }
0x1311   : > { %4478 = vmatmul.mubr.msk.f32.vlgmr.msra.gmra.mrb[44].mxu0 %vm1115_vm6, %v3362_v2 }
0x13c8   : > { %v4468_v8 = vpop.f32.mrb[38].mxu0 }
0x13c9   : > { %v3285_v9 = vpop.f32.mrb[39].mxu0 }
0x13ca   : > { %v3294_v45 = vpack.c.bf16 %v4468_v8, %v3285_v9  ;;  %v4554_v8 = vld [vmem:[%s5300_s12 + $0x8] sm:$0xff]  }
0x13cc   : > { %4472 = vmatmul.mubr.msk.bf16.vlgmr.msra.gmra.mrb[40].mxu1 %vm1115_vm6, %v3294_v45 }
0x13cd   : > { %4487 = vmatprep.mubr.msk.bf16.mxu1 %vm4651_vm2, %v4649_v1  ;;  %4486 = vmatpush3.bf16.msra.mxu1 %v3572_v31 }
0x13ce   : > { %4499 = vmatprep.subr.bf16.mxu1 %v4649_v1 }
0x13e4   : > { %v4479_v10 = vpop.f32.mrb[44].mxu0 }
0x13e5   : > { %v3459_v56 = vmul.f32 0.35355338, %v4479_v10  ;;  %v3449_v47 = vpop.f32.mrb[45].mxu0 }
0x13e6   : > { %v3458_v5 = vmul.f32 0.35355338, %v3449_v47 }
0x13e7   : > { %v3463_v52 = vsel %vm1115_vm6, %v3459_v56, -inf }
0x13e8   : > { %3464 = vmax.xlane.f32.xlu0 %v3463_v52  ;;  %v3460_v28 = vsel %vm1115_vm6, %v3458_v5, -inf }
0x13e9   : > { %3461 = vmax.xlane.f32.xlu1 %v3460_v28 }
0x1475   : > { %v3465_v29 = vpop.xlane.xlu0 %3464 }
0x1476   : > { %v3467_v41 = vsub.f32 %v3459_v56, %v3465_v29  ;;  %v3462_v55 = vpop.xlane.xlu1 %3461  ;;  %v4186_v29 = vld [vmem:[%s5304_s16 + $0x1] ss:$0 sm:$0xff] }
0x1477   : > { %v3466_v11 = vsub.f32 %v3458_v5, %v3462_v55 }
0x1478   : > { %v3470_v12 = vmul.f32 1.442695, %v3467_v41 }
0x1479   : > { %v3468_v13 = vmul.f32 1.442695, %v3466_v11 }
0x147a   : > { %4621 = vpow2.f32 %v3470_v12  ;;  %v4187_v12 = vld [vmem:[%s5305_s17 + $0x1] ss:$0 sm:$0xff] }
0x147b   : > { %4623 = vpow2.f32 %v3468_v13 }
0x1484   : > { %v4622_v14 = vpop.eup %4621 }
0x1485   : > { %v3475_v15 = vsel %vm1115_vm6, %v4622_v14, 0.0  ;;  %v4624_v16 = vpop.eup %4623 }
0x1486   : > { %3476 = vadd.xlane.f32.xlu1 %v3475_v15  ;;  %v3472_v17 = vsel %vm1115_vm6, %v4624_v16, 0.0 }
0x148a   : > { %3473 = vadd.xlane.f32.xlu1 %v3472_v17  ;;  %v4555_v17 = vld [vmem:[%s5302_s14] sm:$0xff]  }
0x149b   : > { %2464 = vperm.xlu1 %4537, %v4150_v18   ;;  %v4556_v18 = vld [vmem:[%s5302_s14 + $0x8] sm:$0xff]  }
0x149f   : > { %v3336_v20 = vpop.f32.mrb[40].mxu1 }
0x14a0   : > { %v3343_v21 = vadd.f32 %v3336_v20, %v5148_v19  ;;  %v4473_v23 = vpop.f32.mrb[41].mxu1  ;;  %v4557_v20 = vld [vmem:[%s5302_s14 + $0x10] sm:$0xff]  }
0x14a1   : > { %v3339_v25 = vpop.f32.mrb[42].mxu1  ;;  %v4188_v23 = vld [vmem:[%s5301_s13] ss:$0 sm:$0xff] }
0x14a2   : > { %v3344_v26 = vadd.f32 %v3339_v25, %v5150_v22  ;;  %v4474_v62 = vpop.f32.mrb[43].mxu1 }
0x1513   : > { %v3477_v61 = vpop.xlane.xlu1 %3476 }
0x1514   : > { %4625 = vrcp.f32 %v3477_v61 }
0x1517   : > { %v3474_v63 = vpop.xlane.xlu1 %3473 }
0x1518   : > { %4627 = vrcp.f32 %v3474_v63 }
0x151b   : > { %v2465_v32 = vpop.permute.xlu1 %2464 }
0x151c   : > { %v2529_v19 = vadd.f32 %v5088_v4, %v2465_v32 }
0x151e   : > { %4480 = vmatprep.subr.msk.mxu0 %vm1115_vm6, %v2529_v19  ;;  %v4626_v22 = vpop.eup %4625 }
0x151f   : > { %4481 = vmatpush3.xpose.msk.msra.mxu0 %vm1115_vm6, %v2529_v19  ;;  %v3481_v35 = vmul.f32 %v4626_v22, %v4622_v14 }
0x1520   : > { %4491 = vmatprep.subr.bf16.mxu0 %v4649_v1 }
0x1522   : > { %v4628_v33 = vpop.eup %4627 }
0x1523   : > { %v3479_v34 = vmul.f32 %v4628_v33, %v4624_v16 }
0x1525   : > { %4482 = vmatprep.mubr.msk.f32.mxu0 %vm1115_vm6, %v3479_v34 }
0x1526   : > { %4483 = vmatmul.mubr.msk.f32.vlgmr.msra.gmra.mrb[46].mxu0 %vm1115_vm6, %v3481_v35 }
0x1527   : > { %4495 = vmatprep.mubr.msk.bf16.mxu0 %vm4651_vm2, %v4649_v1  ;;  %4492 = vmatpush3.bf16.msra.mxu0 %v4553_v3 }
0x1528   : > { %4493 = vmatprep.subr.bf16.mxu0 %v4649_v1 }
0x152b   : > { %4494 = vmatpush3.bf16.msra.mxu0 %v4554_v8 }
0x152c   : > { %4511 = vmatprep.subr.bf16.mxu0 %v4649_v1 }
0x15f9   : > { %v4484_v36 = vpop.f32.mrb[46].mxu0 }
0x15fa   : > { %v3557_v37 = vpop.f32.mrb[47].mxu0 }
0x15fb   : > { %v3566_v4 = vpack.c.bf16 %v4484_v36, %v3557_v37 }
0x15fd   : > { %4488 = vmatmul.mubr.msk.bf16.vlgmr.msra.gmra.mrb[44].mxu1 %vm1115_vm6, %v3566_v4 }
0x15fe   : > { %4507 = vmatprep.mubr.msk.bf16.mxu1 %vm4651_vm2, %v4649_v1  ;;  %4500 = vmatpush3.bf16.msra.mxu1 %v4555_v17 }
0x15ff   : > { %4501 = vmatprep.subr.bf16.mxu1 %v4649_v1 }
0x1602   : > { %4502 = vmatpush3.bf16.msra.mxu1 %v4556_v18  ;;  %v4204_v18 = vld [vmem:[%s5304_s16 + $0x3] ss:$0 sm:$0xff] }
0x1603   : > { %4503 = vmatprep.subr.bf16.mxu1 %v4649_v1 }
0x1606   : > { %4504 = vmatpush3.bf16.msra.mxu1 %v4557_v20 }
0x1607   : > { %4505 = vmatprep.subr.bf16.mxu1 %v4649_v1 }
0x16d0   : > { %v3608_v38 = vpop.f32.mrb[44].mxu1 }
0x16d1   : > { %v3615_v39 = vadd.f32 %v3608_v38, %v3343_v21  ;;  %v4489_v42 = vpop.f32.mrb[45].mxu1  ;;  %v4558_v21 = vld [vmem:[%s5302_s14 + $0x18] sm:$0xff]  }
0x16d2   : > { %v3611_v24 = vpop.f32.mrb[46].mxu1  ;;  %4506 = vmatpush3.bf16.msra.mxu1 %v4558_v21  ;;  %v4205_v21 = vld [vmem:[%s5305_s17 + $0x3] ss:$0 sm:$0xff] }
0x16d3   : > { %v3617_v46 = vadd.f32 %v3615_v39, %v5056_v43  ;;  %v3616_v48 = vadd.f32 %v3611_v24, %v3344_v26  ;;  %v4490_v49 = vpop.f32.mrb[47].mxu1 }
0x16d5   : > { %v3618_v54 = vadd.f32 %v3616_v48, %v5058_v44  ;;  %v3626_v51 = vadd.f32 %v4183_v27, %v3617_v46 }
0x16d7   : > { %v3632_v50 = vsel %vm834_vm5, %v3626_v51, 0.0  ;;  %v3627_v57 = vadd.f32 %v4183_v27, %v3618_v54 }
0x16d8   : > { %3633 = vadd.xlane.f32.xlu1 %v3632_v50  ;;  %v4192_v50 = vld [vmem:[%s5303_s15] ss:$0 sm:$0xff] }
0x16d9   : > { %v3635_v59 = vsel %vm834_vm5, %v3627_v57, 0.0 }
0x16da   : > { %3636 = vadd.xlane.f32.xlu0 %v3635_v59 }
0x1765   : > { %v3634_v0 = vpop.xlane.xlu1 %3633 }
0x1766   : > { %v3638_v58 = vmul.f32 0.03125, %v3634_v0 }
0x1767   : > { %v3637_v6 = vpop.xlane.xlu0 %3636 }
0x1768   : > { %v3640_v53 = vsub.f32 %v3626_v51, %v3638_v58  ;;  %v3639_v60 = vmul.f32 0.03125, %v3637_v6 }
0x176a   : > { %v3641_v7 = vsub.f32 %v3627_v57, %v3639_v60  ;;  %v3642_v2 = vmul.f32 %v3640_v53, %v3640_v53 }
0x176c   : > { %v3644_v43 = vsel %vm834_vm5, %v3642_v2, 0.0  ;;  %v3643_v40 = vmul.f32 %v3641_v7, %v3641_v7 }
0x176d   : > { %3645 = vadd.xlane.f32.xlu0 %v3644_v43 }
0x176e   : > { %v3647_v44 = vsel %vm834_vm5, %v3643_v40, 0.0 }
0x1771   : > { %3648 = vadd.xlane.f32.xlu0 %v3647_v44 }
0x17fa   : > { %v3646_v9 = vpop.xlane.xlu0 %3645 }
0x17fb   : > { %v3650_v45 = vmul.f32 0.03125, %v3646_v9 }
0x17fd   : > { %v3652_v10 = vadd.f32 1e-05, %v3650_v45  ;;  %v4200_v45 = vld [vmem:[%s5304_s16 + $0x2] ss:$0 sm:$0xff] }
0x17fe   : > { %v3649_v56 = vpop.xlane.xlu0 %3648 }
0x17ff   : > { %4629 = vrsqrt.f32 %v3652_v10  ;;  %v3651_v47 = vmul.f32 0.03125, %v3649_v56  ;;  %v4201_v56 = vld [vmem:[%s5305_s17 + $0x2] ss:$0 sm:$0xff] }
0x1801   : > { %v3653_v5 = vadd.f32 1e-05, %v3651_v47 }
0x1803   : > { %4631 = vrsqrt.f32 %v3653_v5 }
0x1809   : > { %v4630_v52 = vpop.eup %4629 }
0x180a   : > { %v3656_v28 = vmul.f32 %v4630_v52, %v3640_v53 }
0x180c   : > { %v3664_v55 = vmul.f32 %v4186_v29, %v3656_v28 }
0x180d   : > { %v4632_v41 = vpop.eup %4631 }
0x180e   : > { %v3657_v11 = vmul.f32 %v4632_v41, %v3641_v7  ;;  %v3672_v14 = vadd.f32 %v4187_v12, %v3664_v55 }
0x1810   : > { %v3665_v13 = vmul.f32 %v4186_v29, %v3657_v11 }
0x1812   : > { %v3673_v15 = vadd.f32 %v4187_v12, %v3665_v13  ;;  %v4559_v12 = vld [vmem:[%s5306_s18] sm:$0xff]   ;;  %v4560_v13 = vld [vmem:[%s5306_s18 + $0x8] sm:$0xff]  }
0x1814   : > { %v3674_v16 = vpack.c.bf16 %v3673_v15, %v3672_v14 }
0x1816   : > { %4496 = vmatmul.mubr.msk.bf16.vlgmr.msra.gmra.mrb[48].mxu0 %vm834_vm5, %v3674_v16 }
0x1817   : > { %4515 = vmatprep.mubr.msk.bf16.mxu0 %vm4651_vm2, %v4649_v1  ;;  %4512 = vmatpush3.bf16.msra.mxu0 %v4559_v12 }
0x1818   : > { %4513 = vmatprep.subr.bf16.mxu0 %v4649_v1  ;;  %v4206_v1 = vld [vmem:[%s5307_s19] ss:$0 sm:$0xff] }
0x181b   : > { %4514 = vmatpush3.bf16.msra.mxu0 %v4560_v13 }
0x18e9   : > { %v3744_v25 = vpop.f32.mrb[48].mxu0 }
0x18ea   : > { %v3745_v26 = vadd.f32 %v4188_v23, %v3744_v25  ;;  %v4497_v62 = vpop.f32.mrb[49].mxu0 }
0x18eb   : > { %v3747_v30 = vpop.f32.mrb[50].mxu0 }
0x18ec   : > { %v3751_v31 = vmul.f32 %v3745_v26, %v3745_v26  ;;  %v3748_v61 = vadd.f32 %v4188_v23, %v3747_v30  ;;  %v4498_v63 = vpop.f32.mrb[51].mxu0 }
0x18ee   : > { %v3753_v32 = vmul.f32 %v3751_v31, %v3745_v26  ;;  %v3752_v19 = vmul.f32 %v3748_v61, %v3748_v61 }
0x18f0   : > { %v3755_v22 = vmul.f32 0.044715, %v3753_v32  ;;  %v3754_v33 = vmul.f32 %v3752_v19, %v3748_v61 }
0x18f2   : > { %v3757_v34 = vadd.f32 %v3755_v22, %v3745_v26  ;;  %v3756_v35 = vmul.f32 0.044715, %v3754_v33 }
0x18f4   : > { %v3759_v36 = vmul.f32 0.7978846, %v3757_v34  ;;  %v3758_v37 = vadd.f32 %v3756_v35, %v3748_v61 }
0x18f6   : > { %4633 = vtanh.f32 %v3759_v36  ;;  %v3760_v4 = vmul.f32 0.7978846, %v3758_v37 }
0x18f8   : > { %4635 = vtanh.f32 %v3760_v4 }
0x1900   : > { %v4634_v38 = vpop.eup %4633 }
0x1901   : > { %v3763_v39 = vadd.f32 1.0, %v4634_v38 }
0x1902   : > { %v4636_v42 = vpop.eup %4635 }
0x1903   : > { %v3765_v24 = vmul.f32 0.5, %v3763_v39  ;;  %v3764_v27 = vadd.f32 1.0, %v4636_v42 }
0x1905   : > { %v3766_v46 = vmul.f32 0.5, %v3764_v27  ;;  %v3767_v48 = vmul.f32 %v3765_v24, %v3745_v26 }
0x1907   : > { %v3768_v49 = vmul.f32 %v3766_v46, %v3748_v61 }
0x1909   : > { %v3769_v54 = vpack.c.bf16 %v3768_v49, %v3767_v48 }
0x190b   : > { %4508 = vmatmul.mubr.msk.bf16.vlgmr.msra.gmra.mrb[48].mxu1 %vm3800_vm11, %v3769_v54 }
0x19de   : > { %v3838_v51 = vpop.f32.mrb[48].mxu1 }
0x19df   : > { %v4509_v57 = vpop.f32.mrb[49].mxu1 }
0x19e0   : > { %v3840_v59 = vpop.f32.mrb[50].mxu1 }
0x19e1   : > { %v3841_v0 = vadd.f32 %v4192_v50, %v3840_v59  ;;  %v4510_v58 = vpop.f32.mrb[51].mxu1 }
0x19e3   : > { %v3844_v6 = vadd.f32 %v3841_v0, %v3673_v15 }
0x19e5   : > { %v3849_v53 = vsel %vm834_vm5, %v3844_v6, 0.0 }
0x19e6   : > { %3850 = vadd.xlane.f32.xlu0 %v3849_v53 }
0x1a73   : > { %v3851_v60 = vpop.xlane.xlu0 %3850 }
0x1a74   : > { %v3852_v7 = vmul.f32 0.03125, %v3851_v60 }
0x1a76   : > { %v3853_v2 = vsub.f32 %v3844_v6, %v3852_v7 }
0x1a78   : > { %v3854_v43 = vmul.f32 %v3853_v2, %v3853_v2 }
0x1a7a   : > { %v3855_v40 = vsel %vm834_vm5, %v3854_v43, 0.0 }
0x1a7b   : > { %3856 = vadd.xlane.f32.xlu0 %v3855_v40 }
0x1b08   : > { %v3857_v44 = vpop.xlane.xlu0 %3856 }
0x1b09   : > { %v3858_v3 = vmul.f32 0.03125, %v3857_v44 }
0x1b0b   : > { %v3859_v8 = vadd.f32 1e-05, %v3858_v3 }
0x1b0d   : > { %4637 = vrsqrt.f32 %v3859_v8 }
0x1b17   : > { %v4638_v9 = vpop.eup %4637 }
0x1b18   : > { %v3861_v10 = vmul.f32 %v4638_v9, %v3853_v2 }
0x1b1a   : > { %v3868_v47 = vmul.f32 %v4200_v45, %v3861_v10 }
0x1b1c   : > { %v3875_v5 = vadd.f32 %v4201_v56, %v3868_v47 }
0x1b1e   : > { %v3880_v52 = vsel %vm834_vm5, %v3875_v5, 0.0 }
0x1b1f   : > { %3881 = vadd.xlane.f32.xlu0 %v3880_v52 }
0x1bac   : > { %v3882_v28 = vpop.xlane.xlu0 %3881 }
0x1bad   : > { %v3883_v29 = vmul.f32 0.03125, %v3882_v28 }
0x1baf   : > { %v3884_v41 = vsub.f32 %v3875_v5, %v3883_v29 }
0x1bb1   : > { %v3885_v55 = vmul.f32 %v3884_v41, %v3884_v41 }
0x1bb3   : > { %v3886_v11 = vsel %vm834_vm5, %v3885_v55, 0.0 }
0x1bb4   : > { %3887 = vadd.xlane.f32.xlu1 %v3886_v11 }
0x1c41   : > { %v3888_v14 = vpop.xlane.xlu1 %3887 }
0x1c42   : > { %v3889_v15 = vmul.f32 0.03125, %v3888_v14 }
0x1c44   : > { %v3890_v16 = vadd.f32 1e-05, %v3889_v15 }
0x1c46   : > { %4639 = vrsqrt.f32 %v3890_v16 }
0x1c50   : > { %v4640_v17 = vpop.eup %4639 }
0x1c51   : > { %v3892_v20 = vmul.f32 %v4640_v17, %v3884_v41 }
0x1c53   : > { %v3899_v23 = vmul.f32 %v4204_v18, %v3892_v20 }
0x1c55   : > { %v3906_v25 = vadd.f32 %v4205_v21, %v3899_v23 }
0x1c57   : > { %v3907_v26 = vpack.c.bf16 %v3906_v25, %v3906_v25 }
0x1c59   : > { %4516 = vmatmul.mubr.msk.bf16.vlgmr.msra.gmra.mrb[52].mxu0 %vm834_vm5, %v3907_v26 }
0x1d2c   : > { %v3968_v62 = vpop.f32.mrb[52].mxu0 }
0x1d2d   : > { %v3969_v30 = vadd.f32 %v4206_v1, %v3968_v62  ;;  %v4517_v31 = vpop.f32.mrb[53].mxu0 }
0x1d2e   : > { %v3971_v61 = vpop.f32.mrb[54].mxu0 }
0x1d2f   : > { %3974 = vst [vmem:[%s664_s2] sm:$0xff] %v3969_v30  ;;  %v4518_v63 = vpop.f32.mrb[55].mxu0 }
0x1d30 PF: > { %s30_s1 = sadd.s32 1, %s4647_s1  }
0x1d31   : > { %p27_p4 = scmp.ge.s32.totalorder %s30_s1, 4  }
0x1d33   :  { %29 = sbr.rel (!%p27_p4) target bundleno = 6 (0x6), region = 152 }

</bundles_post_ra>
